<compile_context>
chip_gen: v6e
topology: v6e:2x2x1
jax: 0.10.0
libtpu: 0.0.40
codegen_flags: <defaults>
</compile_context>

<pallas_src>
import jax
import jax.numpy as jnp
from jax import lax
from jax.experimental import pallas as pl
from jax.experimental.pallas import tpu as pltpu

NEG_SLOPE = 0.01  # PyTorch nn.LeakyReLU / F.leaky_relu default


def _leaky(x):
    return jnp.where(x >= 0, x, NEG_SLOPE * x)


def _make_kernel(tile_h, H, W, C):
    def kernel(xm_ref, xh_ref, w1_ref, b1_ref, w2_ref, b2_ref, o_ref):
        t = pl.program_id(1)

        # (tile_h + 4, W + 2, C) padded input slab for this row tile
        xs = jnp.concatenate([xm_ref[0], xh_ref[0]], axis=0)

        def conv3x3(src, w_ref, b_ref, rows):
            # src: (rows + 2, W + 2, C) -> pre-activation (rows, W, C), f32.
            taps = []
            for kh in range(3):
                for kw in range(3):
                    taps.append(src[kh:kh + rows, kw:kw + W, :])
            patch = jnp.concatenate(taps, axis=-1)            # (rows, W, 9C)
            patch = patch.reshape(rows * W, 9 * C)            # K = 9C = 576
            out = jnp.dot(patch, w_ref[...],
                          preferred_element_type=jnp.float32) + b_ref[...]
            return out.reshape(rows, W, C)

        # ---- conv1 + LeakyReLU on tile rows + 1-row halo each side ----
        m = _leaky(conv3x3(xs, w1_ref, b1_ref, tile_h + 2))

        # Halo rows that fall outside the image are conv2's zero padding.
        g = t * tile_h - 1 + lax.broadcasted_iota(jnp.int32, (tile_h + 2, 1), 0)
        row_ok = jnp.logical_and(g >= 0, g < H)               # (tile_h+2, 1)
        m = jnp.where(row_ok[:, :, None], m, 0.0)

        # conv2 input: only the 1-column border needs explicit zeros.
        zcol = jnp.zeros((tile_h + 2, 1, C), jnp.float32)
        mid = jnp.concatenate([zcol, m, zcol], axis=1)        # (tile_h+2, W+2, C)

        # ---- conv2 + LeakyReLU, residual add, final LeakyReLU ----
        y = _leaky(conv3x3(mid, w2_ref, b2_ref, tile_h))      # (tile_h, W, C)
        x_center = xs[2:tile_h + 2, 1:W + 1, :]               # residual input
        out = _leaky(y + x_center)

        # lane-dense store: last dim = W*C (multiple of 128 for even W)
        o_ref[0] = out.reshape(tile_h, W * C).astype(o_ref.dtype)

    return kernel


def resblock_pallas(x_nchw, w1, b1, w2, b2, tile_h=8):
    """x_nchw: (N, 64, H, W); w: (64, 64, 3, 3) PyTorch OIHW; b: (64,)."""
    N, C, H, W = x_nchw.shape
    assert tile_h % 4 == 0 and H % tile_h == 0, "need tile_h % 4 == 0, H % tile_h == 0"
    n_tiles = H // tile_h

    x = jnp.transpose(x_nchw, (0, 2, 3, 1)).astype(jnp.float32)   # NHWC
    # rows padded by 2 (two stacked 3x3 convs), cols padded by 1
    x_pad = jnp.pad(x, ((0, 0), (2, 2), (1, 1), (0, 0)))

    # im2col weight layout: OIHW -> (kh, kw, Cin, Cout) -> (9*Cin, Cout)
    w1_k = jnp.transpose(w1, (2, 3, 1, 0)).reshape(9 * C, C).astype(jnp.float32)
    w2_k = jnp.transpose(w2, (2, 3, 1, 0)).reshape(9 * C, C).astype(jnp.float32)
    b1_k = b1.reshape(1, C).astype(jnp.float32)
    b2_k = b2.reshape(1, C).astype(jnp.float32)

    kernel = _make_kernel(tile_h, H, W, C)

    out = pl.pallas_call(
        kernel,
        out_shape=jax.ShapeDtypeStruct((N, H, W * C), jnp.float32),
        grid_spec=pltpu.PrefetchScalarGridSpec(
            num_scalar_prefetch=0,
            grid=(N, n_tiles),
            in_specs=[
                # main padded rows [t*tile_h, (t+1)*tile_h) of this tile
                pl.BlockSpec((1, tile_h, W + 2, C),
                             lambda n, t: (n, t, 0, 0)),
                # 4-row halo below the tile (2 stacked 3x3 convs -> +4 rows)
                pl.BlockSpec((1, 4, W + 2, C),
                             lambda n, t: (n, (t + 1) * (tile_h // 4), 0, 0)),
                pl.BlockSpec((9 * C, C), lambda n, t: (0, 0)),   # w1 (576,64)
                pl.BlockSpec((1, C), lambda n, t: (0, 0)),       # b1
                pl.BlockSpec((9 * C, C), lambda n, t: (0, 0)),   # w2
                pl.BlockSpec((1, C), lambda n, t: (0, 0)),       # b2
            ],
            out_specs=pl.BlockSpec((1, tile_h, W * C),
                                   lambda n, t: (n, t, 0)),
        ),
        compiler_params=pltpu.CompilerParams(
            dimension_semantics=("parallel", "parallel")),
    )(x_pad, x_pad, w1_k, b1_k, w2_k, b2_k)

    out = out.reshape(N, H, W, C)
    return jnp.transpose(out, (0, 3, 1, 2)).astype(x_nchw.dtype)   # NCHW


def resblock_reference(x_nchw, w1, b1, w2, b2):
    """Pure-JAX reference (NHWC conv via lax) for correctness check."""
    x = jnp.transpose(x_nchw, (0, 2, 3, 1))
    dn = ('NHWC', 'HWIO', 'NHWC')

    def conv(inp, w, b):
        w_hwio = jnp.transpose(w, (2, 3, 1, 0))
        y = lax.conv_general_dilated(inp, w_hwio, (1, 1), 'SAME',
                                     dimension_numbers=dn)
        return y + b.reshape(1, 1, 1, -1)

    h = _leaky(conv(x, w1, b1))
    h = _leaky(conv(h, w2, b2))
    out = _leaky(h + x)
    return jnp.transpose(out, (0, 3, 1, 2))


if __name__ == "__main__":
    key = jax.random.PRNGKey(0)
    kx, k1, kb1, k2, kb2 = jax.random.split(key, 5)

    N, C, H, W = 2, 64, 16, 16          # channels fixed at 64 by the module
    x = jax.random.normal(kx, (N, C, H, W), jnp.float32)
    w1 = jax.random.normal(k1, (C, C, 3, 3), jnp.float32) * 0.05
    b1 = jax.random.normal(kb1, (C,), jnp.float32) * 0.05
    w2 = jax.random.normal(k2, (C, C, 3, 3), jnp.float32) * 0.05
    b2 = jax.random.normal(kb2, (C,), jnp.float32) * 0.05

    out = jax.block_until_ready(resblock_pallas(x, w1, b1, w2, b2))
    ref = jax.block_until_ready(resblock_reference(x, w1, b1, w2, b2))

    assert out.shape == (N, C, H, W)
    max_err = float(jnp.max(jnp.abs(out - ref)))
    assert jnp.allclose(out, ref, atol=2e-4, rtol=2e-4), max_err

    print("KERNEL_OK")
</pallas_src>

<mosaic_0001>
module attributes {stable_mosaic.version = 11 : i64} {
  func.func @kernel(%arg0: i32, %arg1: i32, %arg2: memref<1x8x18x64xf32, #tpu.memory_space<vmem>>, %arg3: memref<1x4x18x64xf32, #tpu.memory_space<vmem>>, %arg4: memref<576x64xf32, #tpu.memory_space<vmem>>, %arg5: memref<1x64xf32, #tpu.memory_space<vmem>>, %arg6: memref<576x64xf32, #tpu.memory_space<vmem>>, %arg7: memref<1x64xf32, #tpu.memory_space<vmem>>, %arg8: memref<1x8x1024xf32, #tpu.memory_space<vmem>>) attributes {dimension_semantics = [#tpu.dimension_semantics<parallel>, #tpu.dimension_semantics<parallel>], iteration_bounds = array<i64: 2, 2>, scalar_prefetch = 0 : i64, scratch_operands = 0 : i64, tpu.core_type = #tpu.core_type<tc>, window_params = [{transform_indices = @transform_0, window_bounds = array<i64: 1, 8, 18, 64>}, {transform_indices = @transform_1, window_bounds = array<i64: 1, 4, 18, 64>}, {pipeline_mode = #tpu.pipeline_mode<synchronous>, transform_indices = @transform_2, window_bounds = array<i64: 576, 64>}, {pipeline_mode = #tpu.pipeline_mode<synchronous>, transform_indices = @transform_3, window_bounds = array<i64: 1, 64>}, {pipeline_mode = #tpu.pipeline_mode<synchronous>, transform_indices = @transform_4, window_bounds = array<i64: 576, 64>}, {pipeline_mode = #tpu.pipeline_mode<synchronous>, transform_indices = @transform_5, window_bounds = array<i64: 1, 64>}, {transform_indices = @transform_6, window_bounds = array<i64: 1, 8, 1024>}]} {
    %c0 = arith.constant 0 : index
    %c0_0 = arith.constant 0 : index
    %c0_1 = arith.constant 0 : index
    %c0_2 = arith.constant 0 : index
    %0 = vector.load %arg2[%c0, %c0_0, %c0_1, %c0_2] : memref<1x8x18x64xf32, #tpu.memory_space<vmem>>, vector<1x8x18x64xf32>
    %1 = vector.shape_cast %0 : vector<1x8x18x64xf32> to vector<8x18x64xf32>
    %c0_3 = arith.constant 0 : index
    %c0_4 = arith.constant 0 : index
    %c0_5 = arith.constant 0 : index
    %c0_6 = arith.constant 0 : index
    %2 = vector.load %arg3[%c0_3, %c0_4, %c0_5, %c0_6] : memref<1x4x18x64xf32, #tpu.memory_space<vmem>>, vector<1x4x18x64xf32>
    %3 = vector.shape_cast %2 : vector<1x4x18x64xf32> to vector<4x18x64xf32>
    %4 = tpu.concatenate %1, %3 in 0 : vector<8x18x64xf32>, vector<4x18x64xf32> -> vector<12x18x64xf32>
    %5 = vector.extract_strided_slice %4 {offsets = [0, 0, 0], sizes = [10, 16, 64], strides = [1, 1, 1]} : vector<12x18x64xf32> to vector<10x16x64xf32>
    %6 = vector.extract_strided_slice %4 {offsets = [0, 1, 0], sizes = [10, 16, 64], strides = [1, 1, 1]} : vector<12x18x64xf32> to vector<10x16x64xf32>
    %7 = vector.extract_strided_slice %4 {offsets = [0, 2, 0], sizes = [10, 16, 64], strides = [1, 1, 1]} : vector<12x18x64xf32> to vector<10x16x64xf32>
    %8 = vector.extract_strided_slice %4 {offsets = [1, 0, 0], sizes = [10, 16, 64], strides = [1, 1, 1]} : vector<12x18x64xf32> to vector<10x16x64xf32>
    %9 = vector.extract_strided_slice %4 {offsets = [1, 1, 0], sizes = [10, 16, 64], strides = [1, 1, 1]} : vector<12x18x64xf32> to vector<10x16x64xf32>
    %10 = vector.extract_strided_slice %4 {offsets = [1, 2, 0], sizes = [10, 16, 64], strides = [1, 1, 1]} : vector<12x18x64xf32> to vector<10x16x64xf32>
    %11 = vector.extract_strided_slice %4 {offsets = [2, 0, 0], sizes = [10, 16, 64], strides = [1, 1, 1]} : vector<12x18x64xf32> to vector<10x16x64xf32>
    %12 = vector.extract_strided_slice %4 {offsets = [2, 1, 0], sizes = [10, 16, 64], strides = [1, 1, 1]} : vector<12x18x64xf32> to vector<10x16x64xf32>
    %13 = vector.extract_strided_slice %4 {offsets = [2, 2, 0], sizes = [10, 16, 64], strides = [1, 1, 1]} : vector<12x18x64xf32> to vector<10x16x64xf32>
    %14 = tpu.concatenate %5, %6, %7, %8, %9, %10, %11, %12, %13 in 2 : vector<10x16x64xf32>, vector<10x16x64xf32>, vector<10x16x64xf32>, vector<10x16x64xf32>, vector<10x16x64xf32>, vector<10x16x64xf32>, vector<10x16x64xf32>, vector<10x16x64xf32>, vector<10x16x64xf32> -> vector<10x16x576xf32>
    %15 = vector.shape_cast %14 : vector<10x16x576xf32> to vector<160x576xf32>
    %c0_7 = arith.constant 0 : index
    %c0_8 = arith.constant 0 : index
    %16 = vector.load %arg4[%c0_7, %c0_8] : memref<576x64xf32, #tpu.memory_space<vmem>>, vector<576x64xf32>
    %cst = arith.constant dense<0.000000e+00> : vector<160x64xf32>
    %17 = tpu.matmul %15, %16, %cst {dimension_numbers = #tpu.dot_dimension_numbers<[1], [0], [0], [1], [0, 0, 1, 1], [], []>} : vector<160x576xf32>, vector<576x64xf32>, vector<160x64xf32> -> vector<160x64xf32>
    %c0_9 = arith.constant 0 : index
    %c0_10 = arith.constant 0 : index
    %18 = vector.load %arg5[%c0_9, %c0_10] : memref<1x64xf32, #tpu.memory_space<vmem>>, vector<1x64xf32>
    %19 = vector.broadcast %18 : vector<1x64xf32> to vector<160x64xf32>
    %20 = arith.addf %17, %19 : vector<160x64xf32>
    %21 = vector.shape_cast %20 : vector<160x64xf32> to vector<10x16x64xf32>
    %cst_11 = arith.constant 0.000000e+00 : f32
    %22 = vector.broadcast %cst_11 : f32 to vector<10x16x64xf32>
    %23 = arith.cmpf oge, %21, %22 : vector<10x16x64xf32>
    %cst_12 = arith.constant 0.00999999977 : f32
    %24 = vector.broadcast %cst_12 : f32 to vector<10x16x64xf32>
    %25 = arith.mulf %24, %21 : vector<10x16x64xf32>
    %26 = arith.select %23, %21, %25 : vector<10x16x64xi1>, vector<10x16x64xf32>
    %c8_i32 = arith.constant 8 : i32
    %27 = arith.muli %arg1, %c8_i32 : i32
    %c1_i32 = arith.constant 1 : i32
    %28 = arith.subi %27, %c1_i32 : i32
    %29 = tpu.iota {dimensions = array<i32: 0>} : vector<10x1xi32>
    %30 = vector.broadcast %28 : i32 to vector<10x1xi32>
    %31 = arith.addi %30, %29 : vector<10x1xi32>
    %c0_i32 = arith.constant 0 : i32
    %32 = vector.broadcast %c0_i32 : i32 to vector<10x1xi32>
    %33 = arith.cmpi sge, %31, %32 : vector<10x1xi32>
    %c16_i32 = arith.constant 16 : i32
    %34 = vector.broadcast %c16_i32 : i32 to vector<10x1xi32>
    %35 = arith.cmpi slt, %31, %34 : vector<10x1xi32>
    %36 = arith.andi %33, %35 : vector<10x1xi1>
    %37 = vector.shape_cast %36 : vector<10x1xi1> to vector<10x1x1xi1>
    %cst_13 = arith.constant 0.000000e+00 : f32
    %38 = vector.shape_cast %37 : vector<10x1x1xi1> to vector<10x1x1xi1>
    %39 = vector.broadcast %38 : vector<10x1x1xi1> to vector<10x16x64xi1>
    %40 = vector.broadcast %cst_13 : f32 to vector<10x16x64xf32>
    %41 = arith.select %39, %26, %40 : vector<10x16x64xi1>, vector<10x16x64xf32>
    %cst_14 = arith.constant 0.000000e+00 : f32
    %42 = vector.broadcast %cst_14 : f32 to vector<10x1x64xf32>
    %43 = tpu.concatenate %42, %41, %42 in 1 : vector<10x1x64xf32>, vector<10x16x64xf32>, vector<10x1x64xf32> -> vector<10x18x64xf32>
    %44 = vector.extract_strided_slice %43 {offsets = [0, 0, 0], sizes = [8, 16, 64], strides = [1, 1, 1]} : vector<10x18x64xf32> to vector<8x16x64xf32>
    %45 = vector.extract_strided_slice %43 {offsets = [0, 1, 0], sizes = [8, 16, 64], strides = [1, 1, 1]} : vector<10x18x64xf32> to vector<8x16x64xf32>
    %46 = vector.extract_strided_slice %43 {offsets = [0, 2, 0], sizes = [8, 16, 64], strides = [1, 1, 1]} : vector<10x18x64xf32> to vector<8x16x64xf32>
    %47 = vector.extract_strided_slice %43 {offsets = [1, 0, 0], sizes = [8, 16, 64], strides = [1, 1, 1]} : vector<10x18x64xf32> to vector<8x16x64xf32>
    %48 = vector.extract_strided_slice %43 {offsets = [1, 1, 0], sizes = [8, 16, 64], strides = [1, 1, 1]} : vector<10x18x64xf32> to vector<8x16x64xf32>
    %49 = vector.extract_strided_slice %43 {offsets = [1, 2, 0], sizes = [8, 16, 64], strides = [1, 1, 1]} : vector<10x18x64xf32> to vector<8x16x64xf32>
    %50 = vector.extract_strided_slice %43 {offsets = [2, 0, 0], sizes = [8, 16, 64], strides = [1, 1, 1]} : vector<10x18x64xf32> to vector<8x16x64xf32>
    %51 = vector.extract_strided_slice %43 {offsets = [2, 1, 0], sizes = [8, 16, 64], strides = [1, 1, 1]} : vector<10x18x64xf32> to vector<8x16x64xf32>
    %52 = vector.extract_strided_slice %43 {offsets = [2, 2, 0], sizes = [8, 16, 64], strides = [1, 1, 1]} : vector<10x18x64xf32> to vector<8x16x64xf32>
    %53 = tpu.concatenate %44, %45, %46, %47, %48, %49, %50, %51, %52 in 2 : vector<8x16x64xf32>, vector<8x16x64xf32>, vector<8x16x64xf32>, vector<8x16x64xf32>, vector<8x16x64xf32>, vector<8x16x64xf32>, vector<8x16x64xf32>, vector<8x16x64xf32>, vector<8x16x64xf32> -> vector<8x16x576xf32>
    %54 = vector.shape_cast %53 : vector<8x16x576xf32> to vector<128x576xf32>
    %c0_15 = arith.constant 0 : index
    %c0_16 = arith.constant 0 : index
    %55 = vector.load %arg6[%c0_15, %c0_16] : memref<576x64xf32, #tpu.memory_space<vmem>>, vector<576x64xf32>
    %cst_17 = arith.constant dense<0.000000e+00> : vector<128x64xf32>
    %56 = tpu.matmul %54, %55, %cst_17 {dimension_numbers = #tpu.dot_dimension_numbers<[1], [0], [0], [1], [0, 0, 1, 1], [], []>} : vector<128x576xf32>, vector<576x64xf32>, vector<128x64xf32> -> vector<128x64xf32>
    %c0_18 = arith.constant 0 : index
    %c0_19 = arith.constant 0 : index
    %57 = vector.load %arg7[%c0_18, %c0_19] : memref<1x64xf32, #tpu.memory_space<vmem>>, vector<1x64xf32>
    %58 = vector.broadcast %57 : vector<1x64xf32> to vector<128x64xf32>
    %59 = arith.addf %56, %58 : vector<128x64xf32>
    %60 = vector.shape_cast %59 : vector<128x64xf32> to vector<8x16x64xf32>
    %cst_20 = arith.constant 0.000000e+00 : f32
    %61 = vector.broadcast %cst_20 : f32 to vector<8x16x64xf32>
    %62 = arith.cmpf oge, %60, %61 : vector<8x16x64xf32>
    %cst_21 = arith.constant 0.00999999977 : f32
    %63 = vector.broadcast %cst_21 : f32 to vector<8x16x64xf32>
    %64 = arith.mulf %63, %60 : vector<8x16x64xf32>
    %65 = arith.select %62, %60, %64 : vector<8x16x64xi1>, vector<8x16x64xf32>
    %66 = vector.extract_strided_slice %4 {offsets = [2, 1, 0], sizes = [8, 16, 64], strides = [1, 1, 1]} : vector<12x18x64xf32> to vector<8x16x64xf32>
    %67 = arith.addf %65, %66 : vector<8x16x64xf32>
    %cst_22 = arith.constant 0.000000e+00 : f32
    %68 = vector.broadcast %cst_22 : f32 to vector<8x16x64xf32>
    %69 = arith.cmpf oge, %67, %68 : vector<8x16x64xf32>
    %cst_23 = arith.constant 0.00999999977 : f32
    %70 = vector.broadcast %cst_23 : f32 to vector<8x16x64xf32>
    %71 = arith.mulf %70, %67 : vector<8x16x64xf32>
    %72 = arith.select %69, %67, %71 : vector<8x16x64xi1>, vector<8x16x64xf32>
    %73 = vector.shape_cast %72 : vector<8x16x64xf32> to vector<8x1024xf32>
    %c0_24 = arith.constant 0 : index
    %c0_25 = arith.constant 0 : index
    %c0_26 = arith.constant 0 : index
    %74 = vector.load %arg8[%c0_24, %c0_25, %c0_26] : memref<1x8x1024xf32, #tpu.memory_space<vmem>>, vector<1x8x1024xf32>
    %75 = vector.shape_cast %74 : vector<1x8x1024xf32> to vector<8x1024xf32>
    %76 = vector.shape_cast %73 : vector<8x1024xf32> to vector<1x8x1024xf32>
    tpu.vector_store %arg8[%c0_24, %c0_25, %c0_26], %76 {strides = array<i32>} : memref<1x8x1024xf32, #tpu.memory_space<vmem>>, vector<1x8x1024xf32>,
    return
  }
  func.func @transform_0(%arg0: i32, %arg1: i32) -> (i32, i32, i32, i32) {
    %c0_i32 = arith.constant 0 : i32
    %c0_i32_0 = arith.constant 0 : i32
    %c0_i32_1 = arith.constant 0 : i32
    return %arg0, %arg1, %c0_i32, %c0_i32_0 : i32, i32, i32, i32
  }
  func.func @transform_1(%arg0: i32, %arg1: i32) -> (i32, i32, i32, i32) {
    %c1_i32 = arith.constant 1 : i32
    %0 = arith.addi %arg1, %c1_i32 : i32
    %c2_i32 = arith.constant 2 : i32
    %1 = arith.muli %0, %c2_i32 : i32
    %c0_i32 = arith.constant 0 : i32
    %c0_i32_0 = arith.constant 0 : i32
    %c0_i32_1 = arith.constant 0 : i32
    return %arg0, %1, %c0_i32, %c0_i32_0 : i32, i32, i32, i32
  }
  func.func @transform_2(%arg0: i32, %arg1: i32) -> (i32, i32) {
    %c0_i32 = arith.constant 0 : i32
    %c0_i32_0 = arith.constant 0 : i32
    %c0_i32_1 = arith.constant 0 : i32
    return %c0_i32, %c0_i32_0 : i32, i32
  }
  func.func @transform_3(%arg0: i32, %arg1: i32) -> (i32, i32) {
    %c0_i32 = arith.constant 0 : i32
    %c0_i32_0 = arith.constant 0 : i32
    %c0_i32_1 = arith.constant 0 : i32
    return %c0_i32, %c0_i32_0 : i32, i32
  }
  func.func @transform_4(%arg0: i32, %arg1: i32) -> (i32, i32) {
    %c0_i32 = arith.constant 0 : i32
    %c0_i32_0 = arith.constant 0 : i32
    %c0_i32_1 = arith.constant 0 : i32
    return %c0_i32, %c0_i32_0 : i32, i32
  }
  func.func @transform_5(%arg0: i32, %arg1: i32) -> (i32, i32) {
    %c0_i32 = arith.constant 0 : i32
    %c0_i32_0 = arith.constant 0 : i32
    %c0_i32_1 = arith.constant 0 : i32
    return %c0_i32, %c0_i32_0 : i32, i32
  }
  func.func @transform_6(%arg0: i32, %arg1: i32) -> (i32, i32, i32) {
    %c0_i32 = arith.constant 0 : i32
    %c0_i32_0 = arith.constant 0 : i32
    return %arg0, %arg1, %c0_i32 : i32, i32, i32
  }
}

</mosaic_0001>

<bundles_post_ra>
// kernel: tpu_custom_call.1
= control target key start
LH: loop header
LB: loop body
LE: loop exit
PB: predicated region body
PF: predicated region fallthrough
CT: control target
= control target key end

     0   :  { %11 = vsyncpa [#allocation3], 0  ;;  %s6264_s0 = inlined_call_operand.vmem [shape: f32[2,20,18,64], index: 0, kind: input, shape index: {}]   ;;  %s6265_s1 = inlined_call_operand.vmem [shape: f32[2,20,18,64], index: 1, kind: input, shape index: {}]   ;;  %s6266_s2 = inlined_call_operand.vmem [shape: f32[576,64], index: 2, kind: input, shape index: {}]   ;;  %s6267_s3 = inlined_call_operand.vmem [shape: f32[1,64], index: 3, kind: input, shape index: {}]   ;;  %s6268_s4 = inlined_call_operand.vmem [shape: f32[576,64], index: 4, kind: input, shape index: {}]   ;;  %s6269_s5 = inlined_call_operand.vmem [shape: f32[1,64], index: 5, kind: input, shape index: {}]   ;;  %s6270_s6 = inlined_call_operand.hbm [shape: f32[2,16,1024], index: 6, kind: output, shape index: {}]  }
   0x1   :  { %13 = vsyncpa [#allocation3 + $0x1], 0  ;;  %s4011_s21 = smov 0   ;;  %s4013_s22 = smov 0  }
   0x2   :  { %s4015_s23 = smov 0   ;;  %s4017_s24 = smov 0  }
   0x3   :  { %s4019_s25 = smov 0   ;;  %s4021_s26 = smov 0  }
   0x4   :  { %s4023_s27 = smov 0   ;;  %s4025_s28 = smov 0  }
   0x5 LB: > { %s3191_s29 = sadd.s32 4294967295, %s3968_s28   ;;  %s3192_s30 = sadd.s32 4294967294, %s3968_s28   ;;  %s3968_s28 = sphi %s4025_s28, %s19_s28   ;;  %s3964_s27 = sphi %s4023_s27, %s6410_s27   ;;  %s3960_s26 = sphi %s4021_s26, %s6409_s26   ;;  %s3956_s25 = sphi %s4019_s25, %s6408_s25   ;;  %s3952_s24 = sphi %s4017_s24, %s6407_s24   ;;  %s3948_s23 = sphi %s4015_s23, %s6406_s23   ;;  %s3944_s22 = sphi %s4013_s22, %s6405_s22   ;;  %s3940_s21 = sphi %s4011_s21, %s6404_s21  }
   0x6   : > { %s28_s7 = sadd.s32 1, %s3960_s26  ;;  %s31_s8 = sadd.s32 1, %s3964_s27 }
   0x7   : > { %p29_p0 = scmp.ge.s32.totalorder %s28_s7, 2  ;;  %p194_p1 = scmp.ne.s32.totalorder %s3948_s23, %s3944_s22 }
   0x8   : > { %p195_p2 = scmp.eq.s32.totalorder %s3191_s29, 3  ;;  %p200_p5 = scmp.ne.s32.totalorder %s3944_s22, %s3940_s21 }
   0x9   : > { %s6412_s7 = smov (%p29_p0, %s28_s7), 0  ;;  %s6414_s8 = smov (!%p29_p0, %s31_s8), %s3964_s27 }
   0xa   : > { %6319 = sst [smem:[#allocation5_spill]] %s6412_s7  ;;  %s180_s9 = ssub.s32 %s3960_s26, %s6412_s7 }
   0xb   : > { %p4062_p3 = por %p195_p2, %p194_p1  ;;  %p33_p4 = scmp.ge.s32.totalorder %s6414_s8, 2 }
   0xc   : > { %p201_p6 = scmp.eq.s32.totalorder %s3192_s30, 3  ;;  %p3197_p7 = scmp.ge.s32.totalorder %s3968_s28, 1 }
   0xd   : > { %s6416_s8 = smov (%p33_p4, %s6414_s8), 0  ;;  %p273_p9 = scmp.lt.s32.totalorder %s3968_s28, 5 }
   0xe   : > { %6321 = sst [smem:[#allocation6_spill]] %s6416_s8  ;;  %p4071_p8 = por %p201_p6, %p200_p5 }
   0xf   : > { %s179_s12 = ssub.s32 %s3964_s27, %s6416_s8  ;;  %s184_s13 = sadd.s32 1, %s3948_s23 }
  0x10   : > { %s181_s14 = sor.u32 %s180_s9, %s179_s12  ;;  %p274_p10 = pnand %p3197_p7, %p273_p9 }
  0x11   : > { %p182_p11 = scmp.eq.s32.totalorder %s181_s14, 0 }
  0x12   : > { %277 = sbr.rel (%p274_p10) target bundleno = 1027 (0x403), region = 44 }
  0x13   : > { %s4080_s15 = scalar_select %p182_p11, %s3948_s23, %s184_s13  }
  0x17   : > { %s4083_s16 = sshll.u32 %s3952_s24, 3  ;;  %p331_p12 = scmp.lt.s32.totalorder %s3956_s25, 1  ;;  %v867_v0 = vld [vmem:[%s6266_s2 + $0x78] sm:$0xff]  ;;  %v6276_v1 = vmov 0.0   ;;  %v866_v2 = vld [vmem:[%s6266_s2 + $0x70] sm:$0xff]  ;;  %v865_v3 = vld [vmem:[%s6266_s2 + $0x68] sm:$0xff] }
  0x18   : > { %p333_p13 = scmp.lt.s32.totalorder %s4083_s16, 19  ;;  %971 = vmatprep.subr.mxu0 %v6276_v1  ;;  %1136 = vmatprep.subr.mxu1 %v6276_v1  ;;  %v864_v4 = vld [vmem:[%s6266_s2 + $0x60] sm:$0xff]  ;;  %v863_v5 = vld [vmem:[%s6266_s2 + $0x58] sm:$0xff]  ;;  %v862_v7 = vld [vmem:[%s6266_s2 + $0x50] sm:$0xff]  ;;  %vm427_vm0 = vcmask 1046528   ;;  %s3258_s9 = sadd.s32 8, %s4083_s16 }
  0x19   : > { %s4096_s29 = scalar_select %p331_p12, %s3956_s25, 1  ;;  %972 = vmatpush1.msra.mxu0 %v867_v0  ;;  %v899_v6 = vld [vmem:[%s6266_s2 + $0x178] sm:$0xff]  ;;  %v898_v8 = vld [vmem:[%s6266_s2 + $0x170] sm:$0xff]  ;;  %v861_v9 = vld [vmem:[%s6266_s2 + $0x48] sm:$0xff]  ;;  %vm538_vm1 = vcmask 1045504   ;;  %vm787_vm2 = vcmask 523264  }
  0x1a   : > { %s334_s24 = scalar_select %p333_p13, %s4083_s16, 19  ;;  %973 = vmatprep.subr.mxu0 %v6276_v1  ;;  %1137 = vmatpush1.msra.mxu1 %v899_v6  ;;  %v897_v10 = vld [vmem:[%s6266_s2 + $0x168] sm:$0xff]  ;;  %v896_v11 = vld [vmem:[%s6266_s2 + $0x160] sm:$0xff]  ;;  %v859_v41 = vld [vmem:[%s6266_s2 + $0x38] sm:$0xff]  ;;  %vm1652_vm10 = vcmask 1040384  }
  0x1b   : > { %s6273_s12 = smul.u32 60, %s4096_s29  ;;  %974 = vmatpush1.msra.mxu0 %v866_v2  ;;  %1138 = vmatprep.subr.mxu1 %v6276_v1  ;;  %p4180_p0 = scmp.lt.s32.totalorder %s3258_s9, 19  ;;  %v860_v35 = vld [vmem:[%s6266_s2 + $0x40] sm:$0xff]  ;;  %v895_v51 = vld [vmem:[%s6266_s2 + $0x158] sm:$0xff]  ;;  %v858_v53 = vld [vmem:[%s6266_s2 + $0x30] sm:$0xff] }
  0x1c   : > { %s3557_s13 = smul.u32 3, %s334_s24  ;;  %975 = vmatprep.subr.mxu0 %v6276_v1  ;;  %1139 = vmatpush1.msra.mxu1 %v898_v8  ;;  %s3971_s17 = smov 64   ;;  %v857_v63 = vld [vmem:[%s6266_s2 + $0x28] sm:$0xff]  ;;  %v894_v2 = vld [vmem:[%s6266_s2 + $0x150] sm:$0xff] }
  0x1d   : > { %976 = vmatpush1.msra.mxu0 %v865_v3  ;;  %1140 = vmatprep.subr.mxu1 %v6276_v1  ;;  %s6418_s9 = smov (!%p4180_p0, %s3258_s9), 19  ;;  %s6329_s7 = smul.u32 60, %s4096_s29 }
  0x1e   : > { %s337_s18 = sadd.s32 %s6273_s12, %s3557_s13  ;;  %977 = vmatprep.subr.mxu0 %v6276_v1  ;;  %1141 = vmatpush1.msra.mxu1 %v897_v10  ;;  %s3226_s12 = sadd.s32 4294967295, %s4083_s16 }
  0x1f   : > { %s3200_s24 = sshll.u32 %s337_s18, 3  ;;  %978 = vmatpush1.msra.mxu0 %v864_v4  ;;  %1142 = vmatprep.subr.mxu1 %v6276_v1  ;;  %s322_s14 = sand.u32 1, %s3944_s22  }
  0x20   : > { %s4126_s19 = scalar_lea.vmem %s6264_s0, %s3200_s24  ;;  %979 = vmatprep.subr.mxu0 %v6276_v1  ;;  %1143 = vmatpush1.msra.mxu1 %v896_v11  ;;  %s3559_s24 = smul.u32 3, %s6418_s9 }
  0x21   : > { %v4140_v12 = vld [vmem:[%s4126_s19] sm:$0xff]  ;;  %v4143_v13 = vld [vmem:[%s4126_s19 + $0x8] sm:$0xff]  ;;  %v4146_v14 = vld [vmem:[%s4126_s19 + $0x18] sm:$0xff]  ;;  %980 = vmatpush1.msra.mxu0 %v863_v5  ;;  %1144 = vmatprep.subr.mxu1 %v6276_v1  ;;  %s3198_s13 = sshll.u32 %s322_s14, 6  ;;  %s3246_s9 = sshll.u32 %s3956_s25, 4 }
  0x22   : > { %v428_v15 = vrot.slane %v4140_v12, 1  ;;  %v429_v16 = vrot.slane %v4143_v13, 1  ;;  %v4152_v17 = vld [vmem:[%s4126_s19 + $0x20] sm:$0xff]  ;;  %v4155_v18 = vld [vmem:[%s4126_s19 + $0x30] sm:$0xff]  ;;  %v433_v19 = vrot.slane %v4146_v14, 1  ;;  %v4159_v20 = vld [vmem:[%s4126_s19 + $0x38] sm:$0xff]  ;;  %981 = vmatprep.subr.mxu0 %v6276_v1  ;;  %1145 = vmatpush1.msra.mxu1 %v895_v51  ;;  %s355_s8 = sadd.s32 %s3559_s24, %s6329_s7 }
  0x23   : > { %v434_v21 = vrot.slane %v4152_v17, 1  ;;  %v438_v22 = vrot.slane %v4155_v18, 1  ;;  %v4166_v23 = vld [vmem:[%s4126_s19 + $0x10] sm:$0x3]  ;;  %v4169_v24 = vld [vmem:[%s4126_s19 + $0x28] sm:$0x3]  ;;  %982 = vmatpush1.msra.mxu0 %v862_v7  ;;  %1146 = vmatprep.subr.mxu1 %v6276_v1 }
  0x24   : > { %v430_v25 = vsel %vm427_vm0, %v428_v15, %v429_v16  ;;  %v431_v26 = vrot.slane %v4166_v23, 1  ;;  %v436_v27 = vrot.slane %v4169_v24, 1  ;;  %v439_v28 = vrot.slane %v4159_v20, 1  ;;  %v4176_v29 = vld [vmem:[%s4126_s19 + $0x40] sm:$0x3]  ;;  %983 = vmatprep.subr.mxu0 %v6276_v1  ;;  %v4191_v32 = vld [vmem:[%s4126_s19 + $0x48] sm:$0xff]  ;;  %1147 = vmatpush1.msra.mxu1 %v894_v2 }
  0x25   : > { %v3636_v30 = vpack.i.bf16 %v430_v25, %v4146_v14  ;;  %v4188_v31 = vsel %vm427_vm0, %v433_v19, %v434_v21  ;;  %v4194_v33 = vld [vmem:[%s4126_s19 + $0x50] sm:$0xff]  ;;  %v441_v34 = vrot.slane %v4176_v29, 1  ;;  %984 = vmatpush1.msra.mxu0 %v861_v9  ;;  %v4207_v39 = vld [vmem:[%s4126_s19 + $0x58] sm:$0x3]  ;;  %v443_v44 = vrot.slane %v4191_v32, 1  ;;  %v4233_v47 = vld [vmem:[%s4126_s19 + $0x60] sm:$0xff]  ;;  %1148 = vmatprep.subr.mxu1 %v6276_v1 }
  0x26   : > { %v3646_v36 = vpack.i.bf16 %v4188_v31, %v4155_v18  ;;  %v432_v37 = vsel %vm427_vm0, %v429_v16, %v431_v26  ;;  %v4204_v38 = vsel %vm427_vm0, %v434_v21, %v436_v27  ;;  %985 = vmatprep.subr.mxu0 %v6276_v1  ;;  %v4219_v43 = vsel %vm427_vm0, %v438_v22, %v439_v28  ;;  %v4236_v48 = vld [vmem:[%s4126_s19 + $0x68] sm:$0xff]  ;;  %v4242_v50 = vld [vmem:[%s4126_s19 + $0x70] sm:$0x3]  ;;  %v4266_v59 = vld [vmem:[%s4126_s19 + $0x78] sm:$0xff]  ;;  %s3203_s24 = sshll.u32 %s355_s8, 3 }
  0x27   : > { %3637 = vrot.lane.b32.xlu0 %v3636_v30, %s3971_s17  ;;  %v3641_v40 = vpack.i.bf16 %v432_v37, %v4152_v17  ;;  %v3651_v42 = vpack.i.bf16 %v4204_v38, %v4159_v20  ;;  %6324 = vst [vmem:[#allocation7_spill] sm:$0xff] %v4219_v43  ;;  %v444_v45 = vrot.slane %v4194_v33, 1  ;;  %986 = vmatpush1.msra.mxu0 %v860_v35  ;;  %v446_v49 = vrot.slane %v4207_v39, 1  ;;  %v4269_v60 = vld [vmem:[%s4126_s19 + $0x80] sm:$0xff]  ;;  %v4274_v62 = vld [vmem:[%s4126_s19 + $0x88] sm:$0x3]  ;;  %s4345_s7 = scalar_lea.vmem %s6265_s1, %s3203_s24 }
  0x28   : > { %3647 = vrot.lane.b32.xlu1 %v3646_v36, %s3971_s17  ;;  %v4230_v46 = vsel %vm427_vm0, %v439_v28, %v441_v34  ;;  %987 = vmatprep.subr.mxu0 %v6276_v1  ;;  %v3656_v52 = vpack.i.bf16 %v4219_v43, %v4191_v32  ;;  %v448_v56 = vrot.slane %v4233_v47, 1  ;;  %v449_v57 = vrot.slane %v4236_v48, 1  ;;  %v856_v7 = vld [vmem:[%s6266_s2 + $0x20] sm:$0xff]  ;;  %v4304_v9 = vld [vmem:[%s4126_s19 + $0x90] sm:$0xff]  ;;  %v4307_v10 = vld [vmem:[%s4126_s19 + $0x98] sm:$0xff] }
  0x29   : > { %6325 = vst [vmem:[#allocation8_spill] sm:$0xff] %v4230_v46  ;;  %988 = vmatpush1.msra.mxu0 %v859_v41  ;;  %v3661_v54 = vpack.i.bf16 %v4230_v46, %v4194_v33  ;;  %v4257_v55 = vsel %vm427_vm0, %v443_v44, %v444_v45  ;;  %v4263_v58 = vsel %vm427_vm0, %v444_v45, %v446_v49  ;;  %v451_v61 = vrot.slane %v4242_v50, 1  ;;  %v4311_v15 = vld [vmem:[%s4126_s19 + $0xa0] sm:$0x3]  ;;  %v855_v16 = vld [vmem:[%s6266_s2 + $0x18] sm:$0xff]  ;;  %v854_v27 = vld [vmem:[%s6266_s2 + $0x10] sm:$0xff] }
  0x2a   : > { %6326 = vst [vmem:[#allocation9_spill] sm:$0xff] %v4257_v55  ;;  %6327 = vst [vmem:[#allocation10_spill] sm:$0xff] %v4263_v58  ;;  %989 = vmatprep.subr.mxu0 %v6276_v1  ;;  %v3666_v0 = vpack.i.bf16 %v4257_v55, %v4233_v47  ;;  %v3671_v3 = vpack.i.bf16 %v4263_v58, %v4236_v48  ;;  %v4291_v4 = vsel %vm427_vm0, %v448_v56, %v449_v57  ;;  %v4336_v30 = vld [vmem:[%s4126_s19 + $0xa8] sm:$0xff]  ;;  %v4339_v34 = vld [vmem:[%s4126_s19 + $0xb0] sm:$0xff] }
  0x2b   : > { %3642 = vrot.lane.b32.xlu0 %v3641_v40, %s3971_s17  ;;  %990 = vmatpush1.msra.mxu0 %v858_v53  ;;  %6328 = vst [vmem:[#allocation11_spill] sm:$0xff] %v4291_v4  ;;  %v453_v5 = vrot.slane %v4266_v59, 1  ;;  %v454_v6 = vrot.slane %v4269_v60, 1  ;;  %v4301_v8 = vsel %vm427_vm0, %v449_v57, %v451_v61  ;;  %v456_v11 = vrot.slane %v4274_v62, 1  ;;  %v4348_v36 = vld [vmem:[%s4126_s19 + $0xb8] sm:$0x3] }
  0x2c   : > { %3652 = vrot.lane.b32.xlu1 %v3651_v42, %s3971_s17  ;;  %991 = vmatprep.subr.mxu0 %v6276_v1  ;;  %6330 = vst [vmem:[#allocation12_spill] sm:$0xff] %v4301_v8  ;;  %v3676_v19 = vpack.i.bf16 %v4291_v4, %v4266_v59  ;;  %v3681_v21 = vpack.i.bf16 %v4301_v8, %v4269_v60  ;;  %v458_v25 = vrot.slane %v4304_v9, 1  ;;  %v459_v26 = vrot.slane %v4307_v10, 1  ;;  %v853_v37 = vld [vmem:[%s6266_s2 + $0x8] sm:$0xff]  ;;  %v852_v51 = vld [vmem:[%s6266_s2] sm:$0xff]  ;;  %v883_v61 = vld [vmem:[%s6266_s2 + $0xf8] sm:$0xff] }
  0x2d   : > { %992 = vmatpush1.msra.mxu0 %v857_v63  ;;  %v4324_v22 = vsel %vm427_vm0, %v453_v5, %v454_v6  ;;  %v4333_v28 = vsel %vm427_vm0, %v454_v6, %v456_v11  ;;  %v461_v35 = vrot.slane %v4311_v15, 1  ;;  %v893_v40 = vld [vmem:[%s6266_s2 + $0x148] sm:$0xff]  ;;  %v463_v45 = vrot.slane %v4336_v30, 1  ;;  %v4377_v53 = vld [vmem:[%s4345_s7] sm:$0xff]  ;;  %v4384_v57 = vld [vmem:[%s4345_s7 + $0x10] sm:$0x3] }
  0x2e   : > { %993 = vmatprep.subr.mxu0 %v6276_v1  ;;  %6331 = vst [vmem:[#allocation13_spill] sm:$0xff] %v4324_v22  ;;  %6332 = vst [vmem:[#allocation14_spill] sm:$0xff] %v4333_v28  ;;  %v3686_v41 = vpack.i.bf16 %v4324_v22, %v4304_v9  ;;  %v3691_v42 = vpack.i.bf16 %v4333_v28, %v4307_v10  ;;  %v4365_v44 = vsel %vm427_vm0, %v458_v25, %v459_v26  ;;  %v892_v63 = vld [vmem:[%s6266_s2 + $0x140] sm:$0xff]  ;;  %v4420_v25 = vld [vmem:[%s4345_s7 + $0x28] sm:$0x3]  ;;  %s3975_s19 = smov [#allocation2]  }
  0x2f   : > { %3657 = vrot.lane.b32.xlu0 %v3656_v52, %s3971_s17  ;;  %994 = vmatpush1.msra.mxu0 %v856_v7  ;;  %6333 = vst [vmem:[#allocation15_spill] sm:$0xff] %v4365_v44  ;;  %v464_v49 = vrot.slane %v4339_v34, 1  ;;  %v4374_v52 = vsel %vm427_vm0, %v459_v26, %v461_v35  ;;  %6335 = vst [vmem:[#allocation17_spill] sm:$0xff] %v4377_v53  ;;  %v466_v56 = vrot.slane %v4348_v36, 1  ;;  %v468_v5 = vrot.slane %v4377_v53, 1  ;;  %v882_v7 = vld [vmem:[%s6266_s2 + $0xf0] sm:$0xff] }
  0x30   : > { %3662 = vrot.lane.b32.xlu1 %v3661_v54, %s3971_s17  ;;  %995 = vmatprep.subr.mxu0 %v6276_v1  ;;  %6334 = vst [vmem:[#allocation16_spill] sm:$0xff] %v4374_v52  ;;  %v4380_v54 = vld [vmem:[%s4345_s7 + $0x8] sm:$0xff]  ;;  %v3701_v2 = vpack.i.bf16 %v4374_v52, %v4339_v34  ;;  %v4673_v28 = vld [vmem:[%s4345_s7 + $0x50] sm:$0xff]  ;;  %v4680_v22 = vld [vmem:[%s4345_s7 + $0x58] sm:$0x3]  ;;  %s3880_s30 = sshll.u32 %s3975_s19, 4  ;;  %s3881_s30 = int_to_ptr.vmem [resolvable:$false] %s3880_s30 }
  0x31   : > { %996 = vmatpush1.msra.mxu0 %v855_v16  ;;  %6336 = vst [vmem:[#allocation18_spill] sm:$0xff] %v4380_v54  ;;  %1149 = vmatpush1.msra.mxu1 %v893_v40  ;;  %v469_v6 = vrot.slane %v4380_v54, 1  ;;  %v4410_v11 = vsel %vm427_vm0, %v464_v49, %v466_v56  ;;  %v4413_v16 = vld [vmem:[%s4345_s7 + $0x18] sm:$0xff]  ;;  %v881_v26 = vld [vmem:[%s6266_s2 + $0xe8] sm:$0xff]  ;;  %6347 = vst [vmem:[#allocation28_spill] sm:$0xff] %v4680_v22  ;;  %s3882_s24 = scalar_lea.vmem %s3881_s30, 2048 }
  0x32   : > { %997 = vmatprep.subr.mxu0 %v6276_v1  ;;  %1150 = vmatprep.subr.mxu1 %v6276_v1  ;;  %6338 = vst [vmem:[#allocation20_spill] sm:$0xff] %v4410_v11  ;;  %6339 = vst [vmem:[#allocation21_spill] sm:$0xff] %v4413_v16  ;;  %v879_v56 = vld [vmem:[%s6266_s2 + $0xd8] sm:$0xff] }
  0x33   : > { %3667 = vrot.lane.b32.xlu0 %v3666_v0, %s3971_s17  ;;  %998 = vmatpush1.msra.mxu0 %v854_v27  ;;  %v3696_v0 = vpack.i.bf16 %v4365_v44, %v4336_v30  ;;  %v891_v27 = vld [vmem:[%s6266_s2 + $0x138] sm:$0xff]  ;;  %v4437_v40 = vsel %vm427_vm0, %v468_v5, %v469_v6 }
  0x34   : > { %3672 = vrot.lane.b32.xlu1 %v3671_v3, %s3971_s17  ;;  %999 = vmatprep.subr.mxu0 %v6276_v1  ;;  %v4401_v3 = vsel %vm427_vm0, %v463_v45, %v464_v49  ;;  %6341 = vst [vmem:[#allocation23_spill] sm:$0xff] %v4437_v40  ;;  %v880_v45 = vld [vmem:[%s6266_s2 + $0xe0] sm:$0xff] }
  0x35   : > { %1000 = vmatpush1.msra.mxu0 %v853_v37  ;;  %6337 = vst [vmem:[#allocation19_spill] sm:$0xff] %v4401_v3  ;;  %1151 = vmatpush1.msra.mxu1 %v892_v63  ;;  %v3706_v35 = vpack.i.bf16 %v4401_v3, %v4377_v53  ;;  %v3711_v37 = vpack.i.bf16 %v4410_v11, %v4380_v54  ;;  %v890_v63 = vld [vmem:[%s6266_s2 + $0x130] sm:$0xff] }
  0x36   : > { %1001 = vmatprep.subr.mxu0 %v6276_v1  ;;  %1152 = vmatprep.subr.mxu1 %v6276_v1 }
  0x37   : > { %3677 = vrot.lane.b32.xlu0 %v3676_v19, %s3971_s17  ;;  %1002 = vmatpush1.msra.mxu0 %v852_v51  ;;  %v4416_v19 = vld [vmem:[%s4345_s7 + $0x20] sm:$0xff]  ;;  %v476_v51 = vrot.slane %v4420_v25, 1 }
  0x38   : > { %3682 = vrot.lane.b32.xlu1 %v3681_v21, %s3971_s17  ;;  %1003 = vmatprep.subr.mxu0 %v6276_v1  ;;  %6340 = vst [vmem:[#allocation22_spill] sm:$0xff] %v4416_v19  ;;  %v471_v21 = vrot.slane %v4384_v57, 1 }
  0x39   : > { %1004 = vmatpush2.msra.mxu0 %v883_v61  ;;  %1153 = vmatpush1.msra.mxu1 %v891_v27  ;;  %v3716_v61 = vpack.i.bf16 %v4437_v40, %v4413_v16  ;;  %v579_v40 = vrot.slane %v4377_v53, 2  ;;  %v768_v53 = vrot.slane %v4680_v22, 1  ;;  %v907_v22 = vld [vmem:[%s6266_s2 + $0x1b8] sm:$0xff] }
  0x3a   : > { %1005 = vmatprep.subr.mxu0 %v6276_v1  ;;  %v4446_v49 = vsel %vm427_vm0, %v469_v6, %v471_v21  ;;  %v878_v6 = vld [vmem:[%s6266_s2 + $0xd0] sm:$0xff]  ;;  %1154 = vmatprep.subr.mxu1 %v6276_v1 }
  0x3b   : > { %3687 = vrot.lane.b32.xlu0 %v3686_v41, %s3971_s17  ;;  %1006 = vmatpush2.msra.mxu0 %v882_v7  ;;  %v473_v41 = vrot.slane %v4413_v16, 1  ;;  %6342 = vst [vmem:[#allocation24_spill] sm:$0xff] %v4446_v49  ;;  %v4473_v7 = vld [vmem:[%s4345_s7 + $0x38] sm:$0xff] }
  0x3c   : > { %3692 = vrot.lane.b32.xlu1 %v3691_v42, %s3971_s17  ;;  %v474_v42 = vrot.slane %v4416_v19, 1  ;;  %1007 = vmatprep.subr.mxu0 %v6276_v1 }
  0x3d   : > { %1008 = vmatpush2.msra.mxu0 %v881_v26  ;;  %v877_v26 = vld [vmem:[%s6266_s2 + $0xc8] sm:$0xff]  ;;  %1155 = vmatpush1.msra.mxu1 %v890_v63  ;;  %v549_v63 = vrot.slane %v4155_v18, 2 }
  0x3e   : > { %1009 = vmatprep.subr.mxu0 %v6276_v1  ;;  %v4466_v5 = vsel %vm427_vm0, %v473_v41, %v474_v42  ;;  %v4476_v21 = vsel %vm427_vm0, %v474_v42, %v476_v51  ;;  %v544_v41 = vrot.slane %v4146_v14, 2  ;;  %v545_v42 = vrot.slane %v4152_v17, 2  ;;  %1156 = vmatprep.subr.mxu1 %v6276_v1 }
  0x3f   : > { %3697 = vrot.lane.b32.xlu0 %v3696_v0, %s3971_s17  ;;  %1010 = vmatpush2.msra.mxu0 %v880_v45  ;;  %v3721_v0 = vpack.i.bf16 %v4446_v49, %v4416_v19  ;;  %6344 = vst [vmem:[#allocation26_spill] sm:$0xff] %v4466_v5  ;;  %6345 = vst [vmem:[#allocation27_spill] sm:$0xff] %v4476_v21  ;;  %v876_v45 = vld [vmem:[%s6266_s2 + $0xc0] sm:$0xff]  ;;  %v547_v51 = vrot.slane %v4169_v24, 2  ;;  %v913_v49 = vld [vmem:[%s6266_s2 + $0x1e8] sm:$0xff] }
  0x40   : > { %3702 = vrot.lane.b32.xlu1 %v3701_v2, %s3971_s17  ;;  %v4463_v2 = vld [vmem:[%s4345_s7 + $0x30] sm:$0xff]  ;;  %1011 = vmatprep.subr.mxu0 %v6276_v1  ;;  %v4510_v24 = vsel %vm538_vm1, %v544_v41, %v545_v42  ;;  %v554_v41 = vrot.slane %v4191_v32, 2 }
  0x41   : > { %6343 = vst [vmem:[#allocation25_spill] sm:$0xff] %v4463_v2  ;;  %1012 = vmatpush2.msra.mxu0 %v879_v56  ;;  %v3726_v27 = vpack.i.bf16 %v4466_v5, %v4463_v2  ;;  %v875_v56 = vld [vmem:[%s6266_s2 + $0xb8] sm:$0xff]  ;;  %v6346_v5 = vmov 0.0   ;;  %v672_v3 = vrot.slane %v4463_v2, 1 }
  0x42   : > { %1013 = vmatprep.subr.mxu0 %v6276_v1 }
  0x43   : > { %3707 = vrot.lane.b32.xlu0 %v3706_v35, %s3971_s17  ;;  %1014 = vmatpush2.msra.mxu0 %v878_v6  ;;  %v889_v35 = vld [vmem:[%s6266_s2 + $0x128] sm:$0xff]  ;;  %v874_v6 = vld [vmem:[%s6266_s2 + $0xb0] sm:$0xff] }
  0x44   : > { %3712 = vrot.lane.b32.xlu1 %v3711_v37, %s3971_s17  ;;  %v3731_v37 = vpack.i.bf16 %v4476_v21, %v4473_v7  ;;  %1015 = vmatprep.subr.mxu0 %v6276_v1  ;;  %v915_v21 = vld [vmem:[%s6266_s2 + $0x1f8] sm:$0xff] }
  0x45   : > { %1016 = vmatpush2.msra.mxu0 %v877_v26  ;;  %1157 = vmatpush1.msra.mxu1 %v889_v35  ;;  %v4519_v26 = vsel %vm538_vm1, %v545_v42, %v547_v51  ;;  %v873_v35 = vld [vmem:[%s6266_s2 + $0xa8] sm:$0xff]  ;;  %v555_v42 = vrot.slane %v4194_v33, 2 }
  0x46   : > { %1017 = vmatprep.subr.mxu0 %v6276_v1  ;;  %1158 = vmatprep.subr.mxu1 %v6276_v1 }
  0x47   : > { %3717 = vrot.lane.b32.xlu0 %v3716_v61, %s3971_s17  ;;  %1018 = vmatpush2.msra.mxu0 %v876_v45  ;;  %v888_v61 = vld [vmem:[%s6266_s2 + $0x120] sm:$0xff] }
  0x48   : > { %3722 = vrot.lane.b32.xlu1 %v3721_v0, %s3971_s17  ;;  %v550_v0 = vrot.slane %v4159_v20, 2  ;;  %1019 = vmatprep.subr.mxu0 %v6276_v1  ;;  %v872_v45 = vld [vmem:[%s6266_s2 + $0xa0] sm:$0xff] }
  0x49   : > { %1020 = vmatpush2.msra.mxu0 %v875_v56  ;;  %1159 = vmatpush1.msra.mxu1 %v888_v61  ;;  %v557_v56 = vrot.slane %v4207_v39, 2  ;;  %v871_v61 = vld [vmem:[%s6266_s2 + $0x98] sm:$0xff]  ;;  %v4560_v39 = vsel %vm538_vm1, %v554_v41, %v555_v42  ;;  %v869_v41 = vld [vmem:[%s6266_s2 + $0x88] sm:$0xff] }
  0x4a   : > { %1021 = vmatprep.subr.mxu0 %v6276_v1  ;;  %1160 = vmatprep.subr.mxu1 %v6276_v1 }
  0x4b   : > { %3727 = vrot.lane.b32.xlu0 %v3726_v27, %s3971_s17  ;;  %v552_v27 = vrot.slane %v4176_v29, 2  ;;  %1022 = vmatpush2.msra.mxu0 %v874_v6  ;;  %v4535_v29 = vsel %vm538_vm1, %v549_v63, %v550_v0  ;;  %v886_v63 = vld [vmem:[%s6266_s2 + $0x110] sm:$0xff]  ;;  %v560_v6 = vrot.slane %v4236_v48, 2 }
  0x4c   : > { %3732 = vrot.lane.b32.xlu1 %v3731_v37, %s3971_s17  ;;  %v887_v37 = vld [vmem:[%s6266_s2 + $0x118] sm:$0xff]  ;;  %1023 = vmatprep.subr.mxu0 %v6276_v1 }
  0x4d   : > { %v4544_v51 = vsel %vm538_vm1, %v550_v0, %v552_v27  ;;  %1024 = vmatpush2.msra.mxu0 %v873_v35  ;;  %1161 = vmatpush1.msra.mxu1 %v887_v37  ;;  %v559_v0 = vrot.slane %v4233_v47, 2  ;;  %v870_v27 = vld [vmem:[%s6266_s2 + $0x90] sm:$0xff]  ;;  %v4569_v35 = vsel %vm538_vm1, %v555_v42, %v557_v56  ;;  %v562_v37 = vrot.slane %v4242_v50, 2  ;;  %v885_v42 = vld [vmem:[%s6266_s2 + $0x108] sm:$0xff] }
  0x4e   : > { %1025 = vmatprep.subr.mxu0 %v6276_v1  ;;  %1162 = vmatprep.subr.mxu1 %v6276_v1  ;;  %v565_v56 = vrot.slane %v4269_v60, 2 }
  0x4f   : > { %702 = vrot.lane.b32.xlu0 %v4510_v24, %s3971_s17  ;;  %1026 = vmatpush2.msra.mxu0 %v872_v45  ;;  %v4585_v50 = vsel %vm538_vm1, %v559_v0, %v560_v6  ;;  %v564_v45 = vrot.slane %v4266_v59, 2  ;;  %v4600_v0 = vld [vmem:[%s6266_s2 + $0x238] sm:$0xff] }
  0x50   : > { %704 = vrot.lane.b32.xlu1 %v4519_v26, %s3971_s17  ;;  %1027 = vmatprep.subr.mxu0 %v6276_v1 }
  0x51   : > { %1028 = vmatpush2.msra.mxu0 %v871_v61  ;;  %1163 = vmatpush1.msra.mxu1 %v886_v63  ;;  %v868_v61 = vld [vmem:[%s6266_s2 + $0x80] sm:$0xff]  ;;  %v4594_v63 = vsel %vm538_vm1, %v560_v6, %v562_v37  ;;  %v569_v37 = vrot.slane %v4304_v9, 2 }
  0x52   : > { %1029 = vmatprep.subr.mxu0 %v6276_v1  ;;  %1164 = vmatprep.subr.mxu1 %v6276_v1  ;;  %v884_v6 = vld [vmem:[%s6266_s2 + $0x100] sm:$0xff] }
  0x53   : > { %706 = vrot.lane.b32.xlu0 %v4535_v29, %s3971_s17  ;;  %1030 = vmatpush2.msra.mxu0 %v870_v27  ;;  %v567_v27 = vrot.slane %v4274_v62, 2  ;;  %v4612_v62 = vsel %vm538_vm1, %v564_v45, %v565_v56  ;;  %v914_v45 = vld [vmem:[%s6266_s2 + $0x1f0] sm:$0xff] }
  0x54   : > { %708 = vrot.lane.b32.xlu1 %v4544_v51, %s3971_s17  ;;  %1031 = vmatprep.subr.mxu0 %v6276_v1 }
  0x55   : > { %1032 = vmatpush2.msra.mxu0 %v869_v41  ;;  %1165 = vmatpush1.msra.mxu1 %v885_v42  ;;  %v570_v41 = vrot.slane %v4307_v10, 2  ;;  %v4618_v42 = vsel %vm538_vm1, %v565_v56, %v567_v27  ;;  %v574_v56 = vrot.slane %v4336_v30, 2  ;;  %v575_v27 = vrot.slane %v4339_v34, 2 }
  0x56   : > { %1033 = vmatprep.subr.mxu0 %v6276_v1  ;;  %1166 = vmatprep.subr.mxu1 %v6276_v1 }
  0x57   : > { %710 = vrot.lane.b32.xlu0 %v4560_v39, %s3971_s17  ;;  %1034 = vmatpush2.msra.mxu0 %v868_v61  ;;  %v572_v61 = vrot.slane %v4311_v15, 2  ;;  %v4634_v15 = vsel %vm538_vm1, %v569_v37, %v570_v41  ;;  %v393_v37 = vld [vmem:[%s4345_s7 + $0x40] sm:$0x3]  ;;  %v4661_v11 = vsel %vm538_vm1, %v574_v56, %v575_v27  ;;  %v911_v56 = vld [vmem:[%s6266_s2 + $0x1d8] sm:$0xff] }
  0x58   : > { %712 = vrot.lane.b32.xlu1 %v4569_v35, %s3971_s17  ;;  %3471 = vmatprep.subr.mxu0 %v4600_v0  ;;  %v675_v44 = vrot.slane %v393_v37, 1  ;;  %v700_v8 = vrot.slane %v393_v37, 2 }
  0x59   : > { %1167 = vmatpush1.msra.mxu1 %v884_v6  ;;  %v4639_v6 = vsel %vm538_vm1, %v570_v41, %v572_v61  ;;  %v582_v41 = vrot.slane %v4384_v57, 2  ;;  %v585_v61 = vrot.slane %v4416_v19, 2  ;;  %v673_v57 = vrot.slane %v4473_v7, 1 }
  0x5a   : > { %1168 = vmatprep.subr.mxu1 %v6276_v1  ;;  %v577_v1 = vrot.slane %v4348_v36, 2  ;;  %v584_v36 = vrot.slane %v4413_v16, 2  ;;  %v587_v19 = vrot.slane %v4420_v25, 2  ;;  %v4670_v16 = vld [vmem:[%s4345_s7 + $0x48] sm:$0xff] }
  0x5b   : > { %714 = vrot.lane.b32.xlu0 %v4585_v50, %s3971_s17  ;;  %1169 = vmatpush2.msra.mxu1 %v915_v21  ;;  %v580_v21 = vrot.slane %v4380_v54, 2  ;;  %v4710_v54 = vsel %vm427_vm0, %v673_v57, %v675_v44  ;;  %v908_v44 = vld [vmem:[%s6266_s2 + $0x1c0] sm:$0xff] }
  0x5c   : > { %716 = vrot.lane.b32.xlu1 %v4594_v63, %s3971_s17  ;;  %1170 = vmatprep.subr.mxu1 %v6346_v5  ;;  %v4666_v52 = vsel %vm538_vm1, %v575_v27, %v577_v1  ;;  %v697_v27 = vrot.slane %v4463_v2, 2  ;;  %v4707_v2 = vsel %vm538_vm1, %v585_v61, %v587_v19 }
  0x5d   : > { %1171 = vmatpush2.msra.mxu1 %v914_v45  ;;  %v912_v45 = vld [vmem:[%s6266_s2 + $0x1e0] sm:$0xff]  ;;  %v4685_v1 = vsel %vm538_vm1, %v579_v40, %v580_v21  ;;  %v4688_v25 = vsel %vm538_vm1, %v580_v21, %v582_v41  ;;  %v4701_v40 = vsel %vm427_vm0, %v672_v3, %v673_v57  ;;  %v698_v21 = vrot.slane %v4473_v7, 2  ;;  %v909_v3 = vld [vmem:[%s6266_s2 + $0x1c8] sm:$0xff] }
  0x5e   : > { %1172 = vmatprep.subr.mxu1 %v6346_v5  ;;  %v765_v41 = vrot.slane %v4670_v16, 1  ;;  %v3741_v37 = vpack.i.bf16 %v4707_v2, %v4710_v54 }
  0x5f   : > { %718 = vrot.lane.b32.xlu0 %v4612_v62, %s3971_s17  ;;  %1173 = vmatpush2.msra.mxu1 %v913_v49  ;;  %v4691_v49 = vsel %vm538_vm1, %v584_v36, %v585_v61  ;;  %v766_v36 = vrot.slane %v4673_v28, 1  ;;  %v4730_v61 = vsel %vm538_vm1, %v697_v27, %v698_v21 }
  0x60   : > { %720 = vrot.lane.b32.xlu1 %v4618_v42, %s3971_s17  ;;  %1174 = vmatprep.subr.mxu1 %v6346_v5  ;;  %v3736_v19 = vpack.i.bf16 %v4691_v49, %v4701_v40 }
  0x61   : > { %1175 = vmatpush2.msra.mxu1 %v912_v45  ;;  %v910_v45 = vld [vmem:[%s6266_s2 + $0x1d0] sm:$0xff]  ;;  %v767_v57 = vsel %vm427_vm0, %v765_v41, %v766_v36  ;;  %v904_v41 = vld [vmem:[%s6266_s2 + $0x1a0] sm:$0xff] }
  0x62   : > { %1176 = vmatprep.subr.mxu1 %v6346_v5  ;;  %v3746_v27 = vpack.i.bf16 %v4730_v61, %v767_v57 }
  0x63   : > { %722 = vrot.lane.b32.xlu0 %v4634_v15, %s3971_s17  ;;  %1177 = vmatpush2.msra.mxu1 %v911_v56  ;;  %v4734_v56 = vsel %vm538_vm1, %v698_v21, %v700_v8  ;;  %v906_v8 = vld [vmem:[%s6266_s2 + $0x1b0] sm:$0xff]  ;;  %v905_v21 = vld [vmem:[%s6266_s2 + $0x1a8] sm:$0xff] }
  0x64   : > { %724 = vrot.lane.b32.xlu1 %v4639_v6, %s3971_s17  ;;  %1178 = vmatprep.subr.mxu1 %v6346_v5  ;;  %6348 = vst [vmem:[#allocation29_spill] sm:$0xff] %v4734_v56 }
  0x65   : > { %1179 = vmatpush2.msra.mxu1 %v910_v45  ;;  %v769_v45 = vsel %vm427_vm0, %v766_v36, %v768_v53  ;;  %v902_v36 = vld [vmem:[%s6266_s2 + $0x190] sm:$0xff] }
  0x66   : > { %1180 = vmatprep.subr.mxu1 %v6346_v5  ;;  %v3751_v53 = vpack.i.bf16 %v4734_v56, %v769_v45 }
  0x67   : > { %726 = vrot.lane.b32.xlu0 %v4661_v11, %s3971_s17  ;;  %1181 = vmatpush2.msra.mxu1 %v909_v3  ;;  %v901_v3 = vld [vmem:[%s6266_s2 + $0x188] sm:$0xff] }
  0x68   : > { %728 = vrot.lane.b32.xlu1 %v4666_v52, %s3971_s17  ;;  %1182 = vmatprep.subr.mxu1 %v6346_v5 }
  0x69   : > { %1183 = vmatpush2.msra.mxu1 %v908_v44  ;;  %v539_v44 = vrot.slane %v4140_v12, 2 }
  0x6a   : > { %1184 = vmatprep.subr.mxu1 %v6346_v5 }
  0x6b   : > { %730 = vrot.lane.b32.xlu0 %v4685_v1, %s3971_s17  ;;  %1185 = vmatpush2.msra.mxu1 %v907_v22  ;;  %v903_v22 = vld [vmem:[%s6266_s2 + $0x198] sm:$0xff] }
  0x6c   : > { %732 = vrot.lane.b32.xlu1 %v4688_v25, %s3971_s17  ;;  %1186 = vmatprep.subr.mxu1 %v6346_v5 }
  0x6d   : > { %1187 = vmatpush2.msra.mxu1 %v906_v8 }
  0x6e   : > { %1188 = vmatprep.subr.mxu1 %v6346_v5 }
  0x6f   : > { %3737 = vrot.lane.b32.xlu0 %v3736_v19, %s3971_s17  ;;  %1189 = vmatpush2.msra.mxu1 %v905_v21  ;;  %v900_v19 = vld [vmem:[%s6266_s2 + $0x180] sm:$0xff] }
  0x70   : > { %3742 = vrot.lane.b32.xlu1 %v3741_v37, %s3971_s17  ;;  %1190 = vmatprep.subr.mxu1 %v6346_v5  ;;  %v540_v37 = vrot.slane %v4143_v13, 2 }
  0x71   : > { %1191 = vmatpush2.msra.mxu1 %v904_v41 }
  0x72   : > { %1192 = vmatprep.subr.mxu1 %v6346_v5  ;;  %v541_v45 = vsel %vm538_vm1, %v539_v44, %v540_v37 }
  0x73   : > { %3747 = vrot.lane.b32.xlu0 %v3746_v27, %s3971_s17  ;;  %1193 = vmatpush2.msra.mxu1 %v903_v22  ;;  %v542_v27 = vrot.slane %v4166_v23, 2 }
  0x74   : > { %3752 = vrot.lane.b32.xlu1 %v3751_v53, %s3971_s17  ;;  %1194 = vmatprep.subr.mxu1 %v6346_v5 }
  0x75   : > { %1195 = vmatpush2.msra.mxu1 %v902_v36 }
  0x76   : > { %1196 = vmatprep.subr.mxu1 %v6346_v5 }
  0x77   : > { %1197 = vmatpush2.msra.mxu1 %v901_v3  ;;  %v543_v3 = vsel %vm538_vm1, %v540_v37, %v542_v27 }
  0x78   : > { %1198 = vmatprep.subr.mxu1 %v6346_v5 }
  0x79   : > { %1199 = vmatpush2.msra.mxu1 %v900_v19  ;;  %v922_v19 = vld [vmem:[%s6266_s2 + $0x230] sm:$0xff] }
  0x99   : > { %v3638_v57 = vpop.permute.xlu0 %3637 }
  0x9a   : > { %v3640_v8 = vunpack.i.h.bf16 %v3638_v57  ;;  %v3639_v53 = vunpack.i.l.bf16 %v3638_v57  ;;  %v3648_v21 = vpop.permute.xlu1 %3647 }
  0x9b   : > { %v3649_v41 = vunpack.i.l.bf16 %v3648_v21  ;;  %v3650_v57 = vunpack.i.h.bf16 %v3648_v21 }
  0x9c   : > { %v808_v22 = vsel %vm787_vm2, %v541_v45, %v3639_v53  ;;  %v788_v5 = vsel %vm787_vm2, %v4140_v12, %v3640_v8  ;;  %v921_v45 = vld [vmem:[%s6266_s2 + $0x228] sm:$0xff] }
  0x9d   : > { %v3643_v36 = vpop.permute.xlu0 %3642  ;;  %1035 = vmatprep.mubr.f32.mxu0 %v808_v22  ;;  %v810_v27 = vsel %vm787_vm2, %v4510_v24, %v3649_v41  ;;  %v919_v24 = vld [vmem:[%s6266_s2 + $0x218] sm:$0xff] }
  0x9e   : > { %v3645_v44 = vunpack.i.h.bf16 %v3643_v36  ;;  %v3644_v56 = vunpack.i.l.bf16 %v3643_v36  ;;  %1036 = vmatmul.mubr.f32.vlgmr.msra.gmra.mxu0 %v788_v5  ;;  %v3653_v23 = vpop.permute.xlu1 %3652 }
  0x9f   : > { %3472 = vmatpush3.msra.mxu0 %v4600_v0  ;;  %v3654_v12 = vunpack.i.l.bf16 %v3653_v23  ;;  %v920_v0 = vld [vmem:[%s6266_s2 + $0x220] sm:$0xff]  ;;  %v3655_v5 = vunpack.i.h.bf16 %v3653_v23 }
  0xa0   : > { %v809_v8 = vsel %vm787_vm2, %v543_v3, %v3644_v56  ;;  %v789_v37 = vsel %vm787_vm2, %v4143_v13, %v3645_v44  ;;  %3473 = vmatprep.subr.mxu0 %v922_v19  ;;  %v790_v13 = vsel %vm787_vm2, %v4146_v14, %v3650_v57  ;;  %v918_v14 = vld [vmem:[%s6266_s2 + $0x210] sm:$0xff] }
  0xa1   : > { %v3658_v53 = vpop.permute.xlu0 %3657  ;;  %1040 = vmatprep.mubr.f32.mxu0 %v809_v8  ;;  %3474 = vmatpush3.msra.mxu0 %v922_v19  ;;  %v811_v41 = vsel %vm787_vm2, %v4519_v26, %v3654_v12  ;;  %v791_v44 = vsel %vm787_vm2, %v4152_v17, %v3655_v5 }
  0xa2   : > { %v3660_v21 = vunpack.i.h.bf16 %v3658_v53  ;;  %1041 = vmatmul.mubr.f32.gmra.mxu0 %v789_v37  ;;  %v3663_v22 = vpop.permute.xlu1 %3662  ;;  %3475 = vmatprep.subr.mxu0 %v921_v45  ;;  %v3659_v56 = vunpack.i.l.bf16 %v3658_v53 }
  0xa3   : > { %1045 = vmatprep.mubr.f32.mxu0 %v810_v27  ;;  %3476 = vmatpush3.msra.mxu0 %v921_v45  ;;  %v3664_v26 = vunpack.i.l.bf16 %v3663_v22  ;;  %v916_v45 = vld [vmem:[%s6266_s2 + $0x200] sm:$0xff]  ;;  %v3665_v17 = vunpack.i.h.bf16 %v3663_v22 }
  0xa4   : > { %v792_v36 = vsel %vm787_vm2, %v4155_v18, %v3660_v21  ;;  %3477 = vmatprep.subr.mxu0 %v920_v0  ;;  %v917_v18 = vld [vmem:[%s6266_s2 + $0x208] sm:$0xff]  ;;  %v812_v23 = vsel %vm787_vm2, %v4535_v29, %v3659_v56 }
  0xa5   : > { %v3668_v3 = vpop.permute.xlu0 %3667  ;;  %1200 = vmatprep.mubr.f32.mxu1 %v792_v36  ;;  %3478 = vmatpush3.msra.mxu0 %v920_v0  ;;  %v813_v37 = vsel %vm787_vm2, %v4544_v51, %v3664_v26  ;;  %v793_v21 = vsel %vm787_vm2, %v4159_v20, %v3665_v17 }
  0xa6   : > { %1046 = vmatmul.mubr.f32.gmra.mxu0 %v790_v13  ;;  %v3673_v19 = vpop.permute.xlu1 %3672  ;;  %3479 = vmatprep.subr.mxu0 %v919_v24  ;;  %v3669_v8 = vunpack.i.l.bf16 %v3668_v3  ;;  %v3670_v0 = vunpack.i.h.bf16 %v3668_v3 }
  0xa7   : > { %1050 = vmatprep.mubr.f32.mxu0 %v811_v41  ;;  %3480 = vmatpush3.msra.mxu0 %v919_v24  ;;  %v3674_v5 = vunpack.i.l.bf16 %v3673_v19  ;;  %v3675_v56 = vunpack.i.h.bf16 %v3673_v19 }
  0xa8   : > { %3481 = vmatprep.subr.mxu0 %v918_v14  ;;  %v814_v22 = vsel %vm787_vm2, %v4560_v39, %v3669_v8  ;;  %v794_v41 = vsel %vm787_vm2, %v4191_v32, %v3670_v0 }
  0xa9   : > { %v3678_v57 = vpop.permute.xlu0 %3677  ;;  %3482 = vmatpush3.msra.mxu0 %v918_v14  ;;  %v815_v3 = vsel %vm787_vm2, %v4569_v35, %v3674_v5 }
  0xaa   : > { %1051 = vmatmul.mubr.f32.gmra.mxu0 %v791_v44  ;;  %v3683_v12 = vpop.permute.xlu1 %3682  ;;  %3483 = vmatprep.subr.mxu0 %v917_v18  ;;  %v3680_v44 = vunpack.i.h.bf16 %v3678_v57 }
  0xab   : > { %1055 = vmatprep.mubr.f32.mxu0 %v812_v23  ;;  %3484 = vmatpush3.msra.mxu0 %v917_v18  ;;  %v795_v18 = vsel %vm787_vm2, %v4194_v33, %v3675_v56  ;;  %v3684_v26 = vunpack.i.l.bf16 %v3683_v12 }
  0xac   : > { %3485 = vmatprep.subr.mxu0 %v916_v45  ;;  %v796_v17 = vsel %vm787_vm2, %v4233_v47, %v3680_v44 }
  0xad   : > { %v3688_v27 = vpop.permute.xlu0 %3687  ;;  %3486 = vmatpush3.msra.mxu0 %v916_v45  ;;  %v3685_v45 = vunpack.i.h.bf16 %v3683_v12 }
  0xae   : > { %1056 = vmatmul.mubr.f32.gmra.mxu0 %v792_v36  ;;  %v3693_v53 = vpop.permute.xlu1 %3692  ;;  %v3679_v36 = vunpack.i.l.bf16 %v3678_v57  ;;  %v3689_v8 = vunpack.i.l.bf16 %v3688_v27  ;;  %v817_v57 = vsel %vm787_vm2, %v4594_v63, %v3684_v26  ;;  %v3690_v0 = vunpack.i.h.bf16 %v3688_v27 }
  0xaf   : > { %1060 = vmatprep.mubr.f32.mxu0 %v813_v37  ;;  %v797_v5 = vsel %vm787_vm2, %v4236_v48, %v3685_v45 }
  0xb0   : > { %v816_v19 = vsel %vm787_vm2, %v4585_v50, %v3679_v36  ;;  %v818_v12 = vsel %vm787_vm2, %v4612_v62, %v3689_v8  ;;  %v798_v27 = vsel %vm787_vm2, %v4266_v59, %v3690_v0 }
  0xb1   : > { %v3698_v13 = vpop.permute.xlu0 %3697 }
  0xb2   : > { %1061 = vmatmul.mubr.f32.gmra.mxu0 %v793_v21  ;;  %v4827_v24 = vpop.permute.xlu1 %3702  ;;  %v3699_v44 = vunpack.i.l.bf16 %v3698_v13  ;;  %v3700_v45 = vunpack.i.h.bf16 %v3698_v13 }
  0xb3   : > { %1065 = vmatprep.mubr.f32.mxu0 %v814_v22  ;;  %v3694_v22 = vunpack.i.l.bf16 %v3693_v53  ;;  %v3705_v8 = vunpack.i.h.bf16 %v4827_v24 }
  0xb4   : > { %v800_v13 = vsel %vm787_vm2, %v4304_v9, %v3700_v45 }
  0xb5   : > { %v4833_v14 = vpop.permute.xlu0 %3707  ;;  %v819_v26 = vsel %vm787_vm2, %v4618_v42, %v3694_v22 }
  0xb6   : > { %1066 = vmatmul.mubr.f32.gmra.mxu0 %v794_v41  ;;  %v4835_v20 = vpop.permute.xlu1 %3712  ;;  %v3710_v22 = vunpack.i.h.bf16 %v4833_v14 }
  0xb7   : > { %1070 = vmatprep.mubr.f32.mxu0 %v815_v3  ;;  %v3695_v3 = vunpack.i.h.bf16 %v3693_v53  ;;  %v3704_v53 = vunpack.i.l.bf16 %v4827_v24  ;;  %v801_v24 = vsel %vm787_vm2, %v4307_v10, %v3705_v8  ;;  %v3714_v9 = vunpack.i.l.bf16 %v4835_v20 }
  0xb9   : > { %v4841_v23 = vpop.permute.xlu0 %3717 }
  0xba   : > { %1071 = vmatmul.mubr.f32.gmra.mxu0 %v795_v18  ;;  %v4843_v32 = vpop.permute.xlu1 %3722  ;;  %v3719_v10 = vunpack.i.l.bf16 %v4841_v23 }
  0xbb   : > { %1075 = vmatprep.mubr.f32.mxu0 %v816_v19 }
  0xbd   : > { %v4849_v37 = vpop.permute.xlu0 %3727 }
  0xbe   : > { %1076 = vmatmul.mubr.f32.gmra.mxu0 %v796_v17  ;;  %v4851_v33 = vpop.permute.xlu1 %3732 }
  0xbf   : > { %1080 = vmatprep.mubr.f32.mxu0 %v817_v57  ;;  %v821_v57 = vsel %vm787_vm2, %v4639_v6, %v3704_v53  ;;  %v6350_v53 = vld [vmem:[#allocation12_spill] sm:$0xff]  ;;  %v3734_v8 = vunpack.i.l.bf16 %v4851_v33 }
  0xc1   : > { %v703_v56 = vpop.permute.xlu0 %702 }
  0xc2   : > { %1081 = vmatmul.mubr.f32.gmra.mxu0 %v797_v5  ;;  %v828_v47 = vsel %vm787_vm2, %v4188_v31, %v703_v56  ;;  %v705_v36 = vpop.permute.xlu1 %704  ;;  %v799_v31 = vsel %vm787_vm2, %v4269_v60, %v3695_v3  ;;  %v3709_v60 = vunpack.i.l.bf16 %v4833_v14  ;;  %v802_v14 = vsel %vm787_vm2, %v4336_v30, %v3710_v22 }
  0xc3   : > { %1201 = vmatmul.mubr.f32.vlgmr.msra.gmra.mxu1 %v828_v47  ;;  %1085 = vmatprep.mubr.f32.mxu0 %v818_v12  ;;  %v829_v48 = vsel %vm787_vm2, %v4204_v38, %v705_v36  ;;  %v820_v38 = vsel %vm787_vm2, %v4634_v15, %v3699_v44  ;;  %v3715_v47 = vunpack.i.h.bf16 %v4835_v20  ;;  %v823_v36 = vsel %vm787_vm2, %v4666_v52, %v3714_v9  ;;  %v6353_v9 = vld [vmem:[#allocation14_spill] sm:$0xff] }
  0xc4   : > { %1205 = vmatprep.mubr.f32.mxu1 %v793_v21  ;;  %v822_v12 = vsel %vm787_vm2, %v4661_v11, %v3709_v60  ;;  %v3720_v44 = vunpack.i.h.bf16 %v4841_v23  ;;  %v3724_v30 = vunpack.i.l.bf16 %v4843_v32  ;;  %v6349_v23 = vld [vmem:[#allocation17_spill] sm:$0xff]  ;;  %v827_v22 = vsel %vm787_vm2, %v4707_v2, %v3734_v8 }
  0xc5   : > { %v707_v19 = vpop.permute.xlu0 %706  ;;  %v803_v20 = vsel %vm787_vm2, %v4339_v34, %v3715_v47  ;;  %v3729_v34 = vunpack.i.l.bf16 %v4849_v37 }
  0xc6   : > { %1086 = vmatmul.mubr.f32.gmra.mxu0 %v798_v27  ;;  %v830_v59 = vsel %vm787_vm2, %v4219_v43, %v707_v19  ;;  %v709_v21 = vpop.permute.xlu1 %708  ;;  %v3725_v19 = vunpack.i.h.bf16 %v4843_v32  ;;  %v804_v45 = vsel %vm787_vm2, %v6349_v23, %v3720_v44  ;;  %v6361_v23 = vld [vmem:[#allocation24_spill] sm:$0xff] }
  0xc7   : > { %1206 = vmatmul.mubr.f32.gmra.mxu1 %v829_v48  ;;  %1090 = vmatprep.mubr.f32.mxu0 %v819_v26  ;;  %v824_v48 = vsel %vm787_vm2, %v4685_v1, %v3719_v10  ;;  %v826_v60 = vsel %vm787_vm2, %v4691_v49, %v3729_v34 }
  0xc8   : > { %1210 = vmatprep.mubr.f32.mxu1 %v794_v41  ;;  %v831_v41 = vsel %vm787_vm2, %v4230_v46, %v709_v21  ;;  %v6351_v21 = vld [vmem:[#allocation18_spill] sm:$0xff] }
  0xc9   : > { %v711_v0 = vpop.permute.xlu0 %710  ;;  %v805_v32 = vsel %vm787_vm2, %v6351_v21, %v3725_v19 }
  0xca   : > { %1091 = vmatmul.mubr.f32.gmra.mxu0 %v799_v31  ;;  %v713_v56 = vpop.permute.xlu1 %712 }
  0xcb   : > { %1211 = vmatmul.mubr.f32.gmra.mxu1 %v830_v59  ;;  %1095 = vmatprep.mubr.f32.mxu0 %v820_v38  ;;  %v825_v59 = vsel %vm787_vm2, %v4688_v25, %v3724_v30 }
  0xcc   : > { %1215 = vmatprep.mubr.f32.mxu1 %v795_v18  ;;  %v832_v18 = vsel %vm787_vm2, %v4257_v55, %v711_v0 }
  0xcd   : > { %v715_v3 = vpop.permute.xlu0 %714 }
  0xce   : > { %1096 = vmatmul.mubr.f32.gmra.mxu0 %v800_v13  ;;  %v717_v26 = vpop.permute.xlu1 %716 }
  0xcf   : > { %1216 = vmatmul.mubr.f32.gmra.mxu1 %v831_v41  ;;  %1100 = vmatprep.mubr.f32.mxu0 %v821_v57  ;;  %v3730_v57 = vunpack.i.h.bf16 %v4849_v37  ;;  %v6355_v37 = vld [vmem:[#allocation15_spill] sm:$0xff] }
  0xd0   : > { %1220 = vmatprep.mubr.f32.mxu1 %v796_v17  ;;  %v833_v17 = vsel %vm787_vm2, %v4263_v58, %v713_v56 }
  0xd1   : > { %v719_v38 = vpop.permute.xlu0 %718 }
  0xd2   : > { %1101 = vmatmul.mubr.f32.gmra.mxu0 %v801_v24  ;;  %v721_v0 = vpop.permute.xlu1 %720 }
  0xd3   : > { %1221 = vmatmul.mubr.f32.gmra.mxu1 %v832_v18  ;;  %1105 = vmatprep.mubr.f32.mxu0 %v822_v12  ;;  %v837_v18 = vsel %vm787_vm2, %v6353_v9, %v721_v0  ;;  %v6354_v12 = vld [vmem:[#allocation21_spill] sm:$0xff]  ;;  %v783_v0 = vrot.slane %v4673_v28, 2 }
  0xd4   : > { %1225 = vmatprep.mubr.f32.mxu1 %v797_v5  ;;  %v834_v5 = vsel %vm787_vm2, %v4291_v4, %v715_v3  ;;  %v806_v56 = vsel %vm787_vm2, %v6354_v12, %v3730_v57 }
  0xd5   : > { %v723_v47 = vpop.permute.xlu0 %722 }
  0xd6   : > { %1106 = vmatmul.mubr.f32.gmra.mxu0 %v802_v14  ;;  %v838_v10 = vsel %vm787_vm2, %v6355_v37, %v723_v47 }
  0xd7   : > { %1226 = vmatmul.mubr.f32.gmra.mxu1 %v833_v17  ;;  %1110 = vmatprep.mubr.f32.mxu0 %v823_v36  ;;  %v725_v36 = vpop.permute.xlu1 %724 }
  0xd8   : > { %1230 = vmatprep.mubr.f32.mxu1 %v798_v27  ;;  %v835_v27 = vsel %vm787_vm2, %v6350_v53, %v717_v26  ;;  %v6360_v26 = vld [vmem:[#allocation23_spill] sm:$0xff] }
  0xd9   : > { %v727_v44 = vpop.permute.xlu0 %726 }
  0xda   : > { %1111 = vmatmul.mubr.f32.gmra.mxu0 %v803_v20 }
  0xdb   : > { %1231 = vmatmul.mubr.f32.gmra.mxu1 %v834_v5  ;;  %1115 = vmatprep.mubr.f32.mxu0 %v824_v48  ;;  %v729_v5 = vpop.permute.xlu1 %728 }
  0xdc   : > { %1235 = vmatprep.mubr.f32.mxu1 %v799_v31  ;;  %v6352_v31 = vld [vmem:[#allocation13_spill] sm:$0xff] }
  0xdd   : > { %v836_v41 = vsel %vm787_vm2, %v6352_v31, %v719_v38  ;;  %v731_v48 = vpop.permute.xlu0 %730 }
  0xde   : > { %1116 = vmatmul.mubr.f32.gmra.mxu0 %v804_v45 }
  0xdf   : > { %1236 = vmatmul.mubr.f32.gmra.mxu1 %v835_v27  ;;  %1120 = vmatprep.mubr.f32.mxu0 %v825_v59 }
  0xe0   : > { %1240 = vmatprep.mubr.f32.mxu1 %v800_v13  ;;  %v3735_v13 = vunpack.i.h.bf16 %v4851_v33  ;;  %v6357_v33 = vld [vmem:[#allocation16_spill] sm:$0xff] }
  0xe1   : > { %v839_v3 = vsel %vm787_vm2, %v6357_v33, %v725_v36 }
  0xe2   : > { %1121 = vmatmul.mubr.f32.gmra.mxu0 %v805_v32 }
  0xe3   : > { %1125 = vmatprep.mubr.f32.mxu0 %v826_v60  ;;  %1241 = vmatmul.mubr.f32.gmra.mxu1 %v836_v41 }
  0xe4   : > { %1245 = vmatprep.mubr.f32.mxu1 %v801_v24  ;;  %v6356_v24 = vld [vmem:[#allocation22_spill] sm:$0xff] }
  0xe5   : > { %v807_v17 = vsel %vm787_vm2, %v6356_v24, %v3735_v13 }
  0xe6   : > { %1126 = vmatmul.mubr.f32.gmra.mxu0 %v806_v56 }
  0xe7   : > { %1130 = vmatprep.mubr.f32.mxu0 %v827_v22  ;;  %1246 = vmatmul.mubr.f32.gmra.mxu1 %v837_v18  ;;  %v6366_v18 = vld [vmem:[#allocation29_spill] sm:$0xff] }
  0xe8   : > { %1250 = vmatprep.mubr.f32.mxu1 %v802_v14  ;;  %v6358_v14 = vld [vmem:[#allocation19_spill] sm:$0xff] }
  0xe9   : > { %v840_v30 = vsel %vm787_vm2, %v6358_v14, %v727_v44 }
  0xea   : > { %1131 = vmatmul.mubr.f32.gmra.mxu0 %v807_v17 }
  0xeb   : > { %1251 = vmatmul.mubr.f32.gmra.mxu1 %v838_v10  ;;  %3487 = vmatprep.mubr.msk.f32.mxu0 %vm787_vm2, %v4535_v29  ;;  %v6359_v29 = vld [vmem:[#allocation20_spill] sm:$0xff] }
  0xec   : > { %1255 = vmatprep.mubr.f32.mxu1 %v803_v20  ;;  %v733_v20 = vpop.permute.xlu1 %732 }
  0xee   : > { %3488 = vmatmul.mubr.msk.f32.vlgmr.msra.gmra.mxu0 %vm787_vm2, %v4544_v51  ;;  %v841_v51 = vsel %vm787_vm2, %v6359_v29, %v729_v5  ;;  %v2124_v5 = vld [vmem:[%s6268_s4 + $0xf8] sm:$0xff] }
  0xef   : > { %1256 = vmatmul.mubr.f32.gmra.mxu1 %v839_v3  ;;  %3490 = vmatprep.mubr.msk.f32.mxu0 %vm787_vm2, %v4560_v39  ;;  %v3738_v39 = vpop.permute.xlu0 %3737 }
  0xf0   : > { %1260 = vmatprep.mubr.f32.mxu1 %v804_v45  ;;  %v3739_v19 = vunpack.i.l.bf16 %v3738_v39  ;;  %v843_v45 = vsel %vm787_vm2, %v6361_v23, %v733_v20  ;;  %3287 = vmatprep.subr.mxu1 %v2124_v5 }
  0xf2   : > { %3491 = vmatmul.mubr.msk.f32.gmra.mxu0 %vm787_vm2, %v4569_v35  ;;  %v842_v35 = vsel %vm787_vm2, %v6360_v26, %v731_v48  ;;  %v2108_v48 = vld [vmem:[%s6268_s4 + $0x78] sm:$0xff] }
  0xf3   : > { %1261 = vmatmul.mubr.f32.gmra.mxu1 %v840_v30  ;;  %3493 = vmatprep.mubr.msk.f32.mxu0 %vm787_vm2, %v4585_v50  ;;  %v3743_v50 = vpop.permute.xlu1 %3742  ;;  %v3748_v59 = vpop.permute.xlu0 %3747 }
  0xf4   : > { %1265 = vmatprep.mubr.f32.mxu1 %v805_v32  ;;  %v3744_v34 = vunpack.i.l.bf16 %v3743_v50  ;;  %v3749_v21 = vunpack.i.l.bf16 %v3748_v59  ;;  %3288 = vmatpush3.msra.mxu1 %v2108_v48  ;;  %v2100_v48 = vld [vmem:[%s6268_s4 + $0x38] sm:$0xff] }
  0xf6   : > { %3494 = vmatmul.mubr.msk.f32.gmra.mxu0 %vm787_vm2, %v4594_v63  ;;  %v3740_v63 = vunpack.i.h.bf16 %v3738_v39  ;;  %v849_v32 = vsel %vm787_vm2, %v4473_v7, %v3744_v34  ;;  %v850_v57 = vsel %vm787_vm2, %v4670_v16, %v3749_v21  ;;  %v2123_v39 = vld [vmem:[%s6268_s4 + $0xf0] sm:$0xff] }
  0xf7   : > { %1266 = vmatmul.mubr.f32.gmra.mxu1 %v841_v51  ;;  %3496 = vmatprep.mubr.msk.f32.mxu0 %vm787_vm2, %v4612_v62  ;;  %v6362_v62 = vld [vmem:[#allocation25_spill] sm:$0xff]  ;;  %v3753_v8 = vpop.permute.xlu1 %3752 }
  0xf8   : > { %1270 = vmatprep.mubr.f32.mxu1 %v806_v56  ;;  %v848_v27 = vsel %vm787_vm2, %v6362_v62, %v3739_v19  ;;  %v3754_v41 = vunpack.i.l.bf16 %v3753_v8  ;;  %3289 = vmatprep.subr.mxu1 %v2123_v39 }
  0xfa   : > { %3497 = vmatmul.mubr.msk.f32.gmra.mxu0 %vm787_vm2, %v4618_v42  ;;  %v3745_v42 = vunpack.i.h.bf16 %v3743_v50  ;;  %v851_v22 = vsel %vm787_vm2, %v4673_v28, %v3754_v41  ;;  %v2104_v41 = vld [vmem:[%s6268_s4 + $0x58] sm:$0xff] }
  0xfb   : > { %1271 = vmatmul.mubr.f32.gmra.mxu1 %v842_v35  ;;  %3499 = vmatprep.mubr.msk.f32.mxu0 %vm787_vm2, %v4634_v15  ;;  %v6363_v15 = vld [vmem:[#allocation26_spill] sm:$0xff]  ;;  %v2107_v35 = vld [vmem:[%s6268_s4 + $0x70] sm:$0xff] }
  0xfc   : > { %1275 = vmatprep.mubr.f32.mxu1 %v807_v17  ;;  %v844_v38 = vsel %vm787_vm2, %v6363_v15, %v3740_v63  ;;  %3290 = vmatpush3.msra.mxu1 %v2107_v35  ;;  %v2122_v63 = vld [vmem:[%s6268_s4 + $0xe8] sm:$0xff]  ;;  %v2115_v35 = vld [vmem:[%s6268_s4 + $0xb0] sm:$0xff] }
  0xfd   : > { %3291 = vmatprep.subr.mxu1 %v2122_v63 }
  0xfe   : > { %3500 = vmatmul.mubr.msk.f32.gmra.mxu0 %vm787_vm2, %v4639_v6  ;;  %v3750_v6 = vunpack.i.h.bf16 %v3748_v59 }
  0xff   : > { %1276 = vmatmul.mubr.f32.gmra.mxu1 %v843_v45  ;;  %3502 = vmatprep.mubr.msk.f32.mxu0 %vm787_vm2, %v4661_v11  ;;  %v6364_v11 = vld [vmem:[#allocation27_spill] sm:$0xff] }
 0x100   : > { %1280 = vmatprep.mubr.f32.mxu1 %v848_v27  ;;  %v845_v60 = vsel %vm787_vm2, %v6364_v11, %v3745_v42  ;;  %v846_v7 = vsel %vm787_vm2, %v4701_v40, %v3750_v6  ;;  %v2106_v27 = vld [vmem:[%s6268_s4 + $0x68] sm:$0xff]  ;;  %v2120_v6 = vld [vmem:[%s6268_s4 + $0xd8] sm:$0xff] }
 0x101   : > { %3292 = vmatpush3.msra.mxu1 %v2106_v27  ;;  %v2099_v27 = vld [vmem:[%s6268_s4 + $0x30] sm:$0xff] }
 0x102   : > { %3503 = vmatmul.mubr.msk.f32.gmra.mxu0 %vm787_vm2, %v4666_v52  ;;  %v3755_v52 = vunpack.i.h.bf16 %v3753_v8  ;;  %v2105_v8 = vld [vmem:[%s6268_s4 + $0x60] sm:$0xff] }
 0x103   : > { %1281 = vmatmul.mubr.f32.gmra.mxu1 %v844_v38  ;;  %3505 = vmatprep.mubr.msk.f32.mxu0 %vm787_vm2, %v4685_v1  ;;  %v782_v1 = vrot.slane %v4670_v16, 2 }
 0x104   : > { %1285 = vmatprep.mubr.f32.mxu1 %v849_v32  ;;  %v847_v40 = vsel %vm787_vm2, %v4710_v54, %v3755_v52  ;;  %v2121_v32 = vld [vmem:[%s6268_s4 + $0xe0] sm:$0xff]  ;;  %v2119_v52 = vld [vmem:[%s6268_s4 + $0xd0] sm:$0xff] }
 0x105   : > { %v784_v16 = vsel %vm538_vm1, %v782_v1, %v783_v0  ;;  %3293 = vmatprep.subr.mxu1 %v2121_v32  ;;  %v2103_v1 = vld [vmem:[%s6268_s4 + $0x50] sm:$0xff]  ;;  %v2114_v32 = vld [vmem:[%s6268_s4 + $0xa8] sm:$0xff] }
 0x106   : > { %3506 = vmatmul.mubr.msk.f32.gmra.mxu0 %vm787_vm2, %v4688_v25  ;;  %v6365_v25 = vld [vmem:[#allocation28_spill] sm:$0xff]  ;;  %3294 = vmatpush3.msra.mxu1 %v2105_v8  ;;  %v2152_v8 = vld [vmem:[%s6268_s4 + $0x1d8] sm:$0xff] }
 0x107   : > { %1286 = vmatmul.mubr.f32.gmra.mxu1 %v845_v60  ;;  %3508 = vmatprep.mubr.msk.f32.mxu0 %vm787_vm2, %v4691_v49  ;;  %v785_v49 = vrot.slane %v6365_v25, 2 }
 0x108   : > { %1290 = vmatprep.mubr.f32.mxu1 %v850_v57  ;;  %3295 = vmatprep.subr.mxu1 %v2120_v6 }
 0x109   : > { %v786_v28 = vsel %vm538_vm1, %v783_v0, %v785_v49  ;;  %3296 = vmatpush3.msra.mxu1 %v2104_v41  ;;  %v2102_v49 = vld [vmem:[%s6268_s4 + $0x48] sm:$0xff]  ;;  %v2136_v41 = vld [vmem:[%s6268_s4 + $0x158] sm:$0xff] }
 0x10a   : > { %3509 = vmatmul.mubr.msk.f32.gmra.mxu0 %vm787_vm2, %v4707_v2  ;;  %3297 = vmatprep.subr.mxu1 %v2119_v52 }
 0x10b   : > { %1291 = vmatmul.mubr.f32.gmra.mxu1 %v846_v7  ;;  %3511 = vmatprep.mubr.msk.f32.mxu0 %vm787_vm2, %v4730_v61 }
 0x10c   : > { %1295 = vmatprep.mubr.f32.mxu1 %v851_v22  ;;  %v2118_v22 = vld [vmem:[%s6268_s4 + $0xc8] sm:$0xff]  ;;  %3298 = vmatpush3.msra.mxu1 %v2103_v1  ;;  %v2113_v1 = vld [vmem:[%s6268_s4 + $0xa0] sm:$0xff] }
 0x10d   : > { %3299 = vmatprep.subr.mxu1 %v2118_v22 }
 0x10e   : > { %3512 = vmatmul.mubr.msk.f32.gmra.mxu0 %vm787_vm2, %v6366_v18  ;;  %v2156_v18 = vld [vmem:[%s6268_s4 + $0x1f8] sm:$0xff]  ;;  %3300 = vmatpush3.msra.mxu1 %v2102_v49  ;;  %v2097_v49 = vld [vmem:[%s6268_s4 + $0x20] sm:$0xff] }
 0x10f   : > { %1296 = vmatmul.mubr.f32.gmra.mxu1 %v847_v40  ;;  %3514 = vmatprep.mubr.msk.f32.mxu0 %vm787_vm2, %v784_v16  ;;  %v2117_v16 = vld [vmem:[%s6268_s4 + $0xc0] sm:$0xff] }
 0x110   : > { %3367 = vmatprep.subr.mxu0 %v2156_v18  ;;  %3301 = vmatprep.subr.mxu1 %v2117_v16  ;;  %v2135_v16 = vld [vmem:[%s6268_s4 + $0x150] sm:$0xff] }
 0x112   : > { %3515 = vmatmul.mubr.msk.f32.gmra.mxu0 %vm787_vm2, %v786_v28 }
 0x15e   : > { %v5000_v2 = vpop.f32.mrf.mxu0 }
 0x160   : > { %v1039_v61 = vpop.f32.mrf.mxu0 }
 0x161   : > { %v2101_v61 = vld [vmem:[%s6268_s4 + $0x40] sm:$0xff] }
 0x162   : > { %v5002_v13 = vpop.f32.mrf.mxu0  ;;  %3302 = vmatpush3.msra.mxu1 %v2101_v61  ;;  %v1531_v61 = vstv %s3226_s12  ;;  %s324_s12 = scalar_lea.vmem [#allocation2], %s3198_s13 }
 0x163   : > { %s3088_s8 = sshll.u32 %s324_s12, 4  ;;  %s6210_s8 = int_to_ptr.vmem [resolvable:$true] %s3088_s8 }
 0x164   : > { %v1044_v12 = vpop.f32.mrf.mxu0  ;;  %s3876_s29 = scalar_lea.vmem %s6210_s8, 1024  ;;  %p3883_p5 = scmp.lt.s32.totalorder %s6210_s8, %s3881_s30 }
 0x165   : > { %v2116_v12 = vld [vmem:[%s6268_s4 + $0xb8] sm:$0xff]  ;;  %p3877_p1 = scmp.ne.s32.totalorder %s6210_s8, %s3876_s29  ;;  %p3884_p6 = scmp.lt.s32.totalorder %s3882_s24, %s3876_s29 }
 0x166   : > { %v5004_v56 = vpop.f32.mrf.mxu0  ;;  %3303 = vmatprep.subr.mxu1 %v2116_v12  ;;  %v2112_v12 = vld [vmem:[%s6268_s4 + $0x98] sm:$0xff] }
 0x167   : > { %3304 = vmatpush3.msra.mxu1 %v2100_v48  ;;  %p3878_p2 = pnand %p3877_p1, %p4062_p3  ;;  %p3885_p7 = por %p3884_p6, %p3883_p5 }
 0x168   : > { %v1049_v54 = vpop.f32.mrf.mxu0  ;;  %3305 = vmatprep.subr.mxu1 %v2115_v35 }
 0x169   : > { %v2140_v54 = vld [vmem:[%s6268_s4 + $0x178] sm:$0xff]  ;;  %3306 = vmatpush3.msra.mxu1 %v2099_v27  ;;  %p3879_p4 = pneg %p3878_p2 }
 0x16a   : > { %v5006_v47 = vpop.f32.mrf.mxu0  ;;  %3368 = vmatpush3.msra.mxu0 %v2140_v54  ;;  %3307 = vmatprep.subr.mxu1 %v2114_v32  ;;  %v2150_v54 = vld [vmem:[%s6268_s4 + $0x1c8] sm:$0xff]  ;;  %v2109_v32 = vld [vmem:[%s6268_s4 + $0x80] sm:$0xff] }
 0x16b   : > { %p3886_p9 = pnand %p3885_p7, %p3879_p4 }
 0x16c   : > { %v1054_v10 = vpop.f32.mrf.mxu0 }
 0x16e   : > { %v5008_v24 = vpop.f32.mrf.mxu0 }
 0x170   : > { %v1059_v17 = vpop.f32.mrf.mxu0 }
 0x171   : > { %v2155_v17 = vld [vmem:[%s6268_s4 + $0x1f0] sm:$0xff] }
 0x172   : > { %v5010_v36 = vpop.f32.mrf.mxu0  ;;  %3369 = vmatprep.subr.mxu0 %v2155_v17  ;;  %v2096_v17 = vld [vmem:[%s6268_s4 + $0x18] sm:$0xff] }
 0x174   : > { %v1064_v3 = vpop.f32.mrf.mxu0 }
 0x175   : > { %v2139_v3 = vld [vmem:[%s6268_s4 + $0x170] sm:$0xff] }
 0x176   : > { %v5012_v44 = vpop.f32.mrf.mxu0  ;;  %3370 = vmatpush3.msra.mxu0 %v2139_v3 }
 0x178   : > { %v1069_v30 = vpop.f32.mrf.mxu0 }
 0x179   : > { %v2154_v30 = vld [vmem:[%s6268_s4 + $0x1e8] sm:$0xff] }
 0x17a   : > { %v5020_v51 = vpop.f32.mrf.mxu0  ;;  %3371 = vmatprep.subr.mxu0 %v2154_v30  ;;  %v2111_v30 = vld [vmem:[%s6268_s4 + $0x90] sm:$0xff] }
 0x17c   : > { %v1074_v20 = vpop.f32.mrf.mxu0 }
 0x17d   : > { %v2138_v20 = vld [vmem:[%s6268_s4 + $0x168] sm:$0xff] }
 0x17e   : > { %v5028_v19 = vpop.f32.mrf.mxu0  ;;  %3372 = vmatpush3.msra.mxu0 %v2138_v20  ;;  %v2095_v20 = vld [vmem:[%s6268_s4 + $0x10] sm:$0xff] }
 0x180   : > { %v1079_v50 = vpop.f32.mrf.mxu0 }
 0x181   : > { %v2153_v50 = vld [vmem:[%s6268_s4 + $0x1e0] sm:$0xff] }
 0x182   : > { %v5033_v45 = vpop.f32.mrf.mxu0  ;;  %3373 = vmatprep.subr.mxu0 %v2153_v50  ;;  %v2110_v50 = vld [vmem:[%s6268_s4 + $0x88] sm:$0xff] }
 0x183   : > { %v5035_v34 = vpop.f32.mrf.mxu1 }
 0x184   : > { %v1084_v62 = vpop.f32.mrf.mxu0 }
 0x185   : > { %v1204_v59 = vpop.f32.mrf.mxu1  ;;  %v1528_v62 = vlaneseq }
 0x186   : > { %v5040_v42 = vpop.f32.mrf.mxu0  ;;  %v2137_v59 = vld [vmem:[%s6268_s4 + $0x160] sm:$0xff] }
 0x187   : > { %v5042_v38 = vpop.f32.mrf.mxu1  ;;  %3374 = vmatpush3.msra.mxu0 %v2137_v59  ;;  %v2094_v59 = vld [vmem:[%s6268_s4 + $0x8] sm:$0xff] }
 0x188   : > { %v1089_v21 = vpop.f32.mrf.mxu0  ;;  %3375 = vmatprep.subr.mxu0 %v2152_v8 }
 0x189   : > { %v1209_v60 = vpop.f32.mrf.mxu1  ;;  %3376 = vmatpush3.msra.mxu0 %v2136_v41 }
 0x18a   : > { %v5056_v57 = vpop.f32.mrf.mxu0  ;;  %v2098_v60 = vld [vmem:[%s6268_s4 + $0x28] sm:$0xff] }
 0x18b   : > { %v5061_v7 = vpop.f32.mrf.mxu1  ;;  %3308 = vmatpush3.msra.mxu1 %v2098_v60 }
 0x18c   : > { %v1094_v0 = vpop.f32.mrf.mxu0  ;;  %3309 = vmatprep.subr.mxu1 %v2113_v1 }
 0x18d   : > { %v1214_v25 = vpop.f32.mrf.mxu1  ;;  %v2151_v0 = vld [vmem:[%s6268_s4 + $0x1d0] sm:$0xff]  ;;  %3310 = vmatpush3.msra.mxu1 %v2097_v49 }
 0x18e   : > { %v5072_v40 = vpop.f32.mrf.mxu0  ;;  %v5145_v25 = vshrl.u32 %v1528_v62, 7  ;;  %3377 = vmatprep.subr.mxu0 %v2151_v0  ;;  %3311 = vmatprep.subr.mxu1 %v2112_v12 }
 0x18f   : > { %v5080_v28 = vpop.f32.mrf.mxu1  ;;  %3378 = vmatpush3.msra.mxu0 %v2135_v16  ;;  %3312 = vmatpush3.msra.mxu1 %v2096_v17 }
 0x190   : > { %v1099_v10 = vpop.f32.mrf.mxu0  ;;  %6367 = vst [vmem:[#allocation17_spill] sm:$0xff] %v5145_v25  ;;  %v1532_v48 = vadd.s32 %v1531_v61, %v5145_v25  ;;  %3379 = vmatprep.subr.mxu0 %v2150_v54  ;;  %v1530_v27 = vadd.s32 8, %v5145_v25  ;;  %3313 = vmatprep.subr.mxu1 %v2111_v30  ;;  %v3972_v54 = vmov 0  }
 0x191   : > { %v1219_v5 = vpop.f32.mrf.mxu1  ;;  %3314 = vmatpush3.msra.mxu1 %v2095_v20 }
 0x192   : > { %v5106_v39 = vpop.f32.mrf.mxu0  ;;  %vm1534_vm3 = vcmp.ge.s32.totalorder %v1532_v48, 0  ;;  %vm1536_vm4 = vcmp.lt.s32.totalorder %v1532_v48, 16  ;;  %3315 = vmatprep.subr.mxu1 %v2110_v50  ;;  %v1533_v1 = vadd.s32 %v1531_v61, %v1530_v27  ;;  %v1548_v61 = vsub.s32 1, %v5145_v25 }
 0x193   : > { %v5114_v63 = vpop.f32.mrf.mxu1  ;;  %3316 = vmatpush3.msra.mxu1 %v2094_v59  ;;  %vm1538_vm5 = vmand %vm1534_vm3, %vm1536_vm4  ;;  %v1556_v50 = vsub.s32 3, %v5145_v25  ;;  %v1560_v27 = vsub.s32 4, %v5145_v25  ;;  %v1564_v59 = vsub.s32 5, %v5145_v25 }
 0x194   : > { %v1104_v21 = vpop.f32.mrf.mxu0  ;;  %3317 = vmatprep.subr.mxu1 %v2109_v32  ;;  %vm1535_vm6 = vcmp.ge.s32.totalorder %v1533_v1, 0  ;;  %vm1537_vm7 = vcmp.lt.s32.totalorder %v1533_v1, 16  ;;  %v5209_v32 = vld [vmem:[%s6267_s3] ss:$0 sm:$0xff] }
 0x195   : > { %v1224_v6 = vpop.f32.mrf.mxu1  ;;  %vm1539_vm8 = vmand %vm1535_vm6, %vm1537_vm7  ;;  %v1043_v1 = vadd.f32 %v5209_v32, %v5002_v13  ;;  %v1038_v26 = vadd.f32 %v5209_v32, %v5000_v2  ;;  %v1048_v2 = vadd.f32 %v5209_v32, %v5004_v56  ;;  %v1073_v56 = vadd.f32 %v5209_v32, %v5020_v51 }
 0x196   : > { %v5135_v52 = vpop.f32.mrf.mxu0  ;;  %v2093_v6 = vld [vmem:[%s6268_s4] sm:$0xff] }
 0x197   : > { %v5143_v22 = vpop.f32.mrf.mxu1  ;;  %3318 = vmatpush3.msra.mxu1 %v2093_v6  ;;  %v1208_v23 = vadd.f32 %v5042_v38, %v1043_v1  ;;  %v1203_v38 = vadd.f32 %v5035_v34, %v1038_v26 }
 0x198   : > { %v1109_v18 = vpop.f32.mrf.mxu0 }
 0x199   : > { %v1229_v10 = vpop.f32.mrf.mxu1  ;;  %v1544_v18 = vsub.s32 0, %v5145_v25 }
 0x19a   : > { %v5162_v3 = vpop.f32.mrf.mxu0  ;;  %v1540_v10 = vsel %vm1538_vm5, 1, %v3972_v54 }
 0x19b   : > { %v5167_v5 = vpop.f32.mrf.mxu1  ;;  %v5200_v20 = vrot.slane %v1540_v10, %v1544_v18  ;;  %v5224_v11 = vrot.slane %v1540_v10, %v1556_v50  ;;  %v5229_v29 = vrot.slane %v1540_v10, %v1560_v27  ;;  %v5231_v13 = vrot.slane %v1540_v10, %v1564_v59 }
 0x19c   : > { %v1114_v35 = vpop.f32.mrf.mxu0 }
 0x19d   : > { %v1234_v62 = vpop.f32.mrf.mxu1  ;;  %v1552_v35 = vsub.s32 2, %v5145_v25  ;;  %vm1582_vm9 = vcmp.ne.s32.totalorder %v5200_v20, 0  ;;  %vm1585_vm7 = vcmp.ne.s32.totalorder %v5224_v11, 0 }
 0x19e   : > { %v5180_v21 = vpop.f32.mrf.mxu0 }
 0x19f   : > { %v5185_v8 = vpop.f32.mrf.mxu1  ;;  %v5222_v15 = vrot.slane %v1540_v10, %v1552_v35 }
 0x1a0   : > { %v1119_v60 = vpop.f32.mrf.mxu0 }
 0x1a1   : > { %v1239_v41 = vpop.f32.mrf.mxu1  ;;  %v1568_v60 = vsub.s32 6, %v5145_v25  ;;  %vm1584_vm14 = vcmp.ne.s32.totalorder %v5222_v15, 0 }
 0x1a2   : > { %v5190_v0 = vpop.f32.mrf.mxu0  ;;  %v1572_v41 = vsub.s32 7, %v5145_v25 }
 0x1a3   : > { %v5192_v49 = vpop.f32.mrf.mxu1 }
 0x1a4   : > { %v1124_v16 = vpop.f32.mrf.mxu0 }
 0x1a5   : > { %v1244_v12 = vpop.f32.mrf.mxu1 }
 0x1a6   : > { %v5195_v17 = vpop.f32.mrf.mxu0  ;;  %v5219_v12 = vrot.slane %v1540_v10, %v1548_v61 }
 0x1a7   : > { %v5197_v30 = vpop.f32.mrf.mxu1 }
 0x1a8   : > { %v1129_v48 = vpop.f32.mrf.mxu0  ;;  %vm1583_vm11 = vcmp.ne.s32.totalorder %v5219_v12, 0  ;;  %v2134_v12 = vld [vmem:[%s6268_s4 + $0x148] sm:$0xff] }
 0x1a9   : > { %v1249_v62 = vpop.f32.mrf.mxu1  ;;  %v1541_v48 = vsel %vm1539_vm8, 1, %v3972_v54  ;;  %v5233_v54 = vrot.slane %v1540_v10, %v1568_v60  ;;  %v1078_v60 = vadd.f32 %v5209_v32, %v5028_v19  ;;  %v1213_v19 = vadd.f32 %v5061_v7, %v1048_v2  ;;  %3380 = vmatpush3.msra.mxu0 %v2134_v12 }
 0x1aa   : > { %v5211_v6 = vpop.f32.mrf.mxu0  ;;  %v5237_v35 = vrot.slane %v1541_v48, %v1544_v18  ;;  %v5239_v50 = vrot.slane %v1541_v48, %v1548_v61  ;;  %v1063_v18 = vadd.f32 %v5209_v32, %v5010_v36  ;;  %v1068_v61 = vadd.f32 %v5209_v32, %v5012_v44 }
 0x1ab   : > { %v5217_v16 = vpop.f32.mrf.mxu1  ;;  %v5266_v36 = vadd.f32 %v5209_v32, %v5040_v42  ;;  %v5270_v44 = vadd.f32 %v5209_v32, %v5056_v57  ;;  %vm1586_vm8 = vcmp.ne.s32.totalorder %v5229_v29, 0 }
 0x1ac   : > { %v1134_v62 = vpop.f32.mrf.mxu0  ;;  %v1228_v42 = vadd.f32 %v5143_v22, %v1063_v18  ;;  %v5294_v18 = vadd.f32 %v5209_v32, %v5135_v52 }
 0x1ad   : > { %v1254_v14 = vpop.f32.mrf.mxu1  ;;  %v5235_v62 = vrot.slane %v1540_v10, %v1572_v41  ;;  %v1058_v10 = vadd.f32 %v5209_v32, %v5008_v24  ;;  %v5262_v24 = vadd.f32 %v5209_v32, %v5033_v45  ;;  %v5278_v45 = vadd.f32 %v5209_v32, %v5072_v40 }
 0x1ae   : > { %v3489_v37 = vpop.f32.mrf.mxu0  ;;  %v1053_v14 = vadd.f32 %v5209_v32, %v5006_v47 }
 0x1af   : > { %v1373_v27 = vadd.f32 %v3489_v37, %v1208_v23  ;;  %v5246_v59 = vpop.f32.mrf.mxu1  ;;  %v1223_v7 = vadd.f32 %v5114_v63, %v1058_v10  ;;  %v1233_v63 = vadd.f32 %v5167_v5, %v1068_v61  ;;  %v5315_v61 = vadd.f32 %v5209_v32, %v5180_v21 }
 0x1b0   : > { %v1367_v47 = vpop.f32.mrf.mxu0  ;;  %v1218_v26 = vadd.f32 %v5080_v28, %v1053_v14 }
 0x1b1   : > { %vm1467_vm12 = vcmp.ge.f32.partialorder %v1373_v27, 0.0  ;;  %v1487_v37 = vmul.f32 0.01, %v1373_v27  ;;  %v1368_v23 = vadd.f32 %v1367_v47, %v1203_v38  ;;  %v1259_v34 = vpop.f32.mrf.mxu1 }
 0x1b2   : > { %v3492_v51 = vpop.f32.mrf.mxu0 }
 0x1b3   : > { %v1507_v28 = vsel %vm1467_vm12, %v1373_v27, %v1487_v37  ;;  %vm1466_vm13 = vcmp.ge.f32.partialorder %v1368_v23, 0.0  ;;  %v1486_v41 = vmul.f32 0.01, %v1368_v23  ;;  %v1383_v1 = vadd.f32 %v3492_v51, %v1218_v26  ;;  %v5272_v48 = vpop.f32.mrf.mxu1 }
 0x1b4   : > { %v1613_v57 = vsel %vm1582_vm9, %v1507_v28, 0.0  ;;  %v1377_v14 = vpop.f32.mrf.mxu0  ;;  %v5285_v37 = vadd.f32 %v5209_v32, %v5106_v39  ;;  %v5301_v39 = vadd.f32 %v5209_v32, %v5162_v3 }
 0x1b5   : > { %v1654_v38 = vrot.slane %v1613_v57, 7  ;;  %v1506_v27 = vsel %vm1466_vm13, %v1368_v23, %v1486_v41  ;;  %vm1469_vm15 = vcmp.ge.f32.partialorder %v1383_v1, 0.0  ;;  %v1489_v47 = vmul.f32 0.01, %v1383_v1  ;;  %v1264_v26 = vpop.f32.mrf.mxu1 }
 0x1b6   : > { %v5290_v40 = vsel %vm1582_vm9, %v1506_v27, 0.0  ;;  %v1378_v22 = vadd.f32 %v1377_v14, %v1213_v19  ;;  %v3495_v2 = vpop.f32.mrf.mxu0  ;;  %v1238_v41 = vadd.f32 %v5185_v8, %v1073_v56  ;;  %v5319_v8 = vadd.f32 %v5209_v32, %v5190_v0 }
 0x1b7   : > { %v1653_v23 = vrot.slane %v5290_v40, 7  ;;  %v1509_v34 = vsel %vm1469_vm15, %v1383_v1, %v1489_v47  ;;  %v1393_v51 = vadd.f32 %v3495_v2, %v1228_v42  ;;  %v5297_v28 = vpop.f32.mrf.mxu1  ;;  %v5306_v52 = vsel %vm1652_vm10, %v1654_v38, 0.0 }
 0x1b8   : > { %vm1468_vm3 = vcmp.ge.f32.partialorder %v1378_v22, 0.0  ;;  %v1488_v20 = vmul.f32 0.01, %v1378_v22  ;;  %v1387_v10 = vpop.f32.mrf.mxu0  ;;  %v1615_v42 = vsel %vm1583_vm11, %v1509_v34, 0.0  ;;  %v1752_v47 = vrot.slane %v5306_v52, 1 }
 0x1b9   : > { %v5309_v19 = vsel %vm1652_vm10, %v1653_v23, %v1654_v38  ;;  %vm1471_vm4 = vcmp.ge.f32.partialorder %v1393_v51, 0.0  ;;  %v1269_v1 = vpop.f32.mrf.mxu1  ;;  %v1491_v57 = vmul.f32 0.01, %v1393_v51  ;;  %v1388_v14 = vadd.f32 %v1387_v10, %v1223_v7 }
 0x1ba   : > { %v1508_v3 = vsel %vm1468_vm3, %v1378_v22, %v1488_v20  ;;  %v3498_v5 = vpop.f32.mrf.mxu0  ;;  %v1750_v21 = vrot.slane %v5309_v19, 1  ;;  %v1657_v22 = vrot.slane %v1615_v42, 7  ;;  %v1243_v34 = vadd.f32 %v5192_v49, %v1078_v60  ;;  %v2149_v1 = vld [vmem:[%s6268_s4 + $0x1c0] sm:$0xff]  ;;  %v2148_v49 = vld [vmem:[%s6268_s4 + $0x1b8] sm:$0xff] }
 0x1bb   : > { %v5323_v56 = vsel %vm1583_vm11, %v1508_v3, 0.0  ;;  %v1403_v38 = vadd.f32 %v3498_v5, %v1238_v41  ;;  %v5325_v27 = vpop.f32.mrf.mxu1  ;;  %v1511_v7 = vsel %vm1471_vm4, %v1393_v51, %v1491_v57  ;;  %vm1470_vm5 = vcmp.ge.f32.partialorder %v1388_v14, 0.0  ;;  %v2133_v42 = vld [vmem:[%s6268_s4 + $0x140] sm:$0xff]  ;;  %3381 = vmatprep.subr.mxu0 %v2149_v1 }
 0x1bc   : > { %v1656_v26 = vrot.slane %v5323_v56, 7  ;;  %v1397_v40 = vpop.f32.mrf.mxu0  ;;  %v1490_v2 = vmul.f32 0.01, %v1388_v14  ;;  %v5336_v20 = vsel %vm1584_vm14, %v1511_v7, 0.0  ;;  %v5349_v60 = vadd.f32 %v5209_v32, %v5195_v17  ;;  %v5364_v7 = vld [vmem:[%s6268_s4 + $0x238] sm:$0xff]  ;;  %3382 = vmatpush3.msra.mxu0 %v2133_v42 }
 0x1bd   : > { %vm1473_vm6 = vcmp.ge.f32.partialorder %v1403_v38, 0.0  ;;  %v1274_v0 = vpop.f32.mrf.mxu1  ;;  %v1493_v10 = vmul.f32 0.01, %v1403_v38  ;;  %v1398_v51 = vadd.f32 %v1397_v40, %v1233_v63  ;;  %v1248_v63 = vadd.f32 %v5197_v30, %v5262_v24  ;;  %3517 = vmatprep.subr.mxu1 %v5364_v7  ;;  %3383 = vmatprep.subr.mxu0 %v2148_v49 }
 0x1be   : > { %v3501_v41 = vpop.f32.mrf.mxu0  ;;  %v1510_v3 = vsel %vm1470_vm5, %v1388_v14, %v1490_v2  ;;  %v5359_v5 = vsel %vm1652_vm10, %v1656_v26, %v1657_v22  ;;  %v5368_v17 = vadd.f32 %v5209_v32, %v5211_v6  ;;  %v1753_v14 = vsel %vm427_vm0, %v1750_v21, %v1752_v47 }
 0x1bf   : > { %v5354_v57 = vpop.f32.mrf.mxu1  ;;  %v1513_v30 = vsel %vm1473_vm6, %v1403_v38, %v1493_v10  ;;  %v5377_v40 = vsel %vm1652_vm10, 0.0, %v1653_v23  ;;  %v1660_v2 = vrot.slane %v5336_v20, 7  ;;  %v5382_v32 = vsel %vm1584_vm14, %v1510_v3, 0.0 }
 0x1c0   : > { %v1407_v24 = vpop.f32.mrf.mxu0  ;;  %v1413_v6 = vadd.f32 %v3501_v41, %v1248_v63  ;;  %v1253_v47 = vadd.f32 %v5217_v16, %v5266_v36  ;;  %v1258_v0 = vadd.f32 %v5246_v59, %v5270_v44  ;;  %v5390_v23 = vsel %vm1652_vm10, %v1657_v22, 0.0  ;;  %v2132_v16 = vld [vmem:[%s6268_s4 + $0x138] sm:$0xff]  ;;  %v2147_v59 = vld [vmem:[%s6268_s4 + $0x1b0] sm:$0xff]  ;;  %v2146_v63 = vld [vmem:[%s6268_s4 + $0x1a8] sm:$0xff] }
 0x1c1   : > { %v1279_v38 = vpop.f32.mrf.mxu1  ;;  %v1492_v12 = vmul.f32 0.01, %v1398_v51  ;;  %v5394_v15 = vsel %vm1585_vm7, %v1513_v30, 0.0  ;;  %vm1472_vm9 = vcmp.ge.f32.partialorder %v1398_v51, 0.0  ;;  %v1408_v10 = vadd.f32 %v1407_v24, %v1243_v34  ;;  %v2131_v36 = vld [vmem:[%s6268_s4 + $0x130] sm:$0xff]  ;;  %3384 = vmatpush3.msra.mxu0 %v2132_v16 }
 0x1c2   : > { %v3504_v20 = vpop.f32.mrf.mxu0  ;;  %v3761_v41 = vpack.i.bf16 %v1753_v14, %v5359_v5  ;;  %vm1587_vm11 = vcmp.ne.s32.totalorder %v5231_v13, 0  ;;  %v1263_v44 = vadd.f32 %v5272_v48, %v5278_v45  ;;  %v1268_v22 = vadd.f32 %v5297_v28, %v5285_v37  ;;  %3385 = vmatprep.subr.mxu0 %v2147_v59 }
 0x1c3   : > { %v5398_v1 = vpop.f32.mrf.mxu1  ;;  %v1659_v34 = vrot.slane %v5382_v32, 7  ;;  %v1749_v42 = vrot.slane %v5377_v40, 1  ;;  %v1757_v3 = vrot.slane %v5390_v23, 1  ;;  %v5420_v30 = vsel %vm1652_vm10, %v1660_v2, 0.0  ;;  %3386 = vmatpush3.msra.mxu0 %v2131_v36 }
 0x1c4   : > { %v1417_v49 = vpop.f32.mrf.mxu0  ;;  %v1495_v24 = vmul.f32 0.01, %v1413_v6  ;;  %3762 = vrot.lane.b32.xlu1 %v3761_v41, %s3971_s17  ;;  %v5426_v48 = vsel %vm1652_vm10, 0.0, %v1656_v26  ;;  %v1663_v37 = vrot.slane %v5394_v15, 7  ;;  %v1512_v28 = vsel %vm1472_vm9, %v1398_v51, %v1492_v12  ;;  %3387 = vmatprep.subr.mxu0 %v2146_v63 }
 0x1c5   : > { %v1284_v45 = vpop.f32.mrf.mxu1  ;;  %vm1475_vm12 = vcmp.ge.f32.partialorder %v1413_v6, 0.0  ;;  %v1494_v14 = vmul.f32 0.01, %v1408_v10  ;;  %vm1474_vm13 = vcmp.ge.f32.partialorder %v1408_v10, 0.0  ;;  %v1751_v56 = vsel %vm427_vm0, %v1749_v42, %v1750_v21  ;;  %v2130_v42 = vld [vmem:[%s6268_s4 + $0x128] sm:$0xff] }
 0x1c6   : > { %v3507_v32 = vpop.f32.mrf.mxu0  ;;  %v1423_v41 = vadd.f32 %v3504_v20, %v1258_v0  ;;  %v5439_v51 = vadd.f32 %v5325_v27, %v5294_v18  ;;  %v3756_v12 = vpack.i.bf16 %v1751_v56, %v5426_v48  ;;  %v5443_v59 = vsel %vm1652_vm10, %v1659_v34, %v1660_v2  ;;  %v2145_v18 = vld [vmem:[%s6268_s4 + $0x1a0] sm:$0xff]  ;;  %3388 = vmatpush3.msra.mxu0 %v2130_v42 }
 0x1c7   : > { %v5434_v26 = vpop.f32.mrf.mxu1  ;;  %v1618_v45 = vsel %vm1585_vm7, %v1512_v28, 0.0  ;;  %v1515_v21 = vsel %vm1475_vm12, %v1413_v6, %v1495_v24  ;;  %v1418_v0 = vadd.f32 %v1417_v49, %v1253_v47  ;;  %v5457_v27 = vsel %vm1652_vm10, %v1663_v37, 0.0  ;;  %3389 = vmatprep.subr.mxu0 %v2145_v18 }
 0x1c8   : > { %v1427_v36 = vpop.f32.mrf.mxu0  ;;  %vm1477_vm14 = vcmp.ge.f32.partialorder %v1423_v41, 0.0  ;;  %v5461_v11 = vadd.f32 %v5354_v57, %v5301_v39  ;;  %v1514_v2 = vsel %vm1474_vm13, %v1408_v10, %v1494_v14  ;;  %3757 = vrot.lane.b32.xlu0 %v3756_v12, %s3971_s17  ;;  %v1497_v6 = vmul.f32 0.01, %v1423_v41  ;;  %v2129_v39 = vld [vmem:[%s6268_s4 + $0x120] sm:$0xff]  ;;  %v2144_v57 = vld [vmem:[%s6268_s4 + $0x198] sm:$0xff] }
 0x1c9   : > { %v1289_v20 = vpop.f32.mrf.mxu1  ;;  %v1755_v49 = vrot.slane %v5359_v5, 1  ;;  %v5467_v63 = vsel %vm1652_vm10, 0.0, %v1659_v34  ;;  %v1754_v24 = vrot.slane %v5426_v48, 1  ;;  %v1433_v28 = vadd.f32 %v3507_v32, %v1268_v22  ;;  %3390 = vmatpush3.msra.mxu0 %v2129_v39 }
 0x1ca   : > { %v3510_v47 = vpop.f32.mrf.mxu0  ;;  %vm1588_vm15 = vcmp.ne.s32.totalorder %v5233_v54, 0  ;;  %v1662_v10 = vrot.slane %v1618_v45, 7  ;;  %v1621_v34 = vsel %vm1586_vm8, %v1515_v21, 0.0  ;;  %v1517_v14 = vsel %vm1477_vm14, %v1423_v41, %v1497_v6  ;;  %3391 = vmatprep.subr.mxu0 %v2144_v57  ;;  %v2127_v57 = vld [vmem:[%s6268_s4 + $0x110] sm:$0xff] }
 0x1cb   : > { %v5471_v56 = vpop.f32.mrf.mxu1  ;;  %v1428_v22 = vadd.f32 %v1427_v36, %v1263_v44  ;;  %v1620_v12 = vsel %vm1586_vm8, %v1514_v2, 0.0  ;;  %v1496_v20 = vmul.f32 0.01, %v1418_v0  ;;  %v5485_v42 = vsel %vm427_vm0, %v1755_v49, %v1757_v3  ;;  %v2128_v3 = vld [vmem:[%s6268_s4 + $0x118] sm:$0xff] }
 0x1cc   : > { %v1437_v32 = vpop.f32.mrf.mxu0  ;;  %v5488_v18 = vsel %vm427_vm0, %v1754_v24, %v1755_v49  ;;  %v5492_v45 = vsel %vm1587_vm11, %v1517_v14, 0.0  ;;  %vm1476_vm3 = vcmp.ge.f32.partialorder %v1418_v0, 0.0  ;;  %v3771_v44 = vpack.i.bf16 %v5485_v42, %v5443_v59  ;;  %3392 = vmatpush3.msra.mxu0 %v2128_v3 }
 0x1cd   : > { %v1294_v38 = vpop.f32.mrf.mxu1  ;;  %v3766_v29 = vpack.i.bf16 %v5488_v18, %v5467_v63  ;;  %v1666_v41 = vrot.slane %v1621_v34, 7  ;;  %vm1479_vm4 = vcmp.ge.f32.partialorder %v1433_v28, 0.0  ;;  %v1499_v36 = vmul.f32 0.01, %v1433_v28  ;;  %v2142_v34 = vld [vmem:[%s6268_s4 + $0x188] sm:$0xff] }
 0x1ce   : > { %v2143_v38 = vld [vmem:[%s6268_s4 + $0x190] sm:$0xff]  ;;  %v1498_v21 = vmul.f32 0.01, %v1428_v22  ;;  %v1665_v6 = vrot.slane %v1620_v12, 7  ;;  %3772 = vrot.lane.b32.xlu1 %v3771_v44, %s3971_s17  ;;  %vm1478_vm5 = vcmp.ge.f32.partialorder %v1428_v22, 0.0  ;;  %v5511_v49 = vsel %vm1652_vm10, %v1662_v10, %v1663_v37  ;;  %v3513_v39 = vpop.f32.mrf.mxu0 }
 0x1cf   : > { %v5504_v2 = vpop.f32.mrf.mxu1  ;;  %3767 = vrot.lane.b32.xlu0 %v3766_v29, %s3971_s17  ;;  %v1760_v24 = vrot.slane %v5443_v59, 1  ;;  %v1516_v12 = vsel %vm1476_vm3, %v1418_v0, %v1496_v20  ;;  %v5523_v15 = vsel %vm1652_vm10, 0.0, %v1662_v10  ;;  %v1759_v37 = vrot.slane %v5467_v63, 1  ;;  %3393 = vmatprep.subr.mxu0 %v2143_v38 }
 0x1d0   : > { %v1767_v29 = vrot.slane %v5457_v27, 1  ;;  %v1283_v3 = vadd.f32 %v5398_v1, %v5315_v61  ;;  %v1519_v16 = vsel %vm1479_vm4, %v1433_v28, %v1499_v36  ;;  %v6368_v33 = vrot.slane %v5420_v30, 1  ;;  %3394 = vmatpush3.msra.mxu0 %v2127_v57 }
 0x1d1   : > { %v1299_v44 = vpop.f32.mrf.mxu1  ;;  %v1518_v0 = vsel %vm1478_vm5, %v1428_v22, %v1498_v21  ;;  %v5539_v20 = vsel %vm427_vm0, %v1759_v37, %v1760_v24  ;;  %v1443_v38 = vadd.f32 %v3510_v47, %v5461_v11  ;;  %vm1589_vm6 = vcmp.ne.s32.totalorder %v5235_v62, 0  ;;  %3395 = vmatprep.subr.mxu0 %v2142_v34  ;;  %v1447_v22 = vpop.f32.mrf.mxu0 }
 0x1d2   : > { %v5533_v14 = vsel %vm427_vm0, %v1760_v24, %v6368_v33  ;;  %v5544_v61 = vsel %vm1652_vm10, %v1666_v41, 0.0  ;;  %v5548_v33 = vsel %vm1587_vm11, %v1516_v12, 0.0  ;;  %v1288_v1 = vadd.f32 %v5434_v26, %v5319_v8  ;;  %v2126_v8 = vld [vmem:[%s6268_s4 + $0x108] sm:$0xff]  ;;  %v2141_v26 = vld [vmem:[%s6268_s4 + $0x180] sm:$0xff] }
 0x1d3   : > { %v3781_v10 = vpack.i.bf16 %v5533_v14, %v5511_v49  ;;  %v3776_v28 = vpack.i.bf16 %v5539_v20, %v5523_v15  ;;  %v6369_v36 = vrot.slane %v5492_v45, 7  ;;  %v1438_v47 = vadd.f32 %v1437_v32, %v5439_v51  ;;  %v2125_v24 = vld [vmem:[%s6268_s4 + $0x100] sm:$0xff]  ;;  %3396 = vmatpush3.msra.mxu0 %v2126_v8 }
 0x1d4   : > { %v5562_v13 = vsel %vm1652_vm10, %v1665_v6, %v1666_v41  ;;  %v1765_v21 = vrot.slane %v5511_v49, 1  ;;  %v5576_v51 = vsel %vm1588_vm15, %v1519_v16, 0.0  ;;  %v5580_v32 = vsel %vm1588_vm15, %v1518_v0, 0.0  ;;  %3397 = vmatprep.subr.mxu0 %v2141_v26 }
 0x1d5   : > { %v5557_v11 = vsel %vm1652_vm10, %v6369_v36, 0.0  ;;  %3782 = vrot.lane.b32.xlu1 %v3781_v10, %s3971_s17  ;;  %3777 = vrot.lane.b32.xlu0 %v3776_v28, %s3971_s17  ;;  %v5584_v41 = vsel %vm1652_vm10, 0.0, %v1665_v6  ;;  %v1764_v57 = vrot.slane %v5523_v15, 1  ;;  %v1501_v34 = vmul.f32 0.01, %v1443_v38  ;;  %v3516_v6 = vpop.f32.mrf.mxu0 }
 0x1d6   : > { %vm1480_vm7 = vcmp.ge.f32.partialorder %v1438_v47, 0.0  ;;  %v1500_v12 = vmul.f32 0.01, %v1438_v47  ;;  %v5588_v37 = vsel %vm427_vm0, %v1765_v21, %v1767_v29  ;;  %vm1481_vm8 = vcmp.ge.f32.partialorder %v1443_v38, 0.0  ;;  %3398 = vmatpush3.msra.mxu0 %v2125_v24 }
 0x1d7   : > { %v3791_v54 = vpack.i.bf16 %v5588_v37, %v5562_v13  ;;  %v5593_v16 = vsel %vm427_vm0, %v1764_v57, %v1765_v21  ;;  %v1453_v44 = vadd.f32 %v3513_v39, %v1288_v1  ;;  %v1668_v0 = vrot.slane %v5548_v33, 7 }
 0x1d8   : > { %v1520_v10 = vsel %vm1480_vm7, %v1438_v47, %v1500_v12  ;;  %v3786_v28 = vpack.i.bf16 %v5593_v16, %v5584_v41  ;;  %v1448_v36 = vadd.f32 %v1447_v22, %v1283_v3  ;;  %vm1591_vm9 = vcmp.ne.s32.totalorder %v5239_v50, 0 }
 0x1d9   : > { %v1772_v8 = vrot.slane %v5544_v61, 1  ;;  %v1777_v26 = vrot.slane %v5557_v11, 1  ;;  %3792 = vrot.lane.b32.xlu1 %v3791_v54, %s3971_s17  ;;  %v1298_v39 = vadd.f32 %v5504_v2, %v5368_v17  ;;  %v1672_v33 = vrot.slane %v5576_v51, 7  ;;  %v1457_v2 = vpop.f32.mrf.mxu0 }
 0x1da   : > { %v1671_v1 = vrot.slane %v5580_v32, 7  ;;  %v1521_v47 = vsel %vm1481_vm8, %v1443_v38, %v1501_v34  ;;  %v1293_v3 = vadd.f32 %v5471_v56, %v5349_v60  ;;  %3787 = vrot.lane.b32.xlu0 %v3786_v28, %s3971_s17  ;;  %v5613_v22 = vsel %vm1589_vm6, %v1520_v10, 0.0 }
 0x1db   : > { %v1503_v21 = vmul.f32 0.01, %v1453_v44  ;;  %v1769_v24 = vrot.slane %v5584_v41, 1  ;;  %v1770_v17 = vrot.slane %v5562_v13, 1  ;;  %vm1590_vm11 = vcmp.ne.s32.totalorder %v5237_v35, 0 }
 0x1dc   : > { %v1502_v51 = vmul.f32 0.01, %v1448_v36  ;;  %v1843_v38 = vrot.slane %v5359_v5, 2  ;;  %v5620_v32 = vsel %vm1652_vm10, 0.0, %v1668_v0  ;;  %v1842_v60 = vrot.slane %v5426_v48, 2 }
 0x1dd   : > { %vm1483_vm12 = vcmp.ge.f32.partialorder %v1453_v44, 0.0  ;;  %vm1482_vm13 = vcmp.ge.f32.partialorder %v1448_v36, 0.0  ;;  %v5624_v56 = vsel %vm427_vm0, %v1769_v24, %v1770_v17  ;;  %v1463_v57 = vadd.f32 %v3516_v6, %v1298_v39 }
 0x1de   : > { %v5627_v34 = vsel %vm1652_vm10, %v1672_v33, 0.0  ;;  %v6370_v12 = vrot.slane %v5390_v23, 2  ;;  %v5635_v10 = vsel %vm538_vm1, %v1842_v60, %v1843_v38  ;;  %v1458_v28 = vadd.f32 %v1457_v2, %v1293_v3 }
 0x1df   : > { %v1627_v29 = vsel %vm1589_vm6, %v1521_v47, 0.0  ;;  %v1674_v31 = vrot.slane %v5613_v22, 7  ;;  %v3796_v39 = vpack.i.bf16 %v5620_v32, %v5635_v10  ;;  %v1523_v24 = vsel %vm1483_vm12, %v1453_v44, %v1503_v21 }
 0x1e0   : > { %v5632_v54 = vsel %vm538_vm1, %v1843_v38, %v6370_v12  ;;  %v1522_v23 = vsel %vm1482_vm13, %v1448_v36, %v1502_v51  ;;  %vm1485_vm14 = vcmp.ge.f32.partialorder %v1463_v57, 0.0  ;;  %v1505_v12 = vmul.f32 0.01, %v1463_v57 }
 0x1e1   : > { %v3801_v6 = vpack.i.bf16 %v5632_v54, %v5624_v56  ;;  %3797 = vrot.lane.b32.xlu0 %v3796_v39, %s3971_s17  ;;  %vm1484_vm15 = vcmp.ge.f32.partialorder %v1458_v28, 0.0  ;;  %v1504_v3 = vmul.f32 0.01, %v1458_v28  ;;  %v5647_v62 = vsel %vm1652_vm10, 0.0, %v1671_v1 }
 0x1e2   : > { %v1847_v47 = vrot.slane %v5467_v63, 2  ;;  %v1525_v22 = vsel %vm1485_vm14, %v1463_v57, %v1505_v12  ;;  %v1848_v2 = vrot.slane %v5443_v59, 2  ;;  %v6371_v38 = vrot.slane %v5492_v45, 7 }
 0x1e3   : > { %3802 = vrot.lane.b32.xlu1 %v3801_v6, %s3971_s17  ;;  %v5657_v36 = vsel %vm427_vm0, %v1770_v17, %v1772_v8  ;;  %v1631_v21 = vsel %vm1591_vm9, %v1525_v22, 0.0  ;;  %v1524_v51 = vsel %vm1484_vm15, %v1458_v28, %v1504_v3  ;;  %v5664_v6 = vsel %vm1652_vm10, %v1671_v1, %v1672_v33 }
 0x1e4   : > { %v5654_v44 = vsel %vm1652_vm10, %v1668_v0, %v6371_v38  ;;  %v1681_v57 = vrot.slane %v1631_v21, 7  ;;  %v1630_v45 = vsel %vm1591_vm9, %v1524_v51, 0.0  ;;  %v5669_v0 = vsel %vm538_vm1, %v1847_v47, %v1848_v2 }
 0x1e5   : > { %v3806_v60 = vpack.i.bf16 %v5657_v36, %v5654_v44  ;;  %v1775_v8 = vrot.slane %v5654_v44, 1  ;;  %v1628_v17 = vsel %vm1590_vm11, %v1522_v23, 0.0  ;;  %v1680_v39 = vrot.slane %v1630_v45, 7 }
 0x1e6   : > { %v3811_v28 = vpack.i.bf16 %v5647_v62, %v5669_v0  ;;  %v1774_v33 = vrot.slane %v5620_v32, 1  ;;  %v5679_v1 = vsel %vm1652_vm10, %v1681_v57, 0.0  ;;  %v1779_v12 = vrot.slane %v5647_v62, 1 }
 0x1e7   : > { %3807 = vrot.lane.b32.xlu0 %v3806_v60, %s3971_s17  ;;  %6372 = vst [vmem:[#allocation18_spill] sm:$0xff] %v5679_v1  ;;  %v5682_v50 = vsel %vm427_vm0, %v1775_v8, %v1777_v26  ;;  %v1780_v3 = vrot.slane %v5664_v6, 1  ;;  %v1675_v47 = vrot.slane %v1627_v29, 7  ;;  %v1629_v23 = vsel %vm1590_vm11, %v1523_v24, 0.0 }
 0x1e8   : > { %v5689_v22 = vsel %vm1652_vm10, %v1680_v39, %v1681_v57  ;;  %v5692_v38 = vsel %vm1652_vm10, 0.0, %v1680_v39  ;;  %3812 = vrot.lane.b32.xlu1 %v3811_v28, %s3971_s17  ;;  %v1677_v21 = vrot.slane %v1628_v17, 7  ;;  %v5696_v26 = vsel %vm427_vm0, %v1774_v33, %v1775_v8 }
 0x1e9   : > { %6373 = vst [vmem:[#allocation21_spill] sm:$0xff] %v5689_v22  ;;  %v6374_v51 = vrot.slane %v5420_v30, 2  ;;  %v1853_v35 = vrot.slane %v5511_v49, 2  ;;  %v1855_v29 = vrot.slane %v5457_v27, 2  ;;  %v3821_v24 = vpack.i.bf16 %v5682_v50, %v5664_v6 }
 0x1ea   : > { %v1852_v45 = vrot.slane %v5523_v15, 2  ;;  %v1678_v17 = vrot.slane %v1629_v23, 7  ;;  %v5711_v8 = vsel %vm427_vm0, %v1779_v12, %v1780_v3  ;;  %v5714_v30 = vsel %vm1652_vm10, 0.0, %v1674_v31 }
 0x1eb   : > { %v5701_v60 = vsel %vm538_vm1, %v1848_v2, %v6374_v51  ;;  %v5717_v2 = vsel %vm1652_vm10, %v1674_v31, %v1675_v47  ;;  %v1782_v27 = vrot.slane %v5627_v34, 1  ;;  %v1857_v39 = vrot.slane %v5584_v41, 2 }
 0x1ec   : > { %v3816_v57 = vpack.i.bf16 %v5701_v60, %v5696_v26  ;;  %3822 = vrot.lane.b32.xlu1 %v3821_v24, %s3971_s17  ;;  %v5724_v28 = vsel %vm538_vm1, %v1853_v35, %v1855_v29  ;;  %v5727_v33 = vsel %vm538_vm1, %v1852_v45, %v1853_v35  ;;  %v1858_v12 = vrot.slane %v5562_v13, 2 }
 0x1ed   : > { %v5731_v23 = vsel %vm1652_vm10, %v1677_v21, %v1678_v17  ;;  %v1730_v31 = vsel %vm1652_vm10, %v1675_v47, 0.0  ;;  %v3831_v51 = vpack.i.bf16 %v5724_v28, %v5711_v8  ;;  %v3826_v24 = vpack.i.bf16 %v5714_v30, %v5727_v33 }
 0x1ee   : > { %3817 = vrot.lane.b32.xlu0 %v3816_v57, %s3971_s17  ;;  %v5739_v57 = vsel %vm1652_vm10, 0.0, %v1677_v21  ;;  %v5742_v29 = vsel %vm427_vm0, %v1780_v3, %v1782_v27  ;;  %v1785_v35 = vrot.slane %v5717_v2, 1  ;;  %v1784_v45 = vrot.slane %v5714_v30, 1 }
 0x1ef   : > { %v1787_v47 = vrot.slane %v1730_v31, 1  ;;  %v5749_v9 = vsel %vm538_vm1, %v1857_v39, %v1858_v12  ;;  %v3836_v21 = vpack.i.bf16 %v5742_v29, %v5717_v2  ;;  %v1860_v3 = vrot.slane %v5544_v61, 2 }
 0x1f0   : > { %3832 = vrot.lane.b32.xlu1 %v3831_v51, %s3971_s17  ;;  %v3841_v4 = vpack.i.bf16 %v5739_v57, %v5749_v9  ;;  %v5760_v53 = vsel %vm427_vm0, %v1784_v45, %v1785_v35  ;;  %v1863_v61 = vrot.slane %v5654_v44, 2  ;;  %v1867_v45 = vrot.slane %v5647_v62, 2 }
 0x1f1   : > { %v5757_v27 = vsel %vm427_vm0, %v1785_v35, %v1787_v47  ;;  %v5765_v39 = vsel %vm538_vm1, %v1858_v12, %v1860_v3  ;;  %v1862_v47 = vrot.slane %v5620_v32, 2  ;;  %v1731_v35 = vsel %vm1652_vm10, %v1678_v17, 0.0 }
 0x1f2   : > { %3827 = vrot.lane.b32.xlu0 %v3826_v24, %s3971_s17  ;;  %6375 = vst [vmem:[#allocation22_spill] sm:$0xff] %v5757_v27  ;;  %v3851_v51 = vpack.i.bf16 %v5757_v27, %v5731_v23  ;;  %v3846_v24 = vpack.i.bf16 %v5765_v39, %v5760_v53  ;;  %v1868_v12 = vrot.slane %v5664_v6, 2  ;;  %v1944_v55 = vrot.slane %v5731_v23, 1 }
 0x1f3   : > { %v5783_v3 = vsel %vm538_vm1, %v1862_v47, %v1863_v61  ;;  %v1946_v17 = vrot.slane %v1731_v35, 1  ;;  %v1875_v58 = vrot.slane %v1730_v31, 2  ;;  %v2019_v25 = vrot.slane %v5692_v38, 1 }
 0x1f4   : > { %3842 = vrot.lane.b32.xlu1 %v3841_v4, %s3971_s17  ;;  %v1865_v4 = vrot.slane %v5557_v11, 2  ;;  %v1870_v11 = vrot.slane %v5627_v34, 2  ;;  %v5798_v47 = vsel %vm538_vm1, %v1867_v45, %v1868_v12  ;;  %v2020_v34 = vrot.slane %v5689_v22, 1 }
 0x1f5   : > { %v5801_v43 = vsel %vm427_vm0, %v1944_v55, %v1946_v17  ;;  %v2022_v27 = vrot.slane %v5679_v1, 1  ;;  %v1964_v45 = vrot.slane %v5739_v57, 2  ;;  %v1967_v17 = vrot.slane %v1731_v35, 2 }
 0x1f6   : > { %3837 = vrot.lane.b32.xlu0 %v3836_v21, %s3971_s17  ;;  %v5780_v21 = vsel %vm538_vm1, %v1863_v61, %v1865_v4  ;;  %v1872_v4 = vrot.slane %v5714_v30, 2  ;;  %v5795_v61 = vsel %vm538_vm1, %v1868_v12, %v1870_v11  ;;  %6376 = vst [vmem:[#allocation25_spill] sm:$0xff] %v5801_v43  ;;  %v2021_v22 = vsel %vm427_vm0, %v2019_v25, %v2020_v34 }
 0x1f7   : > { %v2023_v1 = vsel %vm427_vm0, %v2020_v34, %v2022_v27  ;;  %v1837_v25 = vrot.slane %v5377_v40, 2  ;;  %v1838_v35 = vrot.slane %v5309_v19, 2 }
 0x1f8   : > { %3852 = vrot.lane.b32.xlu1 %v3851_v51, %s3971_s17  ;;  %v1943_v51 = vrot.slane %v5739_v57, 1 }
 0x1fa   : > { %3847 = vrot.lane.b32.xlu0 %v3846_v24, %s3971_s17  ;;  %v1873_v24 = vrot.slane %v5717_v2, 2  ;;  %v5804_v46 = vsel %vm427_vm0, %v1943_v51, %v1944_v55  ;;  %v1965_v55 = vrot.slane %v5731_v23, 2 }
 0x1fc   : > { %1987 = vrot.lane.b32.xlu1 %v5780_v21, %s3971_s17  ;;  %v5814_v31 = vsel %vm538_vm1, %v1873_v24, %v1875_v58  ;;  %v5817_v12 = vsel %vm538_vm1, %v1872_v4, %v1873_v24  ;;  %v5830_v58 = vsel %vm538_vm1, %v1965_v55, %v1967_v17  ;;  %v5833_v24 = vsel %vm538_vm1, %v1964_v45, %v1965_v55 }
 0x1fd   : > { %v3861_v51 = vpack.i.bf16 %v5814_v31, %v5801_v43  ;;  %v3856_v11 = vpack.i.bf16 %v5817_v12, %v5804_v46  ;;  %6377 = vst [vmem:[#allocation28_spill] sm:$0xff] %v5830_v58  ;;  %6378 = vst [vmem:[#allocation29_spill] sm:$0xff] %v5833_v24  ;;  %v3871_v4 = vpack.i.bf16 %v5830_v58, %v2023_v1  ;;  %v1840_v45 = vrot.slane %v5306_v52, 2  ;;  %v2163_v58 = vld [vmem:[%s6268_s4 + $0x230] sm:$0xff] }
 0x1fe   : > { %1985 = vrot.lane.b32.xlu0 %v5783_v3, %s3971_s17  ;;  %v3866_v43 = vpack.i.bf16 %v5833_v24, %v2021_v22  ;;  %v1839_v55 = vsel %vm538_vm1, %v1837_v25, %v1838_v35 }
 0x200   : > { %1991 = vrot.lane.b32.xlu1 %v5795_v61, %s3971_s17 }
 0x202   : > { %1989 = vrot.lane.b32.xlu0 %v5798_v47, %s3971_s17 }
 0x204   : > { %3862 = vrot.lane.b32.xlu1 %v3861_v51, %s3971_s17 }
 0x206   : > { %3857 = vrot.lane.b32.xlu0 %v3856_v11, %s3971_s17 }
 0x208   : > { %3872 = vrot.lane.b32.xlu1 %v3871_v4, %s3971_s17 }
 0x20a   : > { %3867 = vrot.lane.b32.xlu0 %v3866_v43, %s3971_s17  ;;  %v1841_v43 = vsel %vm538_vm1, %v1838_v35, %v1840_v45 }
 0x236   : > { %v3763_v27 = vpop.permute.xlu1 %3762 }
 0x237   : > { %v3764_v51 = vunpack.i.l.bf16 %v3763_v27  ;;  %v3765_v4 = vunpack.i.h.bf16 %v3763_v27 }
 0x239   : > { %v2042_v35 = vsel %vm787_vm2, %v5309_v19, %v3765_v4  ;;  %v2160_v19 = vld [vmem:[%s6268_s4 + $0x218] sm:$0xff] }
 0x23a   : > { %v3758_v34 = vpop.permute.xlu0 %3757 }
 0x23b   : > { %v3760_v11 = vunpack.i.h.bf16 %v3758_v34  ;;  %v3759_v17 = vunpack.i.l.bf16 %v3758_v34  ;;  %v2058_v34 = vsel %vm787_vm2, %v1841_v43, %v3764_v51  ;;  %v2158_v43 = vld [vmem:[%s6268_s4 + $0x208] sm:$0xff] }
 0x23d   : > { %v2057_v1 = vsel %vm787_vm2, %v1839_v55, %v3759_v17  ;;  %v2041_v22 = vsel %vm787_vm2, %v5377_v40, %v3760_v11  ;;  %v2162_v40 = vld [vmem:[%s6268_s4 + $0x228] sm:$0xff] }
 0x23e   : > { %2268 = vmatprep.mubr.f32.mxu1 %v2057_v1 }
 0x23f   : > { %2269 = vmatmul.mubr.f32.vlgmr.msra.gmra.mxu1 %v2041_v22 }
 0x240   : > { %v3773_v24 = vpop.permute.xlu1 %3772  ;;  %3518 = vmatpush3.msra.mxu1 %v5364_v7  ;;  %2273 = vmatprep.mubr.f32.mxu1 %v2058_v34  ;;  %v2161_v7 = vld [vmem:[%s6268_s4 + $0x220] sm:$0xff] }
 0x241   : > { %v3768_v25 = vpop.permute.xlu0 %3767  ;;  %3519 = vmatprep.subr.mxu1 %v2163_v58  ;;  %v3774_v11 = vunpack.i.l.bf16 %v3773_v24  ;;  %v3775_v17 = vunpack.i.h.bf16 %v3773_v24  ;;  %v2159_v24 = vld [vmem:[%s6268_s4 + $0x210] sm:$0xff] }
 0x242   : > { %v3769_v52 = vunpack.i.l.bf16 %v3768_v25  ;;  %v3770_v27 = vunpack.i.h.bf16 %v3768_v25  ;;  %3520 = vmatpush3.msra.mxu1 %v2163_v58 }
 0x243   : > { %2274 = vmatmul.mubr.f32.gmra.mxu1 %v2042_v35  ;;  %3521 = vmatprep.subr.mxu1 %v2162_v40  ;;  %v2060_v22 = vsel %vm787_vm2, %v5632_v54, %v3774_v11  ;;  %v2044_v4 = vsel %vm787_vm2, %v5359_v5, %v3775_v17 }
 0x244   : > { %v2059_v51 = vsel %vm787_vm2, %v5635_v10, %v3769_v52  ;;  %3522 = vmatpush3.msra.mxu1 %v2162_v40  ;;  %v2043_v1 = vsel %vm787_vm2, %v5426_v48, %v3770_v27 }
 0x245   : > { %2278 = vmatprep.mubr.f32.mxu1 %v2059_v51  ;;  %3523 = vmatprep.subr.mxu1 %v2161_v7 }
 0x246   : > { %3524 = vmatpush3.msra.mxu1 %v2161_v7 }
 0x247   : > { %v3783_v55 = vpop.permute.xlu1 %3782  ;;  %v3778_v45 = vpop.permute.xlu0 %3777  ;;  %2279 = vmatmul.mubr.f32.gmra.mxu1 %v2043_v1  ;;  %3525 = vmatprep.subr.mxu1 %v2160_v19 }
 0x248   : > { %v3780_v58 = vunpack.i.h.bf16 %v3778_v45  ;;  %v3779_v10 = vunpack.i.l.bf16 %v3778_v45  ;;  %2283 = vmatprep.mubr.f32.mxu1 %v2060_v22  ;;  %3526 = vmatpush3.msra.mxu1 %v2160_v19  ;;  %v3784_v54 = vunpack.i.l.bf16 %v3783_v55  ;;  %v3785_v5 = vunpack.i.h.bf16 %v3783_v55 }
 0x249   : > { %3527 = vmatprep.subr.mxu1 %v2159_v24 }
 0x24a   : > { %v2045_v48 = vsel %vm787_vm2, %v5467_v63, %v3780_v58  ;;  %v2061_v34 = vsel %vm787_vm2, %v5669_v0, %v3779_v10  ;;  %3528 = vmatpush3.msra.mxu1 %v2159_v24  ;;  %v2157_v63 = vld [vmem:[%s6268_s4 + $0x200] sm:$0xff]  ;;  %v2062_v27 = vsel %vm787_vm2, %v5701_v60, %v3784_v54  ;;  %v2046_v7 = vsel %vm787_vm2, %v5443_v59, %v3785_v5 }
 0x24b   : > { %2413 = vmatprep.mubr.f32.mxu0 %v2045_v48  ;;  %2284 = vmatmul.mubr.f32.gmra.mxu1 %v2044_v4  ;;  %v3793_v25 = vpop.permute.xlu1 %3792 }
 0x24c   : > { %v3788_v52 = vpop.permute.xlu0 %3787  ;;  %2288 = vmatprep.mubr.f32.mxu1 %v2061_v34  ;;  %3529 = vmatprep.subr.mxu1 %v2158_v43  ;;  %v3794_v17 = vunpack.i.l.bf16 %v3793_v25  ;;  %v3795_v58 = vunpack.i.h.bf16 %v3793_v25 }
 0x24d   : > { %3530 = vmatpush3.msra.mxu1 %v2158_v43  ;;  %v3789_v40 = vunpack.i.l.bf16 %v3788_v52  ;;  %v3790_v35 = vunpack.i.h.bf16 %v3788_v52 }
 0x24e   : > { %3531 = vmatprep.subr.mxu1 %v2157_v63  ;;  %v2064_v59 = vsel %vm787_vm2, %v5724_v28, %v3794_v17 }
 0x24f   : > { %2289 = vmatmul.mubr.f32.gmra.mxu1 %v2045_v48  ;;  %v2063_v55 = vsel %vm787_vm2, %v5727_v33, %v3789_v40  ;;  %v2047_v22 = vsel %vm787_vm2, %v5523_v15, %v3790_v35 }
 0x250   : > { %2293 = vmatprep.mubr.f32.mxu1 %v2062_v27  ;;  %3532 = vmatpush3.msra.mxu1 %v2157_v63 }
 0x253   : > { %v3798_v51 = vpop.permute.xlu0 %3797  ;;  %2294 = vmatmul.mubr.f32.gmra.mxu1 %v2046_v7 }
 0x254   : > { %v3799_v45 = vunpack.i.l.bf16 %v3798_v51  ;;  %2298 = vmatprep.mubr.f32.mxu1 %v2063_v55  ;;  %v3800_v24 = vunpack.i.h.bf16 %v3798_v51 }
 0x255   : > { %v3803_v11 = vpop.permute.xlu1 %3802 }
 0x256   : > { %v3805_v1 = vunpack.i.h.bf16 %v3803_v11  ;;  %v2073_v19 = vsel %vm787_vm2, %v5488_v18, %v3799_v45  ;;  %v3804_v54 = vunpack.i.l.bf16 %v3803_v11  ;;  %v2048_v18 = vsel %vm787_vm2, %v5511_v49, %v3795_v58 }
 0x257   : > { %2414 = vmatmul.mubr.f32.vlgmr.msra.gmra.mxu0 %v2073_v19  ;;  %2299 = vmatmul.mubr.f32.gmra.mxu1 %v2047_v22  ;;  %v2065_v15 = vsel %vm787_vm2, %v5749_v9, %v3800_v24 }
 0x258   : > { %2418 = vmatprep.mubr.f32.mxu0 %v2046_v7  ;;  %2303 = vmatprep.mubr.f32.mxu1 %v2064_v59  ;;  %v2074_v43 = vsel %vm787_vm2, %v5485_v42, %v3805_v1  ;;  %v2049_v42 = vsel %vm787_vm2, %v5584_v41, %v3804_v54 }
 0x259   : > { %v3808_v10 = vpop.permute.xlu0 %3807 }
 0x25a   : > { %v3813_v48 = vpop.permute.xlu1 %3812  ;;  %v3809_v34 = vunpack.i.l.bf16 %v3808_v10  ;;  %v3810_v40 = vunpack.i.h.bf16 %v3808_v10 }
 0x25b   : > { %v3814_v4 = vunpack.i.l.bf16 %v3813_v48  ;;  %2419 = vmatmul.mubr.f32.gmra.mxu0 %v2074_v43  ;;  %2304 = vmatmul.mubr.f32.gmra.mxu1 %v2048_v18  ;;  %v3815_v27 = vunpack.i.h.bf16 %v3813_v48 }
 0x25c   : > { %2423 = vmatprep.mubr.f32.mxu0 %v2047_v22  ;;  %2308 = vmatprep.mubr.f32.mxu1 %v2065_v15  ;;  %v2066_v49 = vsel %vm787_vm2, %v5765_v39, %v3809_v34 }
 0x25d   : > { %v2075_v5 = vsel %vm787_vm2, %v5539_v20, %v3814_v4  ;;  %v2050_v20 = vsel %vm787_vm2, %v5562_v13, %v3810_v40  ;;  %v2067_v41 = vsel %vm787_vm2, %v5783_v3, %v3815_v27 }
 0x25e   : > { %v3823_v25 = vpop.permute.xlu1 %3822 }
 0x25f   : > { %2424 = vmatmul.mubr.f32.gmra.mxu0 %v2075_v5  ;;  %2309 = vmatmul.mubr.f32.gmra.mxu1 %v2049_v42  ;;  %v3824_v45 = vunpack.i.l.bf16 %v3823_v25  ;;  %v3825_v58 = vunpack.i.h.bf16 %v3823_v25 }
 0x260   : > { %v3818_v52 = vpop.permute.xlu0 %3817  ;;  %2428 = vmatprep.mubr.f32.mxu0 %v2048_v18  ;;  %2313 = vmatprep.mubr.f32.mxu1 %v2066_v49 }
 0x261   : > { %v3820_v63 = vunpack.i.h.bf16 %v3818_v52  ;;  %v3819_v17 = vunpack.i.l.bf16 %v3818_v52  ;;  %v2068_v13 = vsel %vm787_vm2, %v5780_v21, %v3824_v45 }
 0x262   : > { %v3833_v35 = vpop.permute.xlu1 %3832 }
 0x263   : > { %v2076_v7 = vsel %vm787_vm2, %v5533_v14, %v3820_v63  ;;  %2314 = vmatmul.mubr.f32.gmra.mxu1 %v2050_v20  ;;  %v3835_v1 = vunpack.i.h.bf16 %v3833_v35  ;;  %v2051_v14 = vsel %vm787_vm2, %v5620_v32, %v3819_v17  ;;  %v3834_v4 = vunpack.i.l.bf16 %v3833_v35 }
 0x264   : > { %v3828_v11 = vpop.permute.xlu0 %3827  ;;  %2429 = vmatmul.mubr.f32.gmra.mxu0 %v2076_v7  ;;  %2318 = vmatprep.mubr.f32.mxu1 %v2067_v41 }
 0x265   : > { %v3829_v51 = vunpack.i.l.bf16 %v3828_v11  ;;  %2433 = vmatprep.mubr.f32.mxu0 %v2049_v42  ;;  %v3830_v22 = vunpack.i.h.bf16 %v3828_v11  ;;  %v2078_v48 = vsel %vm787_vm2, %v5588_v37, %v3835_v1  ;;  %v2053_v37 = vsel %vm787_vm2, %v5647_v62, %v3834_v4 }
 0x266   : > { %v3843_v10 = vpop.permute.xlu1 %3842 }
 0x267   : > { %v2077_v19 = vsel %vm787_vm2, %v5593_v16, %v3829_v51  ;;  %2319 = vmatmul.mubr.f32.gmra.mxu1 %v2051_v14  ;;  %v3844_v24 = vunpack.i.l.bf16 %v3843_v10  ;;  %v2052_v16 = vsel %vm787_vm2, %v5654_v44, %v3825_v58  ;;  %v2069_v32 = vsel %vm787_vm2, %v5798_v47, %v3830_v22  ;;  %v6381_v58 = vld [vmem:[#allocation25_spill] sm:$0xff] }
 0x268   : > { %v3838_v55 = vpop.permute.xlu0 %3837  ;;  %2434 = vmatmul.mubr.f32.gmra.mxu0 %v2077_v19  ;;  %2323 = vmatprep.mubr.f32.mxu1 %v2068_v13  ;;  %v3845_v25 = vunpack.i.h.bf16 %v3843_v10  ;;  %v6382_v10 = vld [vmem:[#allocation29_spill] sm:$0xff] }
 0x269   : > { %2438 = vmatprep.mubr.f32.mxu0 %v2050_v20  ;;  %v3839_v43 = vunpack.i.l.bf16 %v3838_v55  ;;  %v2079_v34 = vsel %vm787_vm2, %v5624_v56, %v3844_v24  ;;  %v3840_v15 = vunpack.i.h.bf16 %v3838_v55 }
 0x26a   : > { %v3853_v54 = vpop.permute.xlu1 %3852  ;;  %v2071_v62 = vsel %vm787_vm2, %v5817_v12, %v3845_v25 }
 0x26b   : > { %2324 = vmatmul.mubr.f32.gmra.mxu1 %v2052_v16  ;;  %v2070_v44 = vsel %vm787_vm2, %v5795_v61, %v3839_v43  ;;  %v2054_v56 = vsel %vm787_vm2, %v5664_v6, %v3840_v15  ;;  %v3854_v40 = vunpack.i.l.bf16 %v3853_v54  ;;  %v3855_v35 = vunpack.i.h.bf16 %v3853_v54 }
 0x26c   : > { %v3848_v59 = vpop.permute.xlu0 %3847  ;;  %2439 = vmatmul.mubr.f32.gmra.mxu0 %v2078_v48  ;;  %2328 = vmatprep.mubr.f32.mxu1 %v2069_v32 }
 0x26d   : > { %2443 = vmatprep.mubr.f32.mxu0 %v2051_v14  ;;  %v3850_v18 = vunpack.i.h.bf16 %v3848_v59  ;;  %v3849_v5 = vunpack.i.l.bf16 %v3848_v59  ;;  %v2072_v6 = vsel %vm787_vm2, %v5814_v31, %v3854_v40  ;;  %v2056_v7 = vsel %vm787_vm2, %v5717_v2, %v3855_v35  ;;  %v6383_v14 = vld [vmem:[#allocation28_spill] sm:$0xff] }
 0x26e   : > { %v1988_v42 = vpop.permute.xlu1 %1987 }
 0x26f   : > { %2329 = vmatmul.mubr.f32.gmra.mxu1 %v2053_v37  ;;  %v2080_v63 = vsel %vm787_vm2, %v5657_v36, %v3850_v18  ;;  %v2055_v36 = vsel %vm787_vm2, %v5714_v30, %v3849_v5  ;;  %v2082_v51 = vsel %vm787_vm2, %v5682_v50, %v1988_v42 }
 0x270   : > { %2444 = vmatmul.mubr.f32.gmra.mxu0 %v2079_v34  ;;  %v1986_v52 = vpop.permute.xlu0 %1985  ;;  %2333 = vmatprep.mubr.f32.mxu1 %v2070_v44 }
 0x271   : > { %2448 = vmatprep.mubr.f32.mxu0 %v2052_v16  ;;  %v2081_v49 = vsel %vm787_vm2, %v5696_v26, %v1986_v52 }
 0x272   : > { %v1992_v11 = vpop.permute.xlu1 %1991 }
 0x273   : > { %2334 = vmatmul.mubr.f32.gmra.mxu1 %v2054_v56  ;;  %v2084_v2 = vsel %vm787_vm2, %v5742_v29, %v1992_v11 }
 0x274   : > { %2449 = vmatmul.mubr.f32.gmra.mxu0 %v2080_v63  ;;  %2338 = vmatprep.mubr.f32.mxu1 %v2071_v62  ;;  %v1990_v27 = vpop.permute.xlu0 %1989  ;;  %v6014_v63 = vld [vmem:[%s6269_s5] ss:$0 sm:$0xff] }
 0x275   : > { %2453 = vmatprep.mubr.f32.mxu0 %v2053_v37  ;;  %v2083_v30 = vsel %vm787_vm2, %v5711_v8, %v1990_v27 }
 0x276   : > { %v3863_v20 = vpop.permute.xlu1 %3862 }
 0x277   : > { %2339 = vmatmul.mubr.f32.gmra.mxu1 %v2055_v36  ;;  %v3864_v45 = vunpack.i.l.bf16 %v3863_v20 }
 0x278   : > { %2454 = vmatmul.mubr.f32.gmra.mxu0 %v2081_v49  ;;  %2343 = vmatprep.mubr.f32.mxu1 %v2072_v6  ;;  %v3858_v26 = vpop.permute.xlu0 %3857 }
 0x279   : > { %2458 = vmatprep.mubr.f32.mxu0 %v2054_v56  ;;  %v3859_v17 = vunpack.i.l.bf16 %v3858_v26  ;;  %v3860_v50 = vunpack.i.h.bf16 %v3858_v26  ;;  %v2090_v29 = vsel %vm787_vm2, %v5731_v23, %v3864_v45 }
 0x27a   : > { %v3873_v55 = vpop.permute.xlu1 %3872 }
 0x27b   : > { %2344 = vmatmul.mubr.f32.gmra.mxu1 %v2056_v7  ;;  %v3874_v1 = vunpack.i.l.bf16 %v3873_v55  ;;  %v3875_v23 = vunpack.i.h.bf16 %v3873_v55 }
 0x27c   : > { %2459 = vmatmul.mubr.f32.gmra.mxu0 %v2082_v51  ;;  %3533 = vmatprep.mubr.msk.f32.mxu1 %vm787_vm2, %v5669_v0  ;;  %v2089_v0 = vsel %vm787_vm2, %v5739_v57, %v3859_v17  ;;  %v3868_v8 = vpop.permute.xlu0 %3867  ;;  %v6379_v57 = vld [vmem:[#allocation22_spill] sm:$0xff] }
 0x27d   : > { %2463 = vmatprep.mubr.f32.mxu0 %v2055_v36  ;;  %v3869_v41 = vunpack.i.l.bf16 %v3868_v8 }
 0x27f   : > { %3534 = vmatmul.mubr.msk.f32.vlgmr.msra.gmra.mxu1 %vm787_vm2, %v5701_v60  ;;  %v3865_v60 = vunpack.i.h.bf16 %v3863_v20 }
 0x280   : > { %2464 = vmatmul.mubr.f32.gmra.mxu0 %v2083_v30  ;;  %3536 = vmatprep.mubr.msk.f32.mxu1 %vm787_vm2, %v5727_v33  ;;  %v2085_v33 = vsel %vm787_vm2, %v5760_v53, %v3860_v50  ;;  %v2091_v53 = vsel %vm787_vm2, %v5692_v38, %v3869_v41 }
 0x281   : > { %2468 = vmatprep.mubr.f32.mxu0 %v2056_v7 }
 0x283   : > { %3537 = vmatmul.mubr.msk.f32.gmra.mxu1 %vm787_vm2, %v5724_v28  ;;  %v3870_v28 = vunpack.i.h.bf16 %v3868_v8 }
 0x284   : > { %2469 = vmatmul.mubr.f32.gmra.mxu0 %v2084_v2  ;;  %3539 = vmatprep.mubr.msk.f32.mxu1 %vm787_vm2, %v5749_v9  ;;  %v2086_v9 = vsel %vm787_vm2, %v6379_v57, %v3865_v60 }
 0x285   : > { %2473 = vmatprep.mubr.f32.mxu0 %v2089_v0 }
 0x287   : > { %3540 = vmatmul.mubr.msk.f32.gmra.mxu1 %vm787_vm2, %v5765_v39  ;;  %v2087_v39 = vsel %vm787_vm2, %v5804_v46, %v3870_v28  ;;  %v2036_v46 = vrot.slane %v5692_v38, 2 }
 0x288   : > { %2474 = vmatmul.mubr.f32.gmra.mxu0 %v2085_v33  ;;  %3542 = vmatprep.mubr.msk.f32.mxu1 %vm787_vm2, %v5783_v3  ;;  %v6380_v3 = vld [vmem:[#allocation21_spill] sm:$0xff] }
 0x289   : > { %2478 = vmatprep.mubr.f32.mxu0 %v2090_v29  ;;  %v2092_v19 = vsel %vm787_vm2, %v6380_v3, %v3874_v1 }
 0x28b   : > { %3543 = vmatmul.mubr.msk.f32.gmra.mxu1 %vm787_vm2, %v5780_v21  ;;  %v2088_v21 = vsel %vm787_vm2, %v6381_v58, %v3875_v23  ;;  %v3973_v23 = vmov 1983009808  }
 0x28c   : > { %2479 = vmatmul.mubr.f32.gmra.mxu0 %v2086_v9  ;;  %3545 = vmatprep.mubr.msk.f32.mxu1 %vm787_vm2, %v5798_v47  ;;  %v2037_v47 = vrot.slane %v6380_v3, 2 }
 0x28d   : > { %2483 = vmatprep.mubr.f32.mxu0 %v2091_v53 }
 0x28f   : > { %3546 = vmatmul.mubr.msk.f32.gmra.mxu1 %vm787_vm2, %v5795_v61  ;;  %v2038_v61 = vsel %vm538_vm1, %v2036_v46, %v2037_v47 }
 0x290   : > { %2484 = vmatmul.mubr.f32.gmra.mxu0 %v2087_v39  ;;  %3548 = vmatprep.mubr.msk.f32.mxu1 %vm787_vm2, %v5817_v12  ;;  %v6384_v12 = vld [vmem:[#allocation18_spill] sm:$0xff]  ;;  %v2754_v39 = vunpack.c.l.s4 %v3973_v23 }
 0x291   : > { %2488 = vmatprep.mubr.f32.mxu0 %v2092_v19  ;;  %v2039_v22 = vrot.slane %v6384_v12, 2  ;;  %v3974_v19 = vmov 1934713408  }
 0x292   : > { %v2818_v58 = vunpack.c.l.s4 %v3974_v19 }
 0x293   : > { %3549 = vmatmul.mubr.msk.f32.gmra.mxu1 %vm787_vm2, %v5814_v31  ;;  %v2040_v13 = vsel %vm538_vm1, %v2037_v47, %v2039_v22 }
 0x294   : > { %2489 = vmatmul.mubr.f32.gmra.mxu0 %v2088_v21  ;;  %3551 = vmatprep.mubr.msk.f32.mxu1 %vm787_vm2, %v6382_v10  ;;  %v2755_v10 = vunpack.c.0.s8 %v2754_v39 }
 0x297   : > { %3552 = vmatmul.mubr.msk.f32.gmra.mxu1 %vm787_vm2, %v6383_v14 }
 0x298   : > { %3554 = vmatprep.mubr.msk.f32.mxu1 %vm787_vm2, %v2038_v61  ;;  %v2819_v61 = vunpack.c.0.s8 %v2818_v58 }
 0x29b   : > { %3555 = vmatmul.mubr.msk.f32.gmra.mxu1 %vm787_vm2, %v2040_v13 }
 0x2ff   : > { %v3319_v31 = vpop.f32.mrf.mxu1 }
 0x301   : > { %v3320_v38 = vpop.f32.mrf.mxu1 }
 0x302   : > { %v3321_v24 = vadd.f32 %v3320_v38, %v3319_v31  ;;  %v6385_v31 = vld [vmem:[#allocation17_spill] sm:$0xff] }
 0x303   : > { %v3322_v59 = vpop.f32.mrf.mxu1  ;;  %v6020_v38 = vsub.s32 %v2755_v10, %v6385_v31 }
 0x304   : > { %v2271_v62 = vadd.f32 %v3321_v24, %v6014_v63 }
 0x305   : > { %v3323_v48 = vpop.f32.mrf.mxu1 }
 0x306   : > { %v6003_v4 = vadd.f32 %v3323_v48, %v3322_v59 }
 0x307   : > { %v3325_v16 = vpop.f32.mrf.mxu1 }
 0x309   : > { %v3326_v43 = vpop.f32.mrf.mxu1 }
 0x30a   : > { %v6005_v32 = vadd.f32 %v3326_v43, %v3325_v16  ;;  %v6023_v43 = vsub.s32 %v2819_v61, %v6385_v31 }
 0x30b   : > { %v3328_v54 = vpop.f32.mrf.mxu1 }
 0x30d   : > { %v3329_v18 = vpop.f32.mrf.mxu1 }
 0x30e   : > { %v6007_v34 = vadd.f32 %v3329_v18, %v3328_v54  ;;  %v2276_v54 = vadd.f32 %v6003_v4, %v6014_v63 }
 0x30f   : > { %v3331_v15 = vpop.f32.mrf.mxu1 }
 0x311   : > { %v3332_v37 = vpop.f32.mrf.mxu1 }
 0x312   : > { %v6009_v25 = vadd.f32 %v3332_v37, %v3331_v15 }
 0x313   : > { %v3334_v52 = vpop.f32.mrf.mxu1 }
 0x315   : > { %v3335_v44 = vpop.f32.mrf.mxu1 }
 0x316   : > { %v3336_v56 = vadd.f32 %v3335_v44, %v3334_v52  ;;  %v2281_v44 = vadd.f32 %v6005_v32, %v6014_v63 }
 0x317   : > { %v3399_v5 = vpop.f32.mrf.mxu0  ;;  %v3337_v40 = vpop.f32.mrf.mxu1 }
 0x319   : > { %v3400_v42 = vpop.f32.mrf.mxu0  ;;  %v3338_v49 = vpop.f32.mrf.mxu1 }
 0x31a   : > { %v3401_v27 = vadd.f32 %v3400_v42, %v3399_v5  ;;  %v3339_v36 = vadd.f32 %v3338_v49, %v3337_v40  ;;  %v2286_v5 = vadd.f32 %v6007_v34, %v6014_v63  ;;  %v2291_v40 = vadd.f32 %v6009_v25, %v6014_v63 }
 0x31b   : > { %v3402_v35 = vpop.f32.mrf.mxu0  ;;  %v3340_v6 = vpop.f32.mrf.mxu1  ;;  %v2296_v42 = vadd.f32 %v3336_v56, %v6014_v63 }
 0x31c   : > { %v6017_v11 = vadd.f32 %v3401_v27, %v2271_v62  ;;  %v2301_v27 = vadd.f32 %v3339_v36, %v6014_v63 }
 0x31d   : > { %v3403_v51 = vpop.f32.mrf.mxu0  ;;  %v3341_v7 = vpop.f32.mrf.mxu1 }
 0x31e   : > { %v3404_v24 = vadd.f32 %v3403_v51, %v3402_v35  ;;  %v3342_v48 = vadd.f32 %v3341_v7, %v3340_v6 }
 0x31f   : > { %v3405_v26 = vpop.f32.mrf.mxu0  ;;  %v3343_v30 = vpop.f32.mrf.mxu1 }
 0x320   : > { %v2306_v51 = vadd.f32 %v3342_v48, %v6014_v63  ;;  %v2421_v32 = vadd.f32 %v3404_v24, %v2276_v54 }
 0x321   : > { %v3406_v17 = vpop.f32.mrf.mxu0  ;;  %v3344_v20 = vpop.f32.mrf.mxu1 }
 0x322   : > { %v3407_v59 = vadd.f32 %v3406_v17, %v3405_v26  ;;  %v3345_v15 = vadd.f32 %v3344_v20, %v3343_v30 }
 0x323   : > { %v3346_v2 = vpop.f32.mrf.mxu1 }
 0x324   : > { %v3408_v50 = vpop.f32.mrf.mxu0  ;;  %v2426_v30 = vadd.f32 %v3407_v59, %v2281_v44  ;;  %v2311_v34 = vadd.f32 %v3345_v15, %v6014_v63  ;;  %v6387_v44 = vld [vmem:[#allocation7_spill] sm:$0xff] }
 0x325   : > { %v3347_v0 = vpop.f32.mrf.mxu1 }
 0x326   : > { %v3409_v45 = vpop.f32.mrf.mxu0  ;;  %v3348_v37 = vadd.f32 %v3347_v0, %v3346_v2 }
 0x327   : > { %v3349_v60 = vpop.f32.mrf.mxu1  ;;  %v3410_v18 = vadd.f32 %v3409_v45, %v3408_v50 }
 0x328   : > { %v3411_v8 = vpop.f32.mrf.mxu0  ;;  %v2316_v17 = vadd.f32 %v3348_v37, %v6014_v63 }
 0x329   : > { %v3350_v41 = vpop.f32.mrf.mxu1  ;;  %v2431_v56 = vadd.f32 %v3410_v18, %v2286_v5 }
 0x32a   : > { %v3412_v33 = vpop.f32.mrf.mxu0  ;;  %v3351_v35 = vadd.f32 %v3350_v41, %v3349_v60 }
 0x32b   : > { %v3352_v55 = vpop.f32.mrf.mxu1  ;;  %v3413_v49 = vadd.f32 %v3412_v33, %v3411_v8 }
 0x32c   : > { %v3414_v29 = vpop.f32.mrf.mxu0  ;;  %v2321_v8 = vadd.f32 %v3351_v35, %v6014_v63 }
 0x32d   : > { %v3353_v57 = vpop.f32.mrf.mxu1 }
 0x32e   : > { %v3415_v28 = vpop.f32.mrf.mxu0  ;;  %v3354_v7 = vadd.f32 %v3353_v57, %v3352_v55 }
 0x32f   : > { %v3355_v1 = vpop.f32.mrf.mxu1  ;;  %v3416_v4 = vadd.f32 %v3415_v28, %v3414_v29  ;;  %v2436_v29 = vadd.f32 %v3413_v49, %v2291_v40 }
 0x330   : > { %v3417_v9 = vpop.f32.mrf.mxu0  ;;  %v2326_v55 = vadd.f32 %v3354_v7, %v6014_v63 }
 0x331   : > { %v3356_v3 = vpop.f32.mrf.mxu1  ;;  %v2441_v41 = vadd.f32 %v3416_v4, %v2296_v42 }
 0x332   : > { %v3418_v53 = vpop.f32.mrf.mxu0  ;;  %v3357_v36 = vadd.f32 %v3356_v3, %v3355_v1 }
 0x333   : > { %v3358_v46 = vpop.f32.mrf.mxu1  ;;  %v3419_v25 = vadd.f32 %v3418_v53, %v3417_v9 }
 0x334   : > { %v3420_v21 = vpop.f32.mrf.mxu0  ;;  %v2331_v3 = vadd.f32 %v3357_v36, %v6014_v63 }
 0x335   : > { %v3359_v14 = vpop.f32.mrf.mxu1  ;;  %v6041_v1 = vadd.f32 %v3419_v25, %v2301_v27 }
 0x336   : > { %v3421_v47 = vpop.f32.mrf.mxu0  ;;  %v3360_v45 = vadd.f32 %v3359_v14, %v3358_v46 }
 0x337   : > { %v3361_v22 = vpop.f32.mrf.mxu1  ;;  %v3422_v50 = vadd.f32 %v3421_v47, %v3420_v21 }
 0x338   : > { %v3423_v12 = vpop.f32.mrf.mxu0  ;;  %v6045_v58 = vadd.f32 %v3360_v45, %v6014_v63 }
 0x339   : > { %v3362_v16 = vpop.f32.mrf.mxu1  ;;  %v2451_v46 = vadd.f32 %v3422_v50, %v2306_v51  ;;  %v6388_v51 = vld [vmem:[#allocation10_spill] sm:$0xff] }
 0x33a   : > { %v3424_v13 = vpop.f32.mrf.mxu0  ;;  %v3363_v57 = vadd.f32 %v3362_v16, %v3361_v22 }
 0x33b   : > { %v3364_v62 = vpop.f32.mrf.mxu1  ;;  %v3425_v2 = vadd.f32 %v3424_v13, %v3423_v12  ;;  %v6386_v13 = vld [vmem:[#allocation8_spill] sm:$0xff] }
 0x33c   : > { %v3426_v52 = vpop.f32.mrf.mxu0  ;;  %v6050_v22 = vadd.f32 %v3363_v57, %v6014_v63 }
 0x33d   : > { %v3365_v26 = vpop.f32.mrf.mxu1  ;;  %v6047_v47 = vadd.f32 %v3425_v2, %v2311_v34 }
 0x33e   : > { %v3427_v6 = vpop.f32.mrf.mxu0  ;;  %v3366_v23 = vadd.f32 %v3365_v26, %v3364_v62 }
 0x33f   : > { %v3535_v0 = vpop.f32.mrf.mxu1  ;;  %v3428_v28 = vadd.f32 %v3427_v6, %v3426_v52 }
 0x340   : > { %v3429_v20 = vpop.f32.mrf.mxu0  ;;  %v2566_v33 = vadd.f32 %v3535_v0, %v2421_v32 }
 0x341   : > { %v2560_v39 = vpop.f32.mrf.mxu1  ;;  %v2461_v59 = vadd.f32 %v3428_v28, %v2316_v17 }
 0x342   : > { %v3430_v60 = vpop.f32.mrf.mxu0  ;;  %vm2640_vm0 = vcmp.ge.f32.partialorder %v2566_v33, 0.0  ;;  %v2656_v53 = vmul.f32 0.01, %v2566_v33  ;;  %v2561_v19 = vadd.f32 %v2560_v39, %v6017_v11  ;;  %v6053_v11 = vadd.f32 %v3366_v23, %v6014_v63 }
 0x343   : > { %v3538_v21 = vpop.f32.mrf.mxu1  ;;  %v3431_v15 = vadd.f32 %v3430_v60, %v3429_v20 }
 0x344   : > { %v3432_v9 = vpop.f32.mrf.mxu0  ;;  %v2672_v14 = vsel %vm2640_vm0, %v2566_v33, %v2656_v53  ;;  %vm2639_vm1 = vcmp.ge.f32.partialorder %v2561_v19, 0.0  ;;  %v2655_v61 = vmul.f32 0.01, %v2561_v19  ;;  %v2576_v12 = vadd.f32 %v3538_v21, %v2431_v56  ;;  %v6390_v33 = vld [vmem:[#allocation12_spill] sm:$0xff] }
 0x345   : > { %v2688_v31 = vadd.f32 %v2672_v14, %v6386_v13  ;;  %v2570_v24 = vpop.f32.mrf.mxu1  ;;  %v6059_v56 = vadd.f32 %v3431_v15, %v2321_v8 }
 0x346   : > { %v3433_v10 = vpop.f32.mrf.mxu0  ;;  %v2671_v16 = vsel %vm2639_vm1, %v2561_v19, %v2655_v61  ;;  %vm2642_vm10 = vcmp.ge.f32.partialorder %v2576_v12, 0.0  ;;  %v2658_v54 = vmul.f32 0.01, %v2576_v12  ;;  %v2571_v18 = vadd.f32 %v2570_v24, %v2426_v30  ;;  %v6389_v30 = vld [vmem:[#allocation9_spill] sm:$0xff]  ;;  %v6391_v61 = vld [vmem:[#allocation11_spill] sm:$0xff] }
 0x347   : > { %v3434_v37 = vadd.f32 %v3433_v10, %v3432_v9  ;;  %v2720_v52 = vmul.f32 0.01, %v2688_v31  ;;  %v2687_v5 = vadd.f32 %v2671_v16, %v6387_v44  ;;  %v3541_v40 = vpop.f32.mrf.mxu1  ;;  %vm2704_vm4 = vcmp.ge.f32.partialorder %v2688_v31, 0.0 }
 0x348   : > { %v3435_v48 = vpop.f32.mrf.mxu0  ;;  %v2674_v62 = vsel %vm2642_vm10, %v2576_v12, %v2658_v54  ;;  %vm2641_vm3 = vcmp.ge.f32.partialorder %v2571_v18, 0.0  ;;  %v2657_v63 = vmul.f32 0.01, %v2571_v18  ;;  %v2586_v27 = vadd.f32 %v3541_v40, %v2441_v41  ;;  %v6392_v54 = vld [vmem:[#allocation14_spill] sm:$0xff] }
 0x349   : > { %vm2703_vm5 = vcmp.ge.f32.partialorder %v2687_v5, 0.0  ;;  %v2719_v4 = vmul.f32 0.01, %v2687_v5  ;;  %v2580_v35 = vpop.f32.mrf.mxu1  ;;  %v2690_v7 = vadd.f32 %v2674_v62, %v6388_v51  ;;  %v2471_v20 = vadd.f32 %v3434_v37, %v2326_v55  ;;  %v6393_v51 = vld [vmem:[#allocation13_spill] sm:$0xff] }
 0x34a   : > { %v3436_v42 = vpop.f32.mrf.mxu0  ;;  %v2673_v26 = vsel %vm2641_vm3, %v2571_v18, %v2657_v63  ;;  %vm2644_vm6 = vcmp.ge.f32.partialorder %v2586_v27, 0.0  ;;  %v2660_v32 = vmul.f32 0.01, %v2586_v27  ;;  %v2581_v17 = vadd.f32 %v2580_v35, %v2436_v29 }
 0x34b   : > { %v3437_v49 = vadd.f32 %v3436_v42, %v3435_v48  ;;  %v2689_v34 = vadd.f32 %v2673_v26, %v6389_v30  ;;  %v3544_v25 = vpop.f32.mrf.mxu1  ;;  %v6061_v50 = vsel %vm2704_vm4, %v2688_v31, %v2720_v52  ;;  %v6063_v2 = vsel %vm2703_vm5, %v2687_v5, %v2719_v4  ;;  %v6394_v30 = vld [vmem:[#allocation16_spill] sm:$0xff] }
 0x34c   : > { %v3438_v6 = vpop.f32.mrf.mxu0  ;;  %v2676_v45 = vsel %vm2644_vm6, %v2586_v27, %v2660_v32  ;;  %v2596_v0 = vadd.f32 %v3544_v25, %v2451_v46  ;;  %vm2706_vm7 = vcmp.ge.f32.partialorder %v2690_v7, 0.0  ;;  %v2722_v60 = vmul.f32 0.01, %v2690_v7 }
 0x34d   : > { %v2692_v41 = vadd.f32 %v2676_v45, %v6390_v33  ;;  %v2590_v28 = vpop.f32.mrf.mxu1  ;;  %v6066_v57 = vadd.f32 %v3437_v49, %v2331_v3  ;;  %v2721_v23 = vmul.f32 0.01, %v2689_v34  ;;  %vm2643_vm8 = vcmp.ge.f32.partialorder %v2581_v17, 0.0 }
 0x34e   : > { %v3439_v36 = vpop.f32.mrf.mxu0  ;;  %v2659_v55 = vmul.f32 0.01, %v2581_v17  ;;  %vm2646_vm9 = vcmp.ge.f32.partialorder %v2596_v0, 0.0  ;;  %v2662_v9 = vmul.f32 0.01, %v2596_v0  ;;  %vm2705_vm12 = vcmp.ge.f32.partialorder %v2689_v34, 0.0 }
 0x34f   : > { %v3440_v8 = vadd.f32 %v3439_v36, %v3438_v6  ;;  %vm2708_vm11 = vcmp.ge.f32.partialorder %v2692_v41, 0.0  ;;  %v2724_v39 = vmul.f32 0.01, %v2692_v41  ;;  %v3547_v53 = vpop.f32.mrf.mxu1  ;;  %v2591_v46 = vadd.f32 %v2590_v28, %v6041_v1 }
 0x350   : > { %v3441_v29 = vpop.f32.mrf.mxu0  ;;  %v2675_v21 = vsel %vm2643_vm8, %v2581_v17, %v2659_v55  ;;  %v2606_v10 = vadd.f32 %v3547_v53, %v2461_v59  ;;  %v6070_v14 = vsel %vm2706_vm7, %v2690_v7, %v2722_v60  ;;  %v2678_v13 = vsel %vm2646_vm9, %v2596_v0, %v2662_v9 }
 0x351   : > { %v6072_v3 = vsel %vm2708_vm11, %v2692_v41, %v2724_v39  ;;  %v2691_v12 = vadd.f32 %v2675_v21, %v6391_v61  ;;  %v2600_v31 = vpop.f32.mrf.mxu1  ;;  %v2694_v18 = vadd.f32 %v2678_v13, %v6392_v54  ;;  %vm2645_vm13 = vcmp.ge.f32.partialorder %v2591_v46, 0.0  ;;  %v6396_v39 = vld [vmem:[#allocation20_spill] sm:$0xff] }
 0x352   : > { %v3442_v19 = vpop.f32.mrf.mxu0  ;;  %v2887_v24 = vcombine.low %v6061_v50, %v6072_v3  ;;  %v2888_v48 = vcombine.high %v6061_v50, %v6072_v3  ;;  %v6080_v1 = vsel %vm2705_vm12, %v2689_v34, %v2721_v23  ;;  %v2661_v15 = vmul.f32 0.01, %v2591_v46 }
 0x353   : > { %vm2707_vm14 = vcmp.ge.f32.partialorder %v2691_v12, 0.0  ;;  %v2723_v59 = vmul.f32 0.01, %v2691_v12  ;;  %v3550_v37 = vpop.f32.mrf.mxu1  ;;  %vm2648_vm15 = vcmp.ge.f32.partialorder %v2606_v10, 0.0  ;;  %v2664_v44 = vmul.f32 0.01, %v2606_v10 }
 0x354   : > { %v3444_v16 = vpop.f32.mrf.mxu0  ;;  %v2601_v5 = vadd.f32 %v2600_v31, %v6047_v47  ;;  %v2481_v40 = vadd.f32 %v3440_v8, %v6045_v58  ;;  %v3443_v42 = vadd.f32 %v3442_v19, %v3441_v29  ;;  %v2677_v63 = vsel %vm2645_vm13, %v2591_v46, %v2661_v15  ;;  %v6395_v29 = vld [vmem:[#allocation15_spill] sm:$0xff] }
 0x355   : > { %v6084_v62 = vsel %vm2707_vm14, %v2691_v12, %v2723_v59  ;;  %v2616_v27 = vadd.f32 %v3550_v37, %v2471_v20  ;;  %v2610_v49 = vpop.f32.mrf.mxu1  ;;  %v2726_v6 = vmul.f32 0.01, %v2694_v18  ;;  %v2693_v7 = vadd.f32 %v2677_v63, %v6393_v51  ;;  %v6397_v31 = vld [vmem:[#allocation19_spill] sm:$0xff]  ;;  %v6398_v59 = vld [vmem:[#allocation24_spill] sm:$0xff] }
 0x356   : > { %v3445_v52 = vpop.f32.mrf.mxu0  ;;  %v2751_v4 = vcombine.low %v6063_v2, %v6084_v62  ;;  %v2752_v35 = vcombine.high %v6063_v2, %v6084_v62  ;;  %vm2710_vm0 = vcmp.ge.f32.partialorder %v2694_v18, 0.0  ;;  %v2680_v47 = vsel %vm2648_vm15, %v2606_v10, %v2664_v44 }
 0x357   : > { %v3446_v26 = vadd.f32 %v3445_v52, %v3444_v16  ;;  %vm2647_vm1 = vcmp.ge.f32.partialorder %v2601_v5, 0.0  ;;  %v3553_v58 = vpop.f32.mrf.mxu1  ;;  %vm2709_vm10 = vcmp.ge.f32.partialorder %v2693_v7, 0.0  ;;  %v2725_v32 = vmul.f32 0.01, %v2693_v7 }
 0x358   : > { %v2696_v34 = vadd.f32 %v2680_v47, %v6394_v30  ;;  %v2663_v17 = vmul.f32 0.01, %v2601_v5  ;;  %vm2650_vm3 = vcmp.ge.f32.partialorder %v2616_v27, 0.0  ;;  %v2666_v25 = vmul.f32 0.01, %v2616_v27 }
 0x359   : > { %v2611_v20 = vadd.f32 %v2610_v49, %v6059_v56  ;;  %v2626_v36 = vadd.f32 %v3553_v58, %v2481_v40  ;;  %v2620_v45 = vpop.f32.mrf.mxu1  ;;  %v6093_v0 = vsel %vm2710_vm0, %v2694_v18, %v2726_v6  ;;  %v6095_v60 = vsel %vm2709_vm10, %v2693_v7, %v2725_v32  ;;  %v6399_v6 = vld [vmem:[#allocation23_spill] sm:$0xff] }
 0x35a   : > { %v2728_v33 = vmul.f32 0.01, %v2696_v34  ;;  %v2679_v41 = vsel %vm2647_vm1, %v2601_v5, %v2663_v17  ;;  %v2767_v28 = vcombine.low %v6080_v1, %v6095_v60  ;;  %v2768_v23 = vcombine.high %v6080_v1, %v6095_v60 }
 0x35b   : > { %v2695_v55 = vadd.f32 %v2679_v41, %v6395_v29  ;;  %v2682_v8 = vsel %vm2650_vm3, %v2616_v27, %v2666_v25  ;;  %vm2712_vm4 = vcmp.ge.f32.partialorder %v2696_v34, 0.0  ;;  %vm2649_vm5 = vcmp.ge.f32.partialorder %v2611_v20, 0.0  ;;  %v3556_v46 = vpop.f32.mrf.mxu1 }
 0x35c   : > { %v2698_v56 = vadd.f32 %v2682_v8, %v6396_v39  ;;  %v2665_v9 = vmul.f32 0.01, %v2611_v20  ;;  %v2903_v53 = vcombine.low %v6070_v14, %v6093_v0  ;;  %vm2652_vm6 = vcmp.ge.f32.partialorder %v2626_v36, 0.0 }
 0x35d   : > { %v2727_v19 = vmul.f32 0.01, %v2695_v55  ;;  %v2668_v21 = vmul.f32 0.01, %v2626_v36  ;;  %v2904_v10 = vcombine.high %v6070_v14, %v6093_v0  ;;  %vm2711_vm7 = vcmp.ge.f32.partialorder %v2695_v55, 0.0  ;;  %v2630_v40 = vpop.f32.mrf.mxu1 }
 0x35e   : > { %v2681_v61 = vsel %vm2649_vm5, %v2611_v20, %v2665_v9  ;;  %v2621_v12 = vadd.f32 %v2620_v45, %v6066_v57  ;;  %v6108_v13 = vsel %vm2712_vm4, %v2696_v34, %v2728_v33  ;;  %v2491_v18 = vadd.f32 %v3446_v26, %v6053_v11 }
 0x35f   : > { %v2697_v16 = vadd.f32 %v2681_v61, %v6397_v31  ;;  %v2684_v54 = vsel %vm2652_vm6, %v2626_v36, %v2668_v21  ;;  %vm2714_vm8 = vcmp.ge.f32.partialorder %v2698_v56, 0.0  ;;  %v2743_v52 = vsel %vm2711_vm7, %v2695_v55, %v2727_v19  ;;  %v6400_v36 = vld [vmem:[#allocation27_spill] sm:$0xff] }
 0x360   : > { %v2700_v15 = vadd.f32 %v2684_v54, %v6398_v59  ;;  %vm2651_vm9 = vcmp.ge.f32.partialorder %v2621_v12, 0.0  ;;  %v2667_v37 = vmul.f32 0.01, %v2621_v12  ;;  %v2730_v44 = vmul.f32 0.01, %v2698_v56 }
 0x361   : > { %vm2713_vm11 = vcmp.ge.f32.partialorder %v2697_v16, 0.0  ;;  %v2636_v5 = vadd.f32 %v3556_v46, %v2491_v18  ;;  %v2486_v27 = vadd.f32 %v3443_v42, %v6050_v22  ;;  %v2729_v49 = vmul.f32 0.01, %v2697_v16 }
 0x362   : > { %vm2716_vm12 = vcmp.ge.f32.partialorder %v2700_v15, 0.0  ;;  %v2732_v63 = vmul.f32 0.01, %v2700_v15  ;;  %v2683_v57 = vsel %vm2651_vm9, %v2621_v12, %v2667_v37  ;;  %v2895_v47 = vrot.slane %v2887_v24, %v6020_v38 }
 0x363   : > { %v2699_v51 = vadd.f32 %v2683_v57, %v6399_v6  ;;  %vm2654_vm13 = vcmp.ge.f32.partialorder %v2636_v5, 0.0  ;;  %v2670_v11 = vmul.f32 0.01, %v2636_v5  ;;  %v2631_v26 = vadd.f32 %v2630_v40, %v2486_v27 }
 0x364   : > { %v2748_v7 = vsel %vm2716_vm12, %v2700_v15, %v2732_v63  ;;  %v2911_v58 = vrot.slane %v2903_v53, %v6020_v38  ;;  %v2746_v32 = vsel %vm2714_vm8, %v2698_v56, %v2730_v44  ;;  %v2745_v25 = vsel %vm2713_vm11, %v2697_v16, %v2729_v49  ;;  %v6401_v56 = vld [vmem:[#allocation26_spill] sm:$0xff] }
 0x365   : > { %v2919_v30 = vcombine.low %v6108_v13, %v2748_v7  ;;  %vm2715_vm14 = vcmp.ge.f32.partialorder %v2699_v51, 0.0  ;;  %v2731_v22 = vmul.f32 0.01, %v2699_v51  ;;  %v2686_v42 = vsel %vm2654_vm13, %v2636_v5, %v2670_v11 }
 0x366   : > { %vm2653_vm15 = vcmp.ge.f32.partialorder %v2631_v26, 0.0  ;;  %v2669_v34 = vmul.f32 0.01, %v2631_v26  ;;  %v2952_v17 = vcombine.high %v2895_v47, %v2911_v58  ;;  %v2702_v45 = vadd.f32 %v2686_v42, %v6400_v36 }
 0x367   : > { %v2747_v20 = vsel %vm2715_vm14, %v2699_v51, %v2731_v22  ;;  %v2951_v33 = vcombine.low %v2895_v47, %v2911_v58  ;;  %v2920_v24 = vcombine.high %v6108_v13, %v2748_v7  ;;  %v2927_v29 = vrot.slane %v2919_v30, %v6020_v38 }
 0x368   : > { %v2685_v41 = vsel %vm2653_vm15, %v2631_v26, %v2669_v34  ;;  %v2759_v55 = vrot.slane %v2751_v4, %v6020_v38  ;;  %v2783_v8 = vcombine.low %v2743_v52, %v2747_v20  ;;  %vm2718_vm0 = vcmp.ge.f32.partialorder %v2702_v45, 0.0 }
 0x369   : > { %v2734_v39 = vmul.f32 0.01, %v2702_v45  ;;  %v2701_v9 = vadd.f32 %v2685_v41, %v6401_v56  ;;  %v2784_v53 = vcombine.high %v2743_v52, %v2747_v20  ;;  %v6132_v19 = vrot.slane %v2952_v17, %v6023_v43 }
 0x36a   : > { %v2775_v21 = vrot.slane %v2767_v28, %v6020_v38  ;;  %v2782_v46 = vrot.slane %v2768_v23, %v6020_v38  ;;  %v2766_v12 = vrot.slane %v2752_v35, %v6020_v38  ;;  %v6147_v31 = vrot.slane %v2951_v33, %v6023_v43 }
 0x36b   : > { %v2750_v4 = vsel %vm2718_vm0, %v2702_v45, %v2734_v39  ;;  %vm2717_vm1 = vcmp.ge.f32.partialorder %v2701_v9, 0.0  ;;  %v2733_v61 = vmul.f32 0.01, %v2701_v9  ;;  %v2791_v37 = vrot.slane %v2783_v8, %v6020_v38 }
 0x36c   : > { %v2935_v13 = vcombine.low %v2746_v32, %v2750_v4  ;;  %v2816_v16 = vcombine.high %v2759_v55, %v2775_v21  ;;  %v2815_v54 = vcombine.low %v2759_v55, %v2775_v21  ;;  %v2936_v28 = vcombine.high %v2746_v32, %v2750_v4 }
 0x36d   : > { %v2749_v18 = vsel %vm2717_vm1, %v2701_v9, %v2733_v61  ;;  %v2832_v59 = vcombine.high %v2766_v12, %v2782_v46  ;;  %v2831_v15 = vcombine.low %v2766_v12, %v2782_v46  ;;  %v2798_v2 = vrot.slane %v2784_v53, %v6020_v38 }
 0x36e   : > { %v2799_v1 = vcombine.low %v2745_v25, %v2749_v18  ;;  %v2800_v60 = vcombine.high %v2745_v25, %v2749_v18  ;;  %v2943_v23 = vrot.slane %v2935_v13, %v6020_v38  ;;  %v6152_v52 = vrot.slane %v2816_v16, %v6023_v43 }
 0x36f   : > { %v2902_v62 = vrot.slane %v2888_v48, %v6020_v38  ;;  %v2918_v35 = vrot.slane %v2904_v10, %v6020_v38  ;;  %v2934_v57 = vrot.slane %v2920_v24, %v6020_v38  ;;  %v2950_v27 = vrot.slane %v2936_v28, %v6020_v38 }
 0x370   : > { %v2984_v44 = vcombine.high %v2927_v29, %v2943_v23  ;;  %v2983_v5 = vcombine.low %v2927_v29, %v2943_v23  ;;  %v2807_v40 = vrot.slane %v2799_v1, %v6020_v38  ;;  %v2814_v63 = vrot.slane %v2800_v60, %v6020_v38 }
 0x371   : > { %v2968_v49 = vcombine.high %v2902_v62, %v2918_v35  ;;  %v2967_v6 = vcombine.low %v2902_v62, %v2918_v35  ;;  %v2823_v14 = vrot.slane %v2815_v54, %v6023_v43  ;;  %v3000_v11 = vcombine.high %v2934_v57, %v2950_v27 }
 0x372   : > { %v2998_v50 = vrot.slane %v2984_v44, %v6023_v43  ;;  %v2991_v3 = vrot.slane %v2983_v5, %v6023_v43  ;;  %v2848_v48 = vcombine.high %v2791_v37, %v2807_v40  ;;  %v2847_v51 = vcombine.low %v2791_v37, %v2807_v40 }
 0x373   : > { %v2864_v0 = vcombine.high %v2798_v2, %v2814_v63  ;;  %v2863_v10 = vcombine.low %v2798_v2, %v2814_v63  ;;  %v2846_v58 = vrot.slane %v2832_v59, %v6023_v43  ;;  %v3014_v22 = vrot.slane %v3000_v11, %v6023_v43 }
 0x374   : > { %v3018_v7 = vcombine.high %v6132_v19, %v2998_v50  ;;  %v3016_v26 = vcombine.high %v6147_v31, %v2991_v3  ;;  %v2862_v47 = vrot.slane %v2848_v48, %v6023_v43  ;;  %v2855_v38 = vrot.slane %v2847_v51, %v6023_v43 }
 0x375   : > { %v2878_v32 = vrot.slane %v2864_v0, %v6023_v43  ;;  %v2871_v30 = vrot.slane %v2863_v10, %v6023_v43  ;;  %v2839_v42 = vrot.slane %v2831_v15, %v6023_v43  ;;  %v2982_v34 = vrot.slane %v2968_v49, %v6023_v43 }
 0x376   : > { %3044 = vrot.lane.b32.xlu1 %v3018_v7, %s3971_s17  ;;  %3040 = vrot.lane.b32.xlu0 %v3016_v26, %s3971_s17  ;;  %v2999_v17 = vcombine.low %v2934_v57, %v2950_v27  ;;  %v2882_v25 = vcombine.high %v6152_v52, %v2862_v47  ;;  %v2880_v20 = vcombine.high %v2823_v14, %v2855_v38 }
 0x377   : > { %v2975_v36 = vrot.slane %v2967_v6, %v6023_v43  ;;  %v3017_v45 = vcombine.low %v6132_v19, %v2998_v50  ;;  %v3015_v24 = vcombine.low %v6147_v31, %v2991_v3  ;;  %v2881_v41 = vcombine.low %v6152_v52, %v2862_v47 }
 0x378   : > { %v3007_v33 = vrot.slane %v2999_v17, %v6023_v43  ;;  %v2879_v29 = vcombine.low %v2823_v14, %v2855_v38  ;;  %v2885_v55 = vcombine.low %v2846_v58, %v2878_v32  ;;  %v2883_v8 = vcombine.low %v2839_v42, %v2871_v30 }
 0x379   : > { %v3021_v39 = vcombine.low %v2982_v34, %v3014_v22  ;;  %v2886_v9 = vcombine.high %v2846_v58, %v2878_v32  ;;  %v2884_v53 = vcombine.high %v2839_v42, %v2871_v30  ;;  %v3022_v43 = vcombine.high %v2982_v34, %v3014_v22 }
 0x37a   : > { %3028 = vrot.lane.b32.xlu1 %v2882_v25, %s3971_s17  ;;  %3024 = vrot.lane.b32.xlu0 %v2880_v20, %s3971_s17  ;;  %v3019_v56 = vcombine.low %v2975_v36, %v3007_v33  ;;  %v3020_v19 = vcombine.high %v2975_v36, %v3007_v33 }
 0x37e   : > { %3036 = vrot.lane.b32.xlu1 %v2886_v9, %s3971_s17  ;;  %3032 = vrot.lane.b32.xlu0 %v2884_v53, %s3971_s17 }
 0x382   : > { %3052 = vrot.lane.b32.xlu1 %v3022_v43, %s3971_s17  ;;  %3048 = vrot.lane.b32.xlu0 %v3020_v19, %s3971_s17  ;;  %s3084_s17 = sadd.s32 %s3246_s9, %s4083_s16  ;;  %s3072_s16 = scalar_lea.sflag [#allocation3], %s322_s14 }
 0x383   : > { %s3247_s18 = sshll.u32 %s3084_s17, 7 }
 0x384   : > { %s6208_s7 = scalar_lea.hbm %s6270_s6, %s3247_s18 }
 0x3e8   : > { %v3045_v21 = vpop.permute.xlu1 %3044  ;;  %v3041_v46 = vpop.permute.xlu0 %3040 }
 0x3e9   : > { %v3060_v4 = vsel %vm787_vm2, %v3017_v45, %v3045_v21  ;;  %v3059_v61 = vsel %vm787_vm2, %v3015_v24, %v3041_v46 }
 0x3ea   : > { %3068 = vst [vmem:[%s324_s12 + $0x28] sm:$0xff] %v3060_v4  ;;  %3067 = vst [vmem:[%s324_s12 + $0x20] sm:$0xff] %v3059_v61 }
 0x3ec   : > { %v3029_v12 = vpop.permute.xlu1 %3028  ;;  %v3025_v13 = vpop.permute.xlu0 %3024 }
 0x3ed   : > { %v3056_v31 = vsel %vm787_vm2, %v2881_v41, %v3029_v12  ;;  %v3055_v16 = vsel %vm787_vm2, %v2879_v29, %v3025_v13 }
 0x3ee   : > { %3064 = vst [vmem:[%s324_s12 + $0x8] sm:$0xff] %v3056_v31  ;;  %3063 = vst [vmem:[%s324_s12] sm:$0xff] %v3055_v16 }
 0x3f0   : > { %v3037_v54 = vpop.permute.xlu1 %3036  ;;  %v3033_v28 = vpop.permute.xlu0 %3032 }
 0x3f1   : > { %v3058_v18 = vsel %vm787_vm2, %v2885_v55, %v3037_v54  ;;  %v3057_v59 = vsel %vm787_vm2, %v2883_v8, %v3033_v28 }
 0x3f2   : > { %3066 = vst [vmem:[%s324_s12 + $0x18] sm:$0xff] %v3058_v18  ;;  %3065 = vst [vmem:[%s324_s12 + $0x10] sm:$0xff] %v3057_v59 }
 0x3f4   : > { %v3053_v15 = vpop.permute.xlu1 %3052  ;;  %v3049_v1 = vpop.permute.xlu0 %3048 }
 0x3f5   : > { %v3062_v60 = vsel %vm787_vm2, %v3021_v39, %v3053_v15  ;;  %v3061_v23 = vsel %vm787_vm2, %v3019_v56, %v3049_v1 }
 0x3f6   : > { %3070 = vst [vmem:[%s324_s12 + $0x38] sm:$0xff] %v3062_v60  ;;  %3069 = vst [vmem:[%s324_s12 + $0x30] sm:$0xff] %v3061_v23 }
 0x3f7   : > { %3889 = shalt.err (!%p3886_p9)
}
 0x3f8   : > { %s3890_s13 = scalar_lea.hbm %s6208_s7, 1024  ;;  %s3894_s9 = scalar_lea.hbm %s6270_s6, 4096 }
 0x3f9   : > { %p3891_p10 = scmp.ne.s32.totalorder %s6208_s7, %s3890_s13  ;;  %p3895_p13 = scmp.lt.s32.totalorder %s6208_s7, %s6270_s6 }
 0x3fa   : > { %p3896_p0 = scmp.lt.s32.totalorder %s3894_s9, %s3890_s13 }
 0x3fb   : > { %p3892_p11 = pnand %p3891_p10, %p4062_p3 }
 0x3fc   : > { %p3897_p1 = por %p3896_p0, %p3895_p13 }
 0x3fd   : > { %p3893_p12 = pneg %p3892_p11 }
 0x3ff   : > { %p3898_p2 = pnand %p3897_p1, %p3893_p12 }
 0x401   : > { %3901 = shalt.err (!%p3898_p2)
}
 0x402   : > { %3560 = dma.vmem_to_hbm [thread:$0]  (%p4062_p3), %s6210_s8, 1024, %s6208_s7, %s3072_s16  }
 0x403 PF: > { %p3566_p4 = scmp.ge.s32.totalorder %s3968_s28, 2  ;;  %s3100_s25 = sand.u32 1, %s3940_s21  }
 0x404   : > { %s3101_s20 = scalar_lea.sflag [#allocation3], %s3100_s25 }
 0x405   : > { %p3563_p5 = pnand %p3566_p4, %p4071_p8 }
 0x407   : > { %p3564_p6 = pneg %p3563_p5 }
 0x409   : > { %3935 = dma.done.wait (%p3564_p6), %s3101_s20, 1024  }
 0x40a   : > { %3937 = vsyncadd (%p3564_p6), %s3101_s20, 4294966272  ;;  %s19_s28 = sadd.s32 1, %s3968_s28   ;;  %s6402_s10 = sld [smem:[#allocation5_spill]] }
 0x40b   : > { %p16_p7 = scmp.ge.s32.totalorder %s19_s28, 6   ;;  %s6403_s8 = sld [smem:[#allocation6_spill]] }
 0x40c   : > { %s6404_s21 = smov %s3944_s22  ;;  %s6405_s22 = smov %s3948_s23 }
 0x40d   : > { %s6406_s23 = smov %s4080_s15  ;;  %s6407_s24 = smov %s3960_s26 }
 0x40e   : > { %s6408_s25 = smov %s3964_s27  ;;  %18 = sbr.rel (!%p16_p7) target bundleno = 5 (0x5), region = 82 }
 0x410   : > { %s6409_s26 = smov %s6402_s10 }
 0x411   : > { %s6410_s27 = smov %s6403_s8 }
 0x413   :  { %3106 = vsyncpa [#allocation3], 1 }
 0x414   :  { %3108 = vsyncpa [#allocation3 + $0x1], 1 }

</bundles_post_ra>
